<compile_context>
chip_gen: v5e
topology: v5e:2x2
jax: 0.10.0
libtpu: 0.0.40
codegen_flags: <defaults>
</compile_context>

<pallas_src>
import math

import jax
import jax.numpy as jnp
from jax.experimental import pallas as pl
from jax.experimental.pallas import tpu as pltpu

_SQRT_2 = math.sqrt(2.0)


def _erf(x):
    # Abramowitz & Stegun 7.1.26 rational approximation, |err| <= 1.5e-7.
    # TODO(synk): check whether lax.erf lowers under Mosaic (or switch to a
    #             tanh-form GELU, EUP-resident) to cut VALU work on v5e at
    #             production E; needs a numerics sign-off vs exact-erf GELU.
    a1, a2, a3, a4, a5 = 0.254829592, -0.284496736, 1.421413741, -1.453152027, 1.061405429
    p = 0.3275911
    sgn = jnp.where(x >= 0.0, 1.0, -1.0)
    ax = jnp.abs(x)
    t = 1.0 / (1.0 + p * ax)
    poly = ((((a5 * t + a4) * t + a3) * t + a2) * t + a1) * t
    return sgn * (1.0 - poly * jnp.exp(-ax * ax))


def _gelu(x):
    # torch.nn.GELU() default = exact (erf-based) GELU.
    return 0.5 * x * (1.0 + _erf(x * (1.0 / _SQRT_2)))


# ----------------------------------------------------------------------------
# Kernel: router MLP + softmax + top-k over local experts, one token tile/step
# ----------------------------------------------------------------------------
def _make_router_kernel(num_experts, num_shared, top_k, out_pad_w, matmul_dtype):
    num_local = num_experts - num_shared
    assert 0 < top_k <= num_local, "top_k must be in (0, num_local]"
    outw = num_experts + 2 * top_k
    pad_w = out_pad_w - outw
    assert pad_w >= 0

    def kernel(x_ref, w1_ref, b1_ref, w2_ref, b2_ref, out_ref):
        x = x_ref[...]                                            # (T, E) f32

        # Linear -> GELU -> Linear; MXU in matmul_dtype, f32 accumulation.
        h = jnp.dot(x.astype(matmul_dtype), w1_ref[...],
                    preferred_element_type=jnp.float32) + b1_ref[...]   # (T, 2E)
        h = _gelu(h)
        logits = jnp.dot(h.astype(matmul_dtype), w2_ref[...],
                         preferred_element_type=jnp.float32) + b2_ref[...]  # (T, NE)

        # Stable softmax; reciprocal goes to the EUP, multiply replaces divide.
        m = jnp.max(logits, axis=-1, keepdims=True)
        e = jnp.exp(logits - m)
        inv = pl.reciprocal(jnp.sum(e, axis=-1, keepdims=True), approx=False)
        w = e * inv                                               # (T, NE)

        # Top-k over local experts: repeated max + mask, lowest-index tie-break.
        lw = w[:, num_shared:]                                    # (T, num_local)
        col = jax.lax.broadcasted_iota(jnp.int32, lw.shape, 1)
        vals, idxs = [], []
        remaining = lw
        for _ in range(top_k):
            mx = jnp.max(remaining, axis=-1, keepdims=True)       # (T, 1)
            idx = jnp.min(jnp.where(remaining == mx, col, num_local),
                          axis=-1, keepdims=True)                 # lowest-index tie-break
            vals.append(mx)
            idxs.append(idx.astype(jnp.float32))
            remaining = jnp.where(col == idx, -jnp.inf, remaining)

        # Build the packed slab in registers and store it ONCE, lane-dense
        # (width out_pad_w = multiple of 128): [weights | vals | idx | zeros].
        pieces = [w] + vals + idxs
        if pad_w:
            pieces.append(jnp.zeros((w.shape[0], pad_w), jnp.float32))
        out_ref[...] = jnp.concatenate(pieces, axis=-1)

    return kernel


# ----------------------------------------------------------------------------
# Wrapper: pallas_call with token-tiled grid + unpacking of the lane-dense slab
# ----------------------------------------------------------------------------
def dynamic_router_forward(x, params, *, num_experts, num_shared, top_k,
                           tile_n=512, matmul_dtype=jnp.bfloat16):
    """x: (N, E) float32 -> (global_weights, local_weights, local_indices, weights)."""
    N, E = x.shape
    outw = num_experts + 2 * top_k
    out_pad_w = ((max(outw, 128) + 127) // 128) * 128   # lane-dense output slab

    assert tile_n % 8 == 0, "tile_n must be a multiple of 8 (sublane granularity)"
    # Keep >= 2 grid steps when the token count allows it: the "parallel" axis
    # is the only thing sharded across v7x's 2 TensorCores (no-op on v5e/v6e).
    if N >= 16:
        half = -(-N // 2)                     # ceil(N / 2)
        tile_n = min(tile_n, ((half + 7) // 8) * 8)
    tile_n = max(tile_n, 8)
    grid = (pl.cdiv(N, tile_n),)
    # Tail tiles (N % tile_n) compute softmax/top-k on padded garbage rows;
    # this is safe ONLY because Pallas masks partial output blocks on writeback
    # and rows are independent (do not break this if the layout is refactored).

    # bf16 MXU operands halve resident weight VMEM (most valuable on v7x 64MiB);
    # biases stay f32 (added post-accumulation).
    w1 = params['w1'].astype(matmul_dtype)
    w2 = params['w2'].astype(matmul_dtype)
    b1 = params['b1'].astype(jnp.float32)
    b2 = params['b2'].astype(jnp.float32)

    kernel = _make_router_kernel(num_experts, num_shared, top_k, out_pad_w,
                                 matmul_dtype)

    packed = pl.pallas_call(
        kernel,
        out_shape=jax.ShapeDtypeStruct((N, out_pad_w), jnp.float32),
        grid_spec=pltpu.PrefetchScalarGridSpec(
            num_scalar_prefetch=0,
            grid=grid,
            in_specs=[
                pl.BlockSpec((tile_n, E), lambda i: (i, 0)),          # tokens
                # Weights/biases VMEM-resident (constant index_map).
                # TODO(synk): at production E, single-buffer these
                #             (pipeline_mode=pl.Buffered(1)) or stream w1/w2
                #             from HBM with a hidden-dim reduction axis and set
                #             vmem_limit_bytes — a double-buffered f32 w1 that
                #             fits v5e/v6e 128 MiB will not fit v7x's 64 MiB.
                pl.BlockSpec(w1.shape, lambda i: (0, 0)),
                pl.BlockSpec(b1.shape, lambda i: (0, 0)),
                pl.BlockSpec(w2.shape, lambda i: (0, 0)),
                pl.BlockSpec(b2.shape, lambda i: (0, 0)),
            ],
            out_specs=pl.BlockSpec((tile_n, out_pad_w), lambda i: (i, 0)),
        ),
        compiler_params=pltpu.CompilerParams(
            dimension_semantics=("parallel",)),
    )(x, w1, b1, w2, b2)

    weights = packed[:, :num_experts]
    global_weights = weights[:, :num_shared]
    local_weights = packed[:, num_experts:num_experts + top_k]
    local_indices = packed[:, num_experts + top_k:
                           num_experts + 2 * top_k].astype(jnp.int32)
    # TODO(synk): torch.topk returns int64 indices; int32 returned here.
    return global_weights, local_weights, local_indices, weights


# ----------------------------------------------------------------------------
# Deterministic init mimicking nn.Linear (uniform +/- 1/sqrt(fan_in))
# ----------------------------------------------------------------------------
def init_params(key, input_dim, num_experts):
    k1, k2, k3, k4 = jax.random.split(key, 4)

    def lin(kw, kb, fan_in, fan_out):
        bound = 1.0 / math.sqrt(fan_in)
        w = jax.random.uniform(kw, (fan_in, fan_out), jnp.float32, -bound, bound)
        b = jax.random.uniform(kb, (1, fan_out), jnp.float32, -bound, bound)
        return w, b

    w1, b1 = lin(k1, k2, input_dim, 2 * input_dim)
    w2, b2 = lin(k3, k4, 2 * input_dim, num_experts)
    return dict(w1=w1, b1=b1, w2=w2, b2=b2)


# ----------------------------------------------------------------------------
# Pure-JAX reference for correctness check (torch-f32 semantics)
# ----------------------------------------------------------------------------
def dynamic_router_ref(x, params, *, num_shared, top_k):
    h = jax.nn.gelu(x @ params['w1'] + params['b1'], approximate=False)
    weights = jax.nn.softmax(h @ params['w2'] + params['b2'], axis=-1)
    gw = weights[:, :num_shared]
    lv, li = jax.lax.top_k(weights[:, num_shared:], top_k)
    return gw, lv, li, weights


if __name__ == "__main__":
    N, E = 256, 32                       # tokens (e.g. batch*channels), input_dim
    num_experts, num_shared, top_k = 8, 2, 2

    key = jax.random.PRNGKey(0)
    kp, kx = jax.random.split(key)
    params = init_params(kp, E, num_experts)
    x = jax.random.normal(kx, (N, E), jnp.float32)

    rgw, rlv, rli, rw = dynamic_router_ref(x, params, num_shared=num_shared, top_k=top_k)

    # --- strict run: f32 MXU, bit-faithful-to-torch numerics --------------------
    gw, lv, li, w = dynamic_router_forward(
        x, params, num_experts=num_experts, num_shared=num_shared,
        top_k=top_k, matmul_dtype=jnp.float32)
    jax.block_until_ready((gw, lv, li, w))

    assert gw.shape == (N, num_shared)
    assert lv.shape == (N, top_k)
    assert li.shape == (N, top_k) and li.dtype == jnp.int32
    assert w.shape == (N, num_experts)

    assert jnp.allclose(w, rw, atol=2e-5, rtol=2e-5)
    assert jnp.allclose(gw, rgw, atol=2e-5, rtol=2e-5)
    assert jnp.allclose(lv, rlv, atol=2e-5, rtol=2e-5)
    gathered = jnp.take_along_axis(rw[:, num_shared:], li, axis=-1)
    assert jnp.allclose(gathered, lv, atol=2e-5, rtol=2e-5)   # tie-robust index check
    assert jnp.allclose(jnp.sum(w, axis=-1), jnp.ones((N,), jnp.float32), atol=1e-5)

    # --- production run: bf16 MXU operands (looser tolerance sign-off) ----------
    gw_b, lv_b, li_b, w_b = dynamic_router_forward(
        x, params, num_experts=num_experts, num_shared=num_shared, top_k=top_k)
    jax.block_until_ready((gw_b, lv_b, li_b, w_b))

    assert w_b.shape == (N, num_experts) and li_b.dtype == jnp.int32
    assert jnp.allclose(w_b, rw, atol=3e-2)
    assert jnp.allclose(jnp.sum(w_b, axis=-1), jnp.ones((N,), jnp.float32), atol=1e-5)
    gathered_b = jnp.take_along_axis(rw[:, num_shared:], li_b, axis=-1)
    assert jnp.allclose(gathered_b, lv_b, atol=3e-2)          # tie/flip-robust check

    print("KERNEL_OK")
</pallas_src>

<mosaic_0001>
module attributes {stable_mosaic.version = 11 : i64} {
  func.func @kernel(%arg0: i32, %arg1: memref<128x32xf32, #tpu.memory_space<vmem>>, %arg2: memref<32x64xf32, #tpu.memory_space<vmem>>, %arg3: memref<1x64xf32, #tpu.memory_space<vmem>>, %arg4: memref<64x8xf32, #tpu.memory_space<vmem>>, %arg5: memref<1x8xf32, #tpu.memory_space<vmem>>, %arg6: memref<128x128xf32, #tpu.memory_space<vmem>>) attributes {dimension_semantics = [#tpu.dimension_semantics<parallel>], iteration_bounds = array<i64: 2>, scalar_prefetch = 0 : i64, scratch_operands = 0 : i64, tpu.core_type = #tpu.core_type<tc>, window_params = [{transform_indices = @transform_0, window_bounds = array<i64: 128, 32>}, {pipeline_mode = #tpu.pipeline_mode<synchronous>, transform_indices = @transform_1, window_bounds = array<i64: 32, 64>}, {pipeline_mode = #tpu.pipeline_mode<synchronous>, transform_indices = @transform_2, window_bounds = array<i64: 1, 64>}, {pipeline_mode = #tpu.pipeline_mode<synchronous>, transform_indices = @transform_3, window_bounds = array<i64: 64, 8>}, {pipeline_mode = #tpu.pipeline_mode<synchronous>, transform_indices = @transform_4, window_bounds = array<i64: 1, 8>}, {transform_indices = @transform_5, window_bounds = array<i64: 128, 128>}]} {
    %c0 = arith.constant 0 : index
    %c0_0 = arith.constant 0 : index
    %0 = vector.load %arg1[%c0, %c0_0] : memref<128x32xf32, #tpu.memory_space<vmem>>, vector<128x32xf32>
    %c0_1 = arith.constant 0 : index
    %c0_2 = arith.constant 0 : index
    %1 = vector.load %arg2[%c0_1, %c0_2] : memref<32x64xf32, #tpu.memory_space<vmem>>, vector<32x64xf32>
    %cst = arith.constant dense<0.000000e+00> : vector<128x64xf32>
    %2 = tpu.matmul %0, %1, %cst {dimension_numbers = #tpu.dot_dimension_numbers<[1], [0], [0], [1], [0, 0, 1, 1], [], []>} : vector<128x32xf32>, vector<32x64xf32>, vector<128x64xf32> -> vector<128x64xf32>
    %c0_3 = arith.constant 0 : index
    %c0_4 = arith.constant 0 : index
    %3 = vector.load %arg3[%c0_3, %c0_4] : memref<1x64xf32, #tpu.memory_space<vmem>>, vector<1x64xf32>
    %4 = vector.broadcast %3 : vector<1x64xf32> to vector<128x64xf32>
    %5 = arith.addf %2, %4 : vector<128x64xf32>
    %cst_5 = arith.constant 5.000000e-01 : f32
    %6 = vector.broadcast %cst_5 : f32 to vector<128x64xf32>
    %7 = arith.mulf %6, %5 : vector<128x64xf32>
    %cst_6 = arith.constant 0.707106769 : f32
    %8 = vector.broadcast %cst_6 : f32 to vector<128x64xf32>
    %9 = arith.mulf %5, %8 : vector<128x64xf32>
    %cst_7 = arith.constant 0.000000e+00 : f32
    %10 = vector.broadcast %cst_7 : f32 to vector<128x64xf32>
    %11 = arith.cmpf oge, %9, %10 : vector<128x64xf32>
    %cst_8 = arith.constant 1.000000e+00 : f32
    %cst_9 = arith.constant -1.000000e+00 : f32
    %12 = vector.broadcast %cst_8 : f32 to vector<128x64xf32>
    %13 = vector.broadcast %cst_9 : f32 to vector<128x64xf32>
    %14 = arith.select %11, %12, %13 : vector<128x64xi1>, vector<128x64xf32>
    %15 = math.absf %9 : vector<128x64xf32>
    %cst_10 = arith.constant 0.327591091 : f32
    %16 = vector.broadcast %cst_10 : f32 to vector<128x64xf32>
    %17 = arith.mulf %16, %15 : vector<128x64xf32>
    %cst_11 = arith.constant 1.000000e+00 : f32
    %18 = vector.broadcast %cst_11 : f32 to vector<128x64xf32>
    %19 = arith.addf %18, %17 : vector<128x64xf32>
    %cst_12 = arith.constant 1.000000e+00 : f32
    %20 = vector.broadcast %cst_12 : f32 to vector<128x64xf32>
    %21 = arith.divf %20, %19 : vector<128x64xf32>
    %cst_13 = arith.constant 1.06140542 : f32
    %22 = vector.broadcast %cst_13 : f32 to vector<128x64xf32>
    %23 = arith.mulf %22, %21 : vector<128x64xf32>
    %cst_14 = arith.constant -1.45315206 : f32
    %24 = vector.broadcast %cst_14 : f32 to vector<128x64xf32>
    %25 = arith.addf %23, %24 : vector<128x64xf32>
    %26 = arith.mulf %25, %21 : vector<128x64xf32>
    %cst_15 = arith.constant 1.42141378 : f32
    %27 = vector.broadcast %cst_15 : f32 to vector<128x64xf32>
    %28 = arith.addf %26, %27 : vector<128x64xf32>
    %29 = arith.mulf %28, %21 : vector<128x64xf32>
    %cst_16 = arith.constant -0.284496725 : f32
    %30 = vector.broadcast %cst_16 : f32 to vector<128x64xf32>
    %31 = arith.addf %29, %30 : vector<128x64xf32>
    %32 = arith.mulf %31, %21 : vector<128x64xf32>
    %cst_17 = arith.constant 0.254829586 : f32
    %33 = vector.broadcast %cst_17 : f32 to vector<128x64xf32>
    %34 = arith.addf %32, %33 : vector<128x64xf32>
    %35 = arith.mulf %34, %21 : vector<128x64xf32>
    %cst_18 = arith.constant 0.000000e+00 : f32
    %36 = vector.broadcast %cst_18 : f32 to vector<128x64xf32>
    %37 = arith.subf %36, %15 : vector<128x64xf32>
    %38 = arith.mulf %37, %15 : vector<128x64xf32>
    %39 = math.exp %38 : vector<128x64xf32>
    %40 = arith.mulf %35, %39 : vector<128x64xf32>
    %cst_19 = arith.constant 1.000000e+00 : f32
    %41 = vector.broadcast %cst_19 : f32 to vector<128x64xf32>
    %42 = arith.subf %41, %40 : vector<128x64xf32>
    %43 = arith.mulf %14, %42 : vector<128x64xf32>
    %cst_20 = arith.constant 1.000000e+00 : f32
    %44 = vector.broadcast %cst_20 : f32 to vector<128x64xf32>
    %45 = arith.addf %44, %43 : vector<128x64xf32>
    %46 = arith.mulf %7, %45 : vector<128x64xf32>
    %c0_21 = arith.constant 0 : index
    %c0_22 = arith.constant 0 : index
    %47 = vector.load %arg4[%c0_21, %c0_22] : memref<64x8xf32, #tpu.memory_space<vmem>>, vector<64x8xf32>
    %cst_23 = arith.constant dense<0.000000e+00> : vector<128x8xf32>
    %48 = tpu.matmul %46, %47, %cst_23 {dimension_numbers = #tpu.dot_dimension_numbers<[1], [0], [0], [1], [0, 0, 1, 1], [], []>} : vector<128x64xf32>, vector<64x8xf32>, vector<128x8xf32> -> vector<128x8xf32>
    %c0_24 = arith.constant 0 : index
    %c0_25 = arith.constant 0 : index
    %49 = vector.load %arg5[%c0_24, %c0_25] : memref<1x8xf32, #tpu.memory_space<vmem>>, vector<1x8xf32>
    %50 = vector.broadcast %49 : vector<1x8xf32> to vector<128x8xf32>
    %51 = arith.addf %48, %50 : vector<128x8xf32>
    %cst_26 = arith.constant dense<0xFF800000> : vector<128xf32>
    %52 = vector.multi_reduction <maximumf>, %51, %cst_26 [1] : vector<128x8xf32> to vector<128xf32>
    %53 = vector.shape_cast %52 : vector<128xf32> to vector<128x1xf32>
    %54 = vector.broadcast %53 : vector<128x1xf32> to vector<128x8xf32>
    %55 = arith.subf %51, %54 : vector<128x8xf32>
    %56 = math.exp %55 : vector<128x8xf32>
    %cst_27 = arith.constant dense<0.000000e+00> : vector<128xf32>
    %57 = vector.multi_reduction <add>, %56, %cst_27 [1] : vector<128x8xf32> to vector<128xf32>
    %58 = vector.shape_cast %57 : vector<128xf32> to vector<128x1xf32>
    %59 = tpu.reciprocal %58 : vector<128x1xf32> -> vector<128x1xf32>
    %60 = vector.broadcast %59 : vector<128x1xf32> to vector<128x8xf32>
    %61 = arith.mulf %56, %60 : vector<128x8xf32>
    %62 = vector.extract_strided_slice %61 {offsets = [0, 2], sizes = [128, 6], strides = [1, 1]} : vector<128x8xf32> to vector<128x6xf32>
    %63 = tpu.iota {dimensions = array<i32: 1>} : vector<128x6xi32>
    %cst_28 = arith.constant dense<0xFF800000> : vector<128xf32>
    %64 = vector.multi_reduction <maximumf>, %62, %cst_28 [1] : vector<128x6xf32> to vector<128xf32>
    %65 = vector.shape_cast %64 : vector<128xf32> to vector<128x1xf32>
    %66 = vector.broadcast %65 : vector<128x1xf32> to vector<128x6xf32>
    %67 = arith.cmpf oeq, %62, %66 : vector<128x6xf32>
    %c6_i32 = arith.constant 6 : i32
    %68 = vector.broadcast %c6_i32 : i32 to vector<128x6xi32>
    %69 = arith.select %67, %63, %68 : vector<128x6xi1>, vector<128x6xi32>
    %cst_29 = arith.constant dense<2147483647> : vector<128xi32>
    %70 = vector.multi_reduction <minsi>, %69, %cst_29 [1] : vector<128x6xi32> to vector<128xi32>
    %71 = vector.shape_cast %70 : vector<128xi32> to vector<128x1xi32>
    %72 = arith.sitofp %71 : vector<128x1xi32> to vector<128x1xf32>
    %73 = vector.broadcast %71 : vector<128x1xi32> to vector<128x6xi32>
    %74 = arith.cmpi eq, %63, %73 : vector<128x6xi32>
    %cst_30 = arith.constant 0xFF800000 : f32
    %75 = vector.broadcast %cst_30 : f32 to vector<128x6xf32>
    %76 = arith.select %74, %75, %62 : vector<128x6xi1>, vector<128x6xf32>
    %cst_31 = arith.constant dense<0xFF800000> : vector<128xf32>
    %77 = vector.multi_reduction <maximumf>, %76, %cst_31 [1] : vector<128x6xf32> to vector<128xf32>
    %78 = vector.shape_cast %77 : vector<128xf32> to vector<128x1xf32>
    %79 = vector.broadcast %78 : vector<128x1xf32> to vector<128x6xf32>
    %80 = arith.cmpf oeq, %76, %79 : vector<128x6xf32>
    %c6_i32_32 = arith.constant 6 : i32
    %81 = vector.broadcast %c6_i32_32 : i32 to vector<128x6xi32>
    %82 = arith.select %80, %63, %81 : vector<128x6xi1>, vector<128x6xi32>
    %cst_33 = arith.constant dense<2147483647> : vector<128xi32>
    %83 = vector.multi_reduction <minsi>, %82, %cst_33 [1] : vector<128x6xi32> to vector<128xi32>
    %84 = vector.shape_cast %83 : vector<128xi32> to vector<128x1xi32>
    %85 = arith.sitofp %84 : vector<128x1xi32> to vector<128x1xf32>
    %cst_34 = arith.constant 0.000000e+00 : f32
    %86 = vector.broadcast %cst_34 : f32 to vector<128x116xf32>
    %87 = tpu.concatenate %61, %65, %78, %72, %85, %86 in 1 : vector<128x8xf32>, vector<128x1xf32>, vector<128x1xf32>, vector<128x1xf32>, vector<128x1xf32>, vector<128x116xf32> -> vector<128x128xf32>
    %c0_35 = arith.constant 0 : index
    %c0_36 = arith.constant 0 : index
    %88 = vector.load %arg6[%c0_35, %c0_36] : memref<128x128xf32, #tpu.memory_space<vmem>>, vector<128x128xf32>
    tpu.vector_store %arg6[%c0_35, %c0_36], %87 {strides = array<i32>} : memref<128x128xf32, #tpu.memory_space<vmem>>, vector<128x128xf32>,
    return
  }
  func.func @transform_0(%arg0: i32) -> (i32, i32) {
    %c0_i32 = arith.constant 0 : i32
    %c0_i32_0 = arith.constant 0 : i32
    return %arg0, %c0_i32 : i32, i32
  }
  func.func @transform_1(%arg0: i32) -> (i32, i32) {
    %c0_i32 = arith.constant 0 : i32
    %c0_i32_0 = arith.constant 0 : i32
    %c0_i32_1 = arith.constant 0 : i32
    return %c0_i32, %c0_i32_0 : i32, i32
  }
  func.func @transform_2(%arg0: i32) -> (i32, i32) {
    %c0_i32 = arith.constant 0 : i32
    %c0_i32_0 = arith.constant 0 : i32
    %c0_i32_1 = arith.constant 0 : i32
    return %c0_i32, %c0_i32_0 : i32, i32
  }
  func.func @transform_3(%arg0: i32) -> (i32, i32) {
    %c0_i32 = arith.constant 0 : i32
    %c0_i32_0 = arith.constant 0 : i32
    %c0_i32_1 = arith.constant 0 : i32
    return %c0_i32, %c0_i32_0 : i32, i32
  }
  func.func @transform_4(%arg0: i32) -> (i32, i32) {
    %c0_i32 = arith.constant 0 : i32
    %c0_i32_0 = arith.constant 0 : i32
    %c0_i32_1 = arith.constant 0 : i32
    return %c0_i32, %c0_i32_0 : i32, i32
  }
  func.func @transform_5(%arg0: i32) -> (i32, i32) {
    %c0_i32 = arith.constant 0 : i32
    %c0_i32_0 = arith.constant 0 : i32
    return %arg0, %c0_i32 : i32, i32
  }
}

</mosaic_0001>

<bundles_post_ra>
// kernel: tpu_custom_call.1
= control target key start
LH: loop header
LB: loop body
LE: loop exit
PB: predicated region body
PF: predicated region fallthrough
CT: control target
= control target key end

     0   :  { %10 = vsyncpa [#allocation3], 0  ;;  %s4971_s0 = inlined_call_operand.vmem [shape: f32[256,32], index: 0, kind: input, shape index: {}]   ;;  %s4972_s1 = inlined_call_operand.vmem [shape: f32[32,64], index: 1, kind: input, shape index: {}]   ;;  %s4973_s2 = inlined_call_operand.vmem [shape: f32[1,64], index: 2, kind: input, shape index: {}]   ;;  %s4974_s3 = inlined_call_operand.vmem [shape: f32[64,8], index: 3, kind: input, shape index: {}]   ;;  %s4975_s4 = inlined_call_operand.vmem [shape: f32[1,8], index: 4, kind: input, shape index: {}]   ;;  %s4976_s5 = inlined_call_operand.hbm [shape: f32[256,128], index: 5, kind: output, shape index: {}]  }
   0x1   :  { %12 = vsyncpa [#allocation3 + $0x1], 0  ;;  %s2797_s18 = smov 0   ;;  %s2799_s19 = smov 0  }
   0x2   :  { %s2801_s20 = smov 0   ;;  %s2803_s21 = smov 0  }
   0x3 LB: > { %s2818_s22 = sadd.s32 4294967295, %s2760_s21   ;;  %s2467_s23 = sadd.s32 4294967294, %s2760_s21   ;;  %s2760_s21 = sphi %s2803_s21, %s5177_s21   ;;  %s2756_s20 = sphi %s2801_s20, %s5176_s20   ;;  %s2752_s19 = sphi %s2799_s19, %s5175_s19   ;;  %s2748_s18 = sphi %s2797_s18, %s5174_s18  }
   0x4   : > { %s2822_s24 = sadd.s32 1, %s2760_s21   ;;  %s135_s25 = sadd.s32 1, %s2756_s20 }
   0x5   : > { %s132_s26 = ssub.s32 %s2760_s21, %s2822_s24  ;;  %p145_p0 = scmp.ne.s32.totalorder %s2756_s20, %s2752_s19 }
   0x6   : > { %p133_p1 = scmp.eq.s32.totalorder %s132_s26, 0  ;;  %p146_p2 = scmp.eq.s32.totalorder %s2818_s22, 1 }
   0x7   : > { %p151_p3 = scmp.ne.s32.totalorder %s2752_s19, %s2748_s18  ;;  %p152_p4 = scmp.eq.s32.totalorder %s2467_s23, 1 }
   0x8   : > { %s2833_s27 = scalar_select %p133_p1, %s2756_s20, %s135_s25  }
   0x9   : > { %p2835_p5 = por %p146_p2, %p145_p0  ;;  %p2839_p6 = por %p152_p4, %p151_p3 }
   0xa   : > { %p2470_p7 = scmp.ge.s32.totalorder %s2760_s21, 1  ;;  %p191_p8 = scmp.lt.s32.totalorder %s2760_s21, 3 }
   0xc   : > { %p192_p9 = pnand %p2470_p7, %p191_p8 }
   0xe   : > { %195 = sbr.rel (%p192_p9) target bundleno = 1667 (0x683), region = 40 }
  0x13   : > { %v245_v0 = vld [vmem:[%s4972_s1 + $0x18] sm:$0xff]  ;;  %v244_v1 = vld [vmem:[%s4972_s1 + $0x10] sm:$0xff]  ;;  %s2472_s9 = sshll.u32 %s2818_s22, 4  ;;  %v243_v2 = vld [vmem:[%s4972_s1 + $0x8] sm:$0xff]  ;;  %vm250_vm0 = vcmask 261120   ;;  %v4980_v63 = vmov -1.0  }
  0x14   : > { %311 = vmatpush.msra.mxu0 %v245_v0  ;;  %p220_p10 = scmp.lt.s32.totalorder %s2472_s9, 31  ;;  %2512 = vmatpush.msra.mxu3 %v245_v0  ;;  %v242_v3 = vld [vmem:[%s4972_s1] sm:$0xff]  ;;  %v1011_v29 = vld [vmem:[%s4974_s3 + $0x38] sm:$0xff]  ;;  %v1010_v32 = vld [vmem:[%s4974_s3 + $0x30] sm:$0xff]  ;;  %s2763_s26 = smov 2  }
  0x15   : > { %v2898_v20 = vld [vmem:[%s4973_s2] ss:$0 sm:$0xff]  ;;  %1073 = vmatpush.msra.mxu1 %v1011_v29  ;;  %2516 = vmatpush.msra.mxu2 %v1011_v29  ;;  %v1009_v35 = vld [vmem:[%s4974_s3 + $0x28] sm:$0xff]  ;;  %v1007_v46 = vld [vmem:[%s4974_s3 + $0x18] sm:$0xff]  ;;  %s2764_s7 = smov 126   ;;  %s216_s8 = sand.u32 1, %s2752_s19  }
  0x16   : > { %312 = vmatpush.msra.mxu0 %v244_v1  ;;  %s5179_s9 = smov (!%p220_p10, %s2472_s9), 31  ;;  %2513 = vmatpush.msra.mxu3 %v244_v1  ;;  %v1008_v38 = vld [vmem:[%s4974_s3 + $0x20] sm:$0xff]  ;;  %v1006_v49 = vld [vmem:[%s4974_s3 + $0x10] sm:$0xff]  ;;  %v1005_v56 = vld [vmem:[%s4974_s3 + $0x8] sm:$0xff]  ;;  %s2511_s11 = sshll.u32 %s2818_s22, 7 }
  0x17   : > { %s2473_s14 = sshll.u32 %s5179_s9, 3  ;;  %1074 = vmatpush.msra.mxu1 %v1010_v32  ;;  %2517 = vmatpush.msra.mxu2 %v1010_v32  ;;  %v1004_v60 = vld [vmem:[%s4974_s3] sm:$0xff]  ;;  %s2471_s9 = sshll.u32 %s216_s8, 7 }
  0x18   : > { %313 = vmatpush.msra.mxu0 %v243_v2  ;;  %2514 = vmatpush.msra.mxu3 %v243_v2  ;;  %s2861_s17 = scalar_lea.vmem %s4971_s0, %s2473_s14  ;;  %s4855_s10 = scalar_lea.vmem [#allocation2], %s2471_s9 }
  0x19   : > { %v226_v4 = vld [vmem:[%s2861_s17] sm:$0xff]  ;;  %v235_v5 = vld [vmem:[%s2861_s17 + $0x48] sm:$0xff]  ;;  %v236_v7 = vld [vmem:[%s2861_s17 + $0x50] sm:$0xff]  ;;  %1075 = vmatpush.msra.mxu1 %v1009_v35  ;;  %2518 = vmatpush.msra.mxu2 %v1009_v35  ;;  %s2401_s14 = scalar_lea.hbm %s4976_s5, %s2511_s11  ;;  %s2402_s15 = sshll.u32 %s4855_s10, 4  ;;  %s2403_s15 = int_to_ptr.vmem [resolvable:$true] %s2402_s15 }
  0x1a   : > { %314 = vmatpush.msra.mxu0 %v242_v3  ;;  %2515 = vmatpush.msra.mxu3 %v242_v3  ;;  %v227_v6 = vld [vmem:[%s2861_s17 + $0x8] sm:$0xff]  ;;  %v228_v8 = vld [vmem:[%s2861_s17 + $0x10] sm:$0xff]  ;;  %v237_v9 = vld [vmem:[%s2861_s17 + $0x58] sm:$0xff]  ;;  %s2404_s16 = sshll.u32 %s2401_s14, 4  ;;  %s2390_s22 = scalar_lea.sflag [#allocation3], %s216_s8  ;;  %s2405_s16 = int_to_ptr.hbm [resolvable:$true] %s2404_s16 }
  0x1b   : > { %2474 = vmatmul.msk.f32.vlgmr.msra.gmra.mxu0 %vm250_vm0, %v226_v4  ;;  %2483 = vmatmul.msk.f32.vlgmr.msra.gmra.mxu3 %vm250_vm0, %v235_v5  ;;  %v229_v10 = vld [vmem:[%s2861_s17 + $0x18] sm:$0xff]  ;;  %v238_v11 = vld [vmem:[%s2861_s17 + $0x60] sm:$0xff]  ;;  %v239_v13 = vld [vmem:[%s2861_s17 + $0x68] sm:$0xff]  ;;  %s2718_s30 = scalar_lea.hbm %s4976_s5, 256 }
  0x1c   : > { %v230_v12 = vld [vmem:[%s2861_s17 + $0x20] sm:$0xff]  ;;  %v231_v14 = vld [vmem:[%s2861_s17 + $0x28] sm:$0xff]  ;;  %v240_v15 = vld [vmem:[%s2861_s17 + $0x70] sm:$0xff]  ;;  %1076 = vmatpush.msra.mxu1 %v1008_v38  ;;  %2519 = vmatpush.msra.mxu2 %v1008_v38 }
  0x1d   : > { %v232_v16 = vld [vmem:[%s2861_s17 + $0x30] sm:$0xff]  ;;  %v241_v17 = vld [vmem:[%s2861_s17 + $0x78] sm:$0xff]  ;;  %v234_v19 = vld [vmem:[%s2861_s17 + $0x40] sm:$0xff] }
  0x1e   : > { %v233_v18 = vld [vmem:[%s2861_s17 + $0x38] sm:$0xff]  ;;  %1077 = vmatpush.msra.mxu1 %v1007_v46  ;;  %2520 = vmatpush.msra.mxu2 %v1007_v46  ;;  %s2712_s17 = sshra.s32 %s2405_s16, 4  ;;  %s2713_s17 = int_to_ptr.hbm [resolvable:$true] %s2712_s17 }
  0x1f   : > { %s2714_s23 = scalar_lea.hbm %s2713_s17, 128  ;;  %p2719_p0 = scmp.lt.s32.totalorder %s2713_s17, %s4976_s5 }
  0x20   : > { %1078 = vmatpush.msra.mxu1 %v1006_v49  ;;  %2521 = vmatpush.msra.mxu2 %v1006_v49  ;;  %p2715_p11 = scmp.ne.s32.totalorder %s2713_s17, %s2714_s23  ;;  %p2720_p1 = scmp.lt.s32.totalorder %s2718_s30, %s2714_s23 }
  0x22   : > { %1079 = vmatpush.msra.mxu1 %v1005_v56  ;;  %2522 = vmatpush.msra.mxu2 %v1005_v56  ;;  %p2716_p12 = pnand %p2715_p11, %p2835_p5  ;;  %p2721_p2 = por %p2720_p1, %p2719_p0 }
  0x23   : > { %2475 = vmatmul.msk.f32.gmra.mxu0 %vm250_vm0, %v227_v6  ;;  %2484 = vmatmul.msk.f32.gmra.mxu3 %vm250_vm0, %v236_v7 }
  0x24   : > { %1080 = vmatpush.msra.mxu1 %v1004_v60  ;;  %2523 = vmatpush.msra.mxu2 %v1004_v60  ;;  %p2717_p13 = pneg %p2716_p12 }
  0x26   : > { %p2722_p3 = pnand %p2721_p2, %p2717_p13 }
  0x2b   : > { %2476 = vmatmul.msk.f32.gmra.mxu0 %vm250_vm0, %v228_v8  ;;  %2485 = vmatmul.msk.f32.gmra.mxu3 %vm250_vm0, %v237_v9 }
  0x33   : > { %2477 = vmatmul.msk.f32.gmra.mxu0 %vm250_vm0, %v229_v10  ;;  %2486 = vmatmul.msk.f32.gmra.mxu3 %vm250_vm0, %v238_v11 }
  0x3b   : > { %2478 = vmatmul.msk.f32.gmra.mxu0 %vm250_vm0, %v230_v12  ;;  %2487 = vmatmul.msk.f32.gmra.mxu3 %vm250_vm0, %v239_v13 }
  0x43   : > { %2479 = vmatmul.msk.f32.gmra.mxu0 %vm250_vm0, %v231_v14  ;;  %2488 = vmatmul.msk.f32.gmra.mxu3 %vm250_vm0, %v240_v15 }
  0x4b   : > { %2480 = vmatmul.msk.f32.gmra.mxu0 %vm250_vm0, %v232_v16  ;;  %2489 = vmatmul.msk.f32.gmra.mxu3 %vm250_vm0, %v241_v17 }
  0x53   : > { %2481 = vmatmul.msk.f32.gmra.mxu0 %vm250_vm0, %v233_v18 }
  0x5b   : > { %2482 = vmatmul.msk.f32.gmra.mxu0 %vm250_vm0, %v234_v19 }
  0x98   : > { %v316_v21 = vpop.f32.mrf.mxu0 }
  0x99   : > { %v317_v22 = vadd.f32 %v2898_v20, %v316_v21 }
  0x9b   : > { %v380_v23 = vmul.f32 0.70710677, %v317_v22  ;;  %v2970_v62 = vmul.f32 0.5, %v317_v22 }
  0x9d   : > { %v428_v27 = vand.u32 2147483647, %v380_v23  ;;  %vm396_vm1 = vcmp.ge.f32.partialorder %v380_v23, 0.0 }
  0x9e   : > { %v343_v24 = vpop.f32.mrf.mxu3  ;;  %v2973_v0 = vsel %vm396_vm1, 1.0, %v4980_v63 }
  0x9f   : > { %v344_v26 = vadd.f32 %v2898_v20, %v343_v24  ;;  %v444_v31 = vmul.f32 0.3275911, %v428_v27  ;;  %v860_v43 = vsub.f32 0.0, %v428_v27 }
  0xa0   : > { %v319_v25 = vpop.f32.mrf.mxu0 }
  0xa1   : > { %v2903_v28 = vadd.f32 %v2898_v20, %v319_v25  ;;  %v2908_v30 = vmul.f32 0.70710677, %v344_v26  ;;  %v2925_v39 = vadd.f32 1.0, %v444_v31  ;;  %v876_v50 = vmul.f32 %v860_v43, %v428_v27 }
  0xa2   : > { %v2980_v6 = vmul.f32 0.5, %v344_v26 }
  0xa3   : > { %v2914_v33 = vmul.f32 0.70710677, %v2903_v28  ;;  %v2920_v37 = vand.u32 2147483647, %v2908_v30  ;;  %2570 = vrcp.f32 %v2925_v39  ;;  %v892_v1 = vmul.f32 1.442695, %v876_v50 }
  0xa4   : > { %5026 = vst [vmem:[#allocation7_spill] sm:$0xff] %v2980_v6  ;;  %vm405_vm2 = vcmp.ge.f32.partialorder %v2908_v30, 0.0  ;;  %v487_v10 = vand.u32 2147483648, %v2925_v39  ;;  %v2991_v11 = vmul.f32 0.5, %v2903_v28  ;;  %vm481_vm8 = vweird.f32 %v2925_v39 }
  0xa5   : > { %v429_v41 = vand.u32 2147483647, %v2914_v33  ;;  %v453_v45 = vmul.f32 0.3275911, %v2920_v37  ;;  %v869_v7 = vsub.f32 0.0, %v2920_v37  ;;  %vm397_vm3 = vcmp.ge.f32.partialorder %v2914_v33, 0.0 }
  0xa6   : > { %v346_v34 = vpop.f32.mrf.mxu3  ;;  %v2998_v15 = vsel %vm405_vm2, 1.0, %v4980_v63  ;;  %v3014_v27 = vsel %vm397_vm3, 1.0, %v4980_v63  ;;  %v3019_v29 = vor.u32 1.1754944e-38, %v487_v10 }
  0xa7   : > { %v2932_v42 = vadd.f32 %v2898_v20, %v346_v34  ;;  %v445_v47 = vmul.f32 0.3275911, %v429_v41  ;;  %v2949_v53 = vadd.f32 1.0, %v453_v45  ;;  %v861_v3 = vsub.f32 0.0, %v429_v41  ;;  %5028 = vst [vmem:[#allocation9_spill] sm:$0xff] %v2998_v15 }
  0xa8   : > { %v322_v36 = vpop.f32.mrf.mxu0  ;;  %v885_v19 = vmul.f32 %v869_v7, %v2920_v37 }
  0xa9   : > { %v2928_v40 = vadd.f32 %v2898_v20, %v322_v36  ;;  %5024 = vst [vmem:[#allocation5_spill] sm:$0xff] %v2932_v42  ;;  %v2943_v48 = vmul.f32 0.70710677, %v2932_v42  ;;  %v2963_v59 = vadd.f32 1.0, %v445_v47  ;;  %v2968_v61 = vpop.eup %2570  ;;  %2572 = vrcp.f32 %v2949_v53 }
  0xaa   : > { %v477_v9 = vmul.f32 %v2968_v61, %v2925_v39  ;;  %v877_v14 = vmul.f32 %v861_v3, %v429_v41  ;;  %v910_v38 = vmul.f32 1.442695, %v885_v19  ;;  %vm482_vm7 = vweird.f32 %v2968_v61 }
  0xab   : > { %v2935_v44 = vmul.f32 0.70710677, %v2928_v40  ;;  %v2952_v55 = vand.u32 2147483647, %v2943_v48  ;;  %2574 = vrcp.f32 %v2963_v59  ;;  %v3017_v28 = vmul.f32 0.5, %v2928_v40  ;;  %vm3185_vm11 = vmor %vm481_vm8, %vm482_vm7 }
  0xac   : > { %2576 = vpow2.f32 %v892_v1  ;;  %v478_v26 = vsub.f32 1.0, %v477_v9  ;;  %v894_v34 = vmul.f32 1.442695, %v877_v14  ;;  %vm406_vm5 = vcmp.ge.f32.partialorder %v2943_v48, 0.0 }
  0xad   : > { %v430_v51 = vand.u32 2147483647, %v2935_v44  ;;  %v454_v5 = vmul.f32 0.3275911, %v2952_v55  ;;  %vm398_vm4 = vcmp.ge.f32.partialorder %v2935_v44, 0.0  ;;  %v870_v46 = vsub.f32 0.0, %v2952_v55 }
  0xae   : > { %v349_v52 = vpop.f32.mrf.mxu3  ;;  %v3039_v43 = vmul.f32 %v2968_v61, %v478_v26  ;;  %v3068_v44 = vsel %vm406_vm5, 1.0, %v4980_v63  ;;  %vm496_vm13 = vweird.f32 %v2963_v59 }
  0xaf   : > { %v2961_v58 = vadd.f32 %v2898_v20, %v349_v52  ;;  %v446_v2 = vmul.f32 0.3275911, %v430_v51  ;;  %v862_v13 = vsub.f32 0.0, %v430_v51  ;;  %v3001_v17 = vadd.f32 1.0, %v454_v5  ;;  %v3011_v25 = vpop.eup %2572  ;;  %5031 = vst [vmem:[#allocation12_spill] sm:$0xff] %v3068_v44 }
  0xb0   : > { %v325_v54 = vpop.f32.mrf.mxu0  ;;  %v612_v37 = vmul.f32 %v3011_v25, %v2949_v53  ;;  %v3053_v52 = vsel %vm398_vm4, 1.0, %v4980_v63  ;;  %v886_v9 = vmul.f32 %v870_v46, %v2952_v55 }
  0xb1   : > { %v2958_v57 = vadd.f32 %v2898_v20, %v325_v54  ;;  %5025 = vst [vmem:[#allocation6_spill] sm:$0xff] %v2961_v58  ;;  %v2985_v8 = vmul.f32 0.70710677, %v2961_v58  ;;  %v2995_v12 = vadd.f32 1.0, %v446_v2  ;;  %v878_v30 = vmul.f32 %v862_v13, %v430_v51  ;;  %v3026_v33 = vpop.eup %2574 }
  0xb2   : > { %v3030_v36 = vpop.eup %2576  ;;  %v492_v49 = vmul.f32 %v3026_v33, %v2963_v59  ;;  %v613_v2 = vsub.f32 1.0, %v612_v37  ;;  %v912_v37 = vmul.f32 1.442695, %v886_v9  ;;  %vm497_vm15 = vweird.f32 %v3026_v33 }
  0xb3   : > { %v2977_v4 = vmul.f32 0.70710677, %v2958_v57  ;;  %5027 = vst [vmem:[#allocation8_spill] sm:$0xff] %v2985_v8  ;;  %v3008_v22 = vand.u32 2147483647, %v2985_v8  ;;  %2578 = vrcp.f32 %v2995_v12  ;;  %v3075_v14 = vmul.f32 0.5, %v2958_v57  ;;  %vm3298_vm2 = vmor %vm496_vm13, %vm497_vm15 }
  0xb4   : > { %2580 = vrcp.f32 %v3001_v17  ;;  %v896_v50 = vmul.f32 1.442695, %v878_v30  ;;  %v493_v13 = vsub.f32 1.0, %v492_v49  ;;  %v3086_v55 = vmul.f32 %v3011_v25, %v613_v2 }
  0xb5   : > { %v431_v16 = vand.u32 2147483647, %v2977_v4  ;;  %v455_v41 = vmul.f32 0.3275911, %v3008_v22  ;;  %2582 = vpow2.f32 %v894_v34  ;;  %vm399_vm6 = vcmp.ge.f32.partialorder %v2977_v4, 0.0 }
  0xb6   : > { %v352_v23 = vpop.f32.mrf.mxu3  ;;  %2584 = vpow2.f32 %v910_v38  ;;  %v871_v49 = vsub.f32 0.0, %v3008_v22  ;;  %v3117_v31 = vsel %vm399_vm6, 1.0, %v4980_v63  ;;  %vm511_vm0 = vweird.f32 %v2995_v12 }
  0xb7   : > { %v447_v35 = vmul.f32 0.3275911, %v431_v16  ;;  %v3044_v47 = vadd.f32 %v2898_v20, %v352_v23  ;;  %v863_v56 = vsub.f32 0.0, %v431_v16  ;;  %v3059_v3 = vadd.f32 1.0, %v455_v41 }
  0xb8   : > { %v328_v18 = vpop.f32.mrf.mxu0  ;;  %2586 = vpow2.f32 %v896_v50  ;;  %v887_v45 = vmul.f32 %v871_v49, %v3008_v22 }
  0xb9   : > { %v3005_v21 = vadd.f32 %v2898_v20, %v328_v18  ;;  %5029 = vst [vmem:[#allocation10_spill] sm:$0xff] %v3044_v47  ;;  %v3055_v54 = vadd.f32 1.0, %v447_v35  ;;  %v3057_v1 = vpop.eup %2578  ;;  %v3072_v10 = vmul.f32 0.70710677, %v3044_v47  ;;  %v879_v26 = vmul.f32 %v863_v56, %v431_v16 }
  0xba   : > { %v3064_v5 = vpop.eup %2580  ;;  %v507_v23 = vmul.f32 %v3057_v1, %v2995_v12  ;;  %vm512_vm5 = vweird.f32 %v3057_v1 }
  0xbb   : > { %v3024_v32 = vmul.f32 0.70710677, %v3005_v21  ;;  %5030 = vst [vmem:[#allocation11_spill] sm:$0xff] %v3064_v5  ;;  %2588 = vrcp.f32 %v3055_v54  ;;  %v627_v34 = vmul.f32 %v3064_v5, %v3001_v17  ;;  %v3092_v57 = vand.u32 2147483647, %v3072_v10  ;;  %v3094_v35 = vpop.eup %2582  ;;  %vm3335_vm8 = vmor %vm511_vm0, %vm512_vm5 }
  0xbc   : > { %5032 = vst [vmem:[#allocation13_spill] sm:$0xff] %v3072_v10  ;;  %2590 = vrcp.f32 %v3059_v3  ;;  %v3102_v41 = vpop.eup %2584  ;;  %v508_v56 = vsub.f32 1.0, %v507_v23  ;;  %vm526_vm3 = vweird.f32 %v3055_v54 }
  0xbd   : > { %v3035_v40 = vand.u32 2147483647, %v3024_v32  ;;  %5034 = vst [vmem:[#allocation15_spill] sm:$0xff] %v3102_v41  ;;  %v456_v50 = vmul.f32 0.3275911, %v3092_v57  ;;  %v628_v7 = vsub.f32 1.0, %v627_v34 }
  0xbe   : > { %v355_v19 = vpop.f32.mrf.mxu3  ;;  %vm400_vm9 = vcmp.ge.f32.partialorder %v3024_v32, 0.0 }
  0xbf   : > { %v448_v51 = vmul.f32 0.3275911, %v3035_v40  ;;  %v3099_v38 = vadd.f32 %v2898_v20, %v355_v19  ;;  %v864_v46 = vsub.f32 0.0, %v3035_v40  ;;  %v3112_v19 = vpop.eup %2586  ;;  %v3135_v32 = vadd.f32 1.0, %v456_v50 }
  0xc0   : > { %v331_v60 = vpop.f32.mrf.mxu0 }
  0xc1   : > { %v3062_v48 = vadd.f32 %v2898_v20, %v331_v60  ;;  %v3077_v18 = vadd.f32 1.0, %v448_v51  ;;  %5033 = vst [vmem:[#allocation14_spill] sm:$0xff] %v3099_v38  ;;  %v3110_v51 = vmul.f32 %v3026_v33, %v493_v13  ;;  %v898_v60 = vmul.f32 1.442695, %v879_v26  ;;  %v3121_v24 = vpop.eup %2588 }
  0xc2   : > { %v3124_v13 = vmul.f32 0.5, %v3005_v21  ;;  %v3128_v26 = vmul.f32 0.70710677, %v3099_v38  ;;  %v3130_v47 = vpop.eup %2590  ;;  %v880_v34 = vmul.f32 %v864_v46, %v3035_v40  ;;  %5038 = vst [vmem:[#allocation19_spill] sm:$0xff] %v3135_v32  ;;  %v3141_v21 = vsel %vm400_vm9, 1.0, %v4980_v63 }
  0xc3   : > { %v3083_v30 = vmul.f32 0.70710677, %v3062_v48  ;;  %2592 = vrcp.f32 %v3077_v18  ;;  %5037 = vst [vmem:[#allocation18_spill] sm:$0xff] %v3130_v47  ;;  %v5039_v38 = vand.u32 2147483647, %v2925_v39  ;;  %v522_v22 = vmul.f32 %v3121_v24, %v3055_v54 }
  0xc4   : > { %2594 = vpow2.f32 %v912_v37  ;;  %5035 = vst [vmem:[#allocation16_spill] sm:$0xff] %v3124_v13  ;;  %v3138_v37 = vmul.f32 %v3057_v1, %v508_v56  ;;  %v3156_v46 = vmul.f32 %v3064_v5, %v628_v7  ;;  %v642_v56 = vmul.f32 %v3130_v47, %v3059_v3 }
  0xc5   : > { %v433_v16 = vand.u32 2147483647, %v3083_v30  ;;  %5036 = vst [vmem:[#allocation17_spill] sm:$0xff] %v3128_v26  ;;  %2596 = vpow2.f32 %v898_v60  ;;  %vm3147_vm10 = vcmp.eq.f32.partialorder %v5039_v38, 8.507059e+37  ;;  %v3164_v38 = vand.u32 2147483647, %v3128_v26 }
  0xc6   : > { %v900_v4 = vmul.f32 1.442695, %v880_v34  ;;  %v914_v63 = vmul.f32 1.442695, %v887_v45  ;;  %2598 = vrcp.f32 %v3135_v32  ;;  %v872_v7 = vsub.f32 0.0, %v3092_v57 }
  0xc7   : > { %v449_v2 = vmul.f32 0.3275911, %v433_v16  ;;  %v865_v50 = vsub.f32 0.0, %v433_v16  ;;  %v457_v26 = vmul.f32 0.3275911, %v3164_v38  ;;  %v523_v6 = vsub.f32 1.0, %v522_v22 }
  0xc8   : > { %v334_v9 = vpop.f32.mrf.mxu0  ;;  %v643_v8 = vsub.f32 1.0, %v642_v56  ;;  %vm401_vm12 = vcmp.ge.f32.partialorder %v3083_v30, 0.0  ;;  %v888_v39 = vmul.f32 %v872_v7, %v3092_v57  ;;  %v5047_v30 = vmov -1.0  }
  0xc9   : > { %v335_v23 = vadd.f32 %v2898_v20, %v334_v9  ;;  %v3143_v9 = vadd.f32 1.0, %v449_v2  ;;  %v3151_v40 = vpop.eup %2592  ;;  %v480_v2 = vadd.f32 %v2968_v61, %v3039_v43  ;;  %v881_v45 = vmul.f32 %v865_v50, %v433_v16 }
  0xca   : > { %v3170_v10 = vpop.eup %2594  ;;  %v537_v49 = vmul.f32 %v3151_v40, %v3077_v18  ;;  %v3191_v13 = vadd.f32 1.0, %v457_v26  ;;  %v3207_v43 = vmul.f32 %v3121_v24, %v523_v6  ;;  %v3221_v57 = vsel %vm401_vm12, 1.0, %v5047_v30 }
  0xcb   : > { %v3161_v60 = vmul.f32 0.70710677, %v335_v23  ;;  %5042 = vst [vmem:[#allocation20_spill] sm:$0xff] %v3170_v10  ;;  %2600 = vrcp.f32 %v3143_v9  ;;  %v3189_v15 = vpop.eup %2596  ;;  %v484_v16 = vsel %vm3185_vm11, %v2968_v61, %v480_v2  ;;  %v902_v61 = vmul.f32 1.442695, %v881_v45 }
  0xcc   : > { %2602 = vpow2.f32 %v914_v63  ;;  %v538_v22 = vsub.f32 1.0, %v537_v49  ;;  %v3204_v26 = vpop.eup %2598  ;;  %v3213_v63 = vsel %vm3147_vm10, %v3019_v29, %v484_v16  ;;  %v3218_v10 = vmul.f32 %v3130_v47, %v643_v8  ;;  %5048 = vst [vmem:[#allocation23_spill] sm:$0xff] %v3221_v57 }
  0xcd   : > { %v434_v42 = vand.u32 2147483647, %v3161_v60  ;;  %2604 = vpow2.f32 %v900_v4  ;;  %v916_v2 = vmul.f32 1.442695, %v888_v39  ;;  %v3226_v58 = vmul.f32 0.5, %v335_v23 }
  0xce   : > { %2606 = vrcp.f32 %v3191_v13  ;;  %5046 = vst [vmem:[#allocation22_spill] sm:$0xff] %v3218_v10  ;;  %v3230_v29 = vmul.f32 %v3151_v40, %v538_v22  ;;  %v657_v8 = vmul.f32 %v3204_v26, %v3135_v32  ;;  %v716_v45 = vmul.f32 1.0614054, %v3213_v63 }
  0xcf   : > { %v450_v41 = vmul.f32 0.3275911, %v434_v42  ;;  %v866_v6 = vsub.f32 0.0, %v434_v42  ;;  %5049 = vst [vmem:[#allocation24_spill] sm:$0xff] %v3226_v58  ;;  %v873_v23 = vsub.f32 0.0, %v3164_v38  ;;  %vm402_vm14 = vcmp.ge.f32.partialorder %v3161_v60, 0.0 }
  0xd0   : > { %v337_v44 = vpop.f32.mrf.mxu0  ;;  %v732_v47 = vadd.f32 -1.4531521, %v716_v45  ;;  %v658_v32 = vsub.f32 1.0, %v657_v8  ;;  %v3261_v45 = vsel %vm402_vm14, 1.0, %v5047_v30  ;;  %vm541_vm6 = vweird.f32 %v3077_v18 }
  0xd1   : > { %v3179_v34 = vadd.f32 %v2898_v20, %v337_v44  ;;  %v3197_v44 = vmul.f32 0.5, %v3062_v48  ;;  %v3201_v50 = vadd.f32 1.0, %v450_v41  ;;  %v3215_v48 = vpop.eup %2600  ;;  %v358_v41 = vpop.f32.mrf.mxu3  ;;  %v882_v58 = vmul.f32 %v866_v6, %v434_v42 }
  0xd2   : > { %v3235_v16 = vpop.eup %2602  ;;  %v552_v4 = vmul.f32 %v3215_v48, %v3143_v9  ;;  %v3241_v39 = vadd.f32 %v2898_v20, %v358_v41  ;;  %v748_v42 = vmul.f32 %v732_v47, %v3213_v63  ;;  %vm1016_vm9 = vcmask 523264  }
  0xd3   : > { %5045 = vst [vmem:[#allocation21_spill] sm:$0xff] %v3197_v44  ;;  %v387_v56 = vmul.f32 0.70710677, %v3179_v34  ;;  %2608 = vrcp.f32 %v3201_v50  ;;  %v3243_v22 = vpop.eup %2604  ;;  %v904_v5 = vmul.f32 1.442695, %v882_v58  ;;  %vm527_vm11 = vweird.f32 %v3121_v24 }
  0xd4   : > { %5050 = vst [vmem:[#allocation25_spill] sm:$0xff] %v3235_v16  ;;  %2610 = vpow2.f32 %v902_v61  ;;  %v3246_v10 = vpop.eup %2606  ;;  %v3249_v57 = vmul.f32 0.70710677, %v3241_v39  ;;  %v3253_v61 = vadd.f32 %v3026_v33, %v3110_v51  ;;  %v553_v6 = vsub.f32 1.0, %v552_v4  ;;  %vm528_vm12 = vmor %vm526_vm3, %vm527_vm11 }
  0xd5   : > { %v435_v7 = vand.u32 2147483647, %v387_v56  ;;  %5051 = vst [vmem:[#allocation26_spill] sm:$0xff] %v3241_v39  ;;  %2612 = vpow2.f32 %v916_v2  ;;  %v3264_v39 = vmul.f32 %v873_v23, %v3164_v38  ;;  %v672_v2 = vmul.f32 %v3246_v10, %v3191_v13 }
  0xd6   : > { %5052 = vst [vmem:[#allocation27_spill] sm:$0xff] %v3249_v57  ;;  %v3267_v51 = vand.u32 2147483647, %v3249_v57  ;;  %vm403_vm1 = vcmp.ge.f32.partialorder %v387_v56, 0.0  ;;  %v764_v23 = vadd.f32 1.4214138, %v748_v42  ;;  %v3282_v57 = vmul.f32 %v3204_v26, %v658_v32 }
  0xd7   : > { %v867_v44 = vsub.f32 0.0, %v435_v7  ;;  %v451_v16 = vmul.f32 0.3275911, %v435_v7  ;;  %5053 = vst [vmem:[#allocation28_spill] sm:$0xff] %v3264_v39  ;;  %2614 = vpow2.f32 %v904_v5  ;;  %vm556_vm13 = vweird.f32 %v3143_v9 }
  0xd8   : > { %v340_v49 = vpop.f32.mrf.mxu0  ;;  %5054 = vst [vmem:[#allocation29_spill] sm:$0xff] %v3267_v51  ;;  %vm542_vm15 = vweird.f32 %v3151_v40  ;;  %vm571_vm3 = vweird.f32 %v3201_v50 }
  0xd9   : > { %v3256_v41 = vpop.eup %2608  ;;  %v341_v60 = vadd.f32 %v2898_v20, %v340_v49  ;;  %v883_v47 = vmul.f32 %v867_v44, %v435_v7  ;;  %v3277_v49 = vmul.f32 0.5, %v3179_v34  ;;  %v3279_v38 = vadd.f32 1.0, %v451_v16  ;;  %vm3386_vm0 = vmor %vm541_vm6, %vm542_vm15 }
  0xda   : > { %v3272_v8 = vpop.eup %2610  ;;  %v567_v4 = vmul.f32 %v3256_v41, %v3201_v50  ;;  %v3287_v44 = vmul.f32 %v3215_v48, %v553_v6  ;;  %v3290_v7 = vsel %vm403_vm1, 1.0, %v5047_v30  ;;  %v780_v34 = vmul.f32 %v764_v23, %v3213_v63 }
  0xdb   : > { %5055 = vst [vmem:[#allocation30_spill] sm:$0xff] %v3277_v49  ;;  %v388_v56 = vmul.f32 0.70710677, %v341_v60  ;;  %v458_v16 = vmul.f32 0.3275911, %v3267_v51  ;;  %v3302_v42 = vpop.eup %2612  ;;  %v673_v6 = vsub.f32 1.0, %v672_v2  ;;  %v499_v23 = vsel %vm3298_vm2, %v3026_v33, %v3253_v61 }
  0xdc   : > { %5056 = vst [vmem:[#allocation31_spill] sm:$0xff] %v3290_v7  ;;  %v906_v39 = vmul.f32 1.442695, %v883_v47  ;;  %v568_v58 = vsub.f32 1.0, %v567_v4  ;;  %2616 = vrcp.f32 %v3279_v38  ;;  %v796_v51 = vadd.f32 -0.28449672, %v780_v34 }
  0xdd   : > { %5059 = vst [vmem:[#allocation32_spill] sm:$0xff] %v3302_v42  ;;  %v500_v49 = vand.u32 2147483647, %v2963_v59  ;;  %vm404_vm4 = vcmp.ge.f32.partialorder %v388_v56, 0.0  ;;  %v436_v7 = vand.u32 2147483647, %v388_v56  ;;  %v510_v42 = vadd.f32 %v3057_v1, %v3138_v37 }
  0xde   : > { %v812_v5 = vmul.f32 %v796_v51, %v3213_v63  ;;  %v3315_v2 = vadd.f32 1.0, %v458_v16  ;;  %v3317_v47 = vmul.f32 0.5, %v341_v60  ;;  %v5061_v33 = vand.u32 2147483648, %v2963_v59  ;;  %v3339_v16 = vpop.eup %2614 }
  0xdf   : > { %v3323_v4 = vmul.f32 %v3246_v10, %v673_v6  ;;  %2618 = vpow2.f32 %v906_v39  ;;  %v515_v37 = vand.u32 2147483647, %v2995_v12  ;;  %v3328_v34 = vmul.f32 %v3256_v41, %v568_v58 }
  0xe0   : > { %5060 = vst [vmem:[#allocation33_spill] sm:$0xff] %v3317_v47  ;;  %v503_v61 = vor.u32 1.1754944e-38, %v5061_v33  ;;  %v828_v51 = vadd.f32 0.2548296, %v812_v5  ;;  %v3331_v60 = vsel %vm404_vm4, 1.0, %v5047_v30  ;;  %vm501_vm7 = vcmp.eq.f32.partialorder %v500_v49, 8.507059e+37 }
  0xe1   : > { %5062 = vst [vmem:[#allocation34_spill] sm:$0xff] %v3331_v60  ;;  %v452_v32 = vmul.f32 0.3275911, %v436_v7  ;;  %v868_v39 = vsub.f32 0.0, %v436_v7  ;;  %v514_v58 = vsel %vm3335_vm8, %v3057_v1, %v510_v42  ;;  %2620 = vrcp.f32 %v3315_v2 }
  0xe2   : > { %v3341_v6 = vsel %vm501_vm7, %v503_v61, %v499_v23  ;;  %v3346_v5 = vpop.eup %2616  ;;  %v844_v49 = vmul.f32 %v828_v51, %v3213_v63  ;;  %v5065_v56 = vand.u32 2147483648, %v2995_v12  ;;  %vm516_vm10 = vcmp.eq.f32.partialorder %v515_v37, 8.507059e+37 }
  0xe3   : > { %v717_v33 = vmul.f32 1.0614054, %v3341_v6  ;;  %v525_v23 = vadd.f32 %v3121_v24, %v3207_v43  ;;  %v530_v1 = vand.u32 2147483647, %v3055_v54  ;;  %v582_v43 = vmul.f32 %v3346_v5, %v3279_v38 }
  0xe4   : > { %v518_v30 = vor.u32 1.1754944e-38, %v5065_v56  ;;  %v924_v42 = vmul.f32 %v3030_v36, %v844_v49  ;;  %v5066_v36 = vand.u32 2147483648, %v3055_v54  ;;  %v884_v54 = vmul.f32 %v868_v39, %v436_v7 }
  0xe5   : > { %v733_v61 = vadd.f32 -1.4531521, %v717_v33  ;;  %v3363_v12 = vpop.eup %2618  ;;  %v529_v37 = vsel %vm528_vm12, %v3121_v24, %v525_v23  ;;  %vm531_vm14 = vcmp.eq.f32.partialorder %v530_v1, 8.507059e+37  ;;  %v3375_v33 = vadd.f32 1.0, %v452_v32  ;;  %v361_v1 = vpop.f32.mrf.mxu3 }
  0xe6   : > { %v3359_v51 = vsel %vm516_vm10, %v518_v30, %v514_v58  ;;  %v533_v59 = vor.u32 1.1754944e-38, %v5066_v36  ;;  %v940_v49 = vsub.f32 1.0, %v924_v42  ;;  %v540_v58 = vadd.f32 %v3151_v40, %v3230_v29 }
  0xe7   : > { %v718_v56 = vmul.f32 1.0614054, %v3359_v51  ;;  %v749_v30 = vmul.f32 %v733_v61, %v3341_v6  ;;  %v3380_v60 = vpop.eup %2620  ;;  %v583_v29 = vsub.f32 1.0, %v582_v43  ;;  %2622 = vrcp.f32 %v3375_v33 }
  0xe8   : > { %v3377_v47 = vsel %vm531_vm14, %v533_v59, %v529_v37  ;;  %v956_v24 = vmul.f32 %v940_v49, %v2973_v0  ;;  %v544_v61 = vsel %vm3386_vm0, %v3151_v40, %v540_v58  ;;  %v5069_v37 = vand.u32 2147483648, %v3077_v18 }
  0xe9   : > { %v734_v63 = vadd.f32 -1.4531521, %v718_v56  ;;  %v765_v23 = vadd.f32 1.4214138, %v749_v30  ;;  %v719_v42 = vmul.f32 1.0614054, %v3377_v47  ;;  %vm557_vm2 = vweird.f32 %v3215_v48 }
  0xea   : > { %v545_v56 = vand.u32 2147483647, %v3077_v18  ;;  %v972_v0 = vadd.f32 1.0, %v956_v24  ;;  %v548_v36 = vor.u32 1.1754944e-38, %v5069_v37  ;;  %v560_v18 = vand.u32 2147483647, %v3143_v9  ;;  %vm3415_vm4 = vmor %vm556_vm13, %vm557_vm2 }
  0xeb   : > { %v750_v32 = vmul.f32 %v734_v63, %v3359_v51  ;;  %v781_v7 = vmul.f32 %v765_v23, %v3341_v6  ;;  %v735_v39 = vadd.f32 -1.4531521, %v719_v42  ;;  %v555_v63 = vadd.f32 %v3215_v48, %v3287_v44 }
  0xec   : > { %vm546_vm1 = vcmp.eq.f32.partialorder %v545_v56, 8.507059e+37  ;;  %v988_v43 = vmul.f32 %v972_v0, %v2970_v62  ;;  %v607_v44 = vand.u32 2147483648, %v3375_v33  ;;  %v908_v62 = vmul.f32 1.442695, %v884_v54 }
  0xed   : > { %v766_v59 = vadd.f32 1.4214138, %v750_v32  ;;  %v797_v49 = vadd.f32 -0.28449672, %v781_v7  ;;  %v751_v40 = vmul.f32 %v735_v39, %v3377_v47  ;;  %v3403_v30 = vsel %vm546_vm1, %v548_v36, %v544_v61 }
  0xee   : > { %v720_v24 = vmul.f32 1.0614054, %v3403_v30  ;;  %2490 = vmatmul.msk.f32.vlgmr.msra.gmra.mxu1 %vm1016_vm9, %v988_v43  ;;  %v3420_v56 = vadd.f32 %v2898_v20, %v361_v1  ;;  %v559_v7 = vsel %vm3415_vm4, %v3215_v48, %v555_v63  ;;  %v584_v54 = vmul.f32 %v3346_v5, %v583_v29  ;;  %v3429_v43 = vpop.eup %2622 }
  0xef   : > { %v782_v58 = vmul.f32 %v766_v59, %v3359_v51  ;;  %v813_v23 = vmul.f32 %v797_v49, %v3341_v6  ;;  %v767_v42 = vadd.f32 1.4214138, %v751_v40  ;;  %v5072_v36 = vand.u32 2147483648, %v3143_v9 }
  0xf0   : > { %v736_v0 = vadd.f32 -1.4531521, %v720_v24  ;;  %v3433_v20 = vmul.f32 0.70710677, %v3420_v56  ;;  %vm561_vm5 = vcmp.eq.f32.partialorder %v560_v18, 8.507059e+37  ;;  %2624 = vpow2.f32 %v908_v62 }
  0xf1   : > { %v798_v61 = vadd.f32 -0.28449672, %v782_v58  ;;  %v829_v39 = vadd.f32 0.2548296, %v813_v23  ;;  %v783_v37 = vmul.f32 %v767_v42, %v3377_v47  ;;  %v563_v59 = vor.u32 1.1754944e-38, %v5072_v36 }
  0xf2   : > { %v752_v40 = vmul.f32 %v736_v0, %v3403_v30  ;;  %v687_v9 = vmul.f32 %v3380_v60, %v3315_v2  ;;  %v3442_v24 = vand.u32 2147483647, %v3433_v20  ;;  %vm572_vm6 = vweird.f32 %v3256_v41 }
  0xf3   : > { %v814_v49 = vmul.f32 %v798_v61, %v3359_v51  ;;  %v845_v48 = vmul.f32 %v829_v39, %v3341_v6  ;;  %v799_v29 = vadd.f32 -0.28449672, %v783_v37  ;;  %v3437_v63 = vsel %vm561_vm5, %v563_v59, %v559_v7  ;;  %vm3464_vm8 = vmor %vm571_vm3, %vm572_vm6 }
  0xf4   : > { %v768_v18 = vadd.f32 1.4214138, %v752_v40  ;;  %v570_v6 = vadd.f32 %v3256_v41, %v3328_v34  ;;  %vm586_vm7 = vweird.f32 %v3279_v38  ;;  %v597_v62 = vmul.f32 %v3429_v43, %v3375_v33 }
  0xf5   : > { %v830_v58 = vadd.f32 0.2548296, %v814_v49  ;;  %v925_v23 = vmul.f32 %v3094_v35, %v845_v48  ;;  %v815_v42 = vmul.f32 %v799_v29, %v3377_v47  ;;  %v459_v32 = vmul.f32 0.3275911, %v3442_v24 }
  0xf6   : > { %v721_v61 = vmul.f32 1.0614054, %v3437_v63  ;;  %v784_v35 = vmul.f32 %v768_v18, %v3403_v30  ;;  %v575_v39 = vand.u32 2147483647, %v3201_v50  ;;  %v688_v37 = vsub.f32 1.0, %v687_v9  ;;  %v3468_v49 = vpop.eup %2624 }
  0xf7   : > { %v846_v1 = vmul.f32 %v830_v58, %v3359_v51  ;;  %v941_v0 = vsub.f32 1.0, %v925_v23  ;;  %v831_v7 = vadd.f32 0.2548296, %v815_v42  ;;  %v3458_v36 = vadd.f32 1.0, %v459_v32 }
  0xf8   : > { %v737_v59 = vadd.f32 -1.4531521, %v721_v61  ;;  %v800_v29 = vadd.f32 -0.28449672, %v784_v35  ;;  %v598_v9 = vsub.f32 1.0, %v597_v62  ;;  %v5075_v23 = vand.u32 2147483648, %v3201_v50 }
  0xf9   : > { %v926_v34 = vmul.f32 %v3112_v19, %v846_v1  ;;  %v957_v40 = vmul.f32 %v941_v0, %v3014_v27  ;;  %v847_v48 = vmul.f32 %v831_v7, %v3377_v47  ;;  %v574_v19 = vsel %vm3464_vm8, %v3256_v41, %v570_v6 }
  0xfa   : > { %2626 = vrcp.f32 %v3458_v36  ;;  %v578_v42 = vor.u32 1.1754944e-38, %v5075_v23  ;;  %v816_v32 = vmul.f32 %v800_v29, %v3403_v30  ;;  %vm576_vm10 = vcmp.eq.f32.partialorder %v575_v39, 8.507059e+37 }
  0xfb   : > { %v942_v58 = vsub.f32 1.0, %v926_v34  ;;  %v973_v18 = vadd.f32 1.0, %v957_v40  ;;  %v927_v1 = vmul.f32 %v3189_v15, %v847_v48  ;;  %vm601_vm11 = vweird.f32 %v3375_v33 }
  0xfc   : > { %v753_v47 = vmul.f32 %v737_v59, %v3437_v63  ;;  %v3483_v41 = vsel %vm576_vm10, %v578_v42, %v574_v19  ;;  %v585_v6 = vadd.f32 %v3346_v5, %v584_v54  ;;  %v3487_v62 = vmul.f32 %v3380_v60, %v688_v37 }
  0xfd   : > { %v958_v27 = vmul.f32 %v942_v58, %v3053_v52  ;;  %v989_v50 = vmul.f32 %v973_v18, %v2991_v11  ;;  %v943_v61 = vsub.f32 1.0, %v927_v1  ;;  %v832_v15 = vadd.f32 0.2548296, %v816_v32 }
  0xfe   : > { %vm616_vm12 = vweird.f32 %v2949_v53  ;;  %v599_v0 = vmul.f32 %v3429_v43, %v598_v9  ;;  %v769_v7 = vadd.f32 1.4214138, %v753_v47  ;;  %v722_v52 = vmul.f32 1.0614054, %v3483_v41 }
  0xff   : > { %vm587_vm13 = vweird.f32 %v3346_v5  ;;  %2491 = vmatmul.msk.f32.gmra.mxu1 %vm1016_vm9, %v989_v50  ;;  %v974_v35 = vadd.f32 1.0, %v958_v27  ;;  %v959_v54 = vmul.f32 %v943_v61, %v3117_v31  ;;  %v848_v39 = vmul.f32 %v832_v15, %v3403_v30 }
 0x100   : > { %vm588_vm14 = vmor %vm586_vm7, %vm587_vm13  ;;  %v590_v11 = vand.u32 2147483647, %v3279_v38  ;;  %v3500_v37 = vpop.eup %2626  ;;  %v785_v34 = vmul.f32 %v769_v7, %v3437_v63  ;;  %v738_v59 = vadd.f32 -1.4531521, %v722_v52  ;;  %v5076_v40 = vand.u32 2147483648, %v3279_v38 }
 0x101   : > { %v589_v51 = vsel %vm588_vm14, %v3346_v5, %v585_v6  ;;  %vm631_vm15 = vweird.f32 %v3001_v17  ;;  %v975_v31 = vadd.f32 1.0, %v959_v54  ;;  %v712_v30 = vand.u32 2147483648, %v3458_v36 }
 0x102   : > { %v593_v48 = vor.u32 1.1754944e-38, %v5076_v40  ;;  %v928_v29 = vmul.f32 %v3243_v22, %v848_v39  ;;  %vm591_vm0 = vcmp.eq.f32.partialorder %v590_v11, 8.507059e+37  ;;  %v801_v19 = vadd.f32 -0.28449672, %v785_v34  ;;  %v5078_v40 = vld [vmem:[#allocation11_spill] sm:$0xff] }
 0x103   : > { %v754_v9 = vmul.f32 %v738_v59, %v3483_v41  ;;  %vm602_vm1 = vweird.f32 %v3429_v43  ;;  %v990_v5 = vmul.f32 %v974_v35, %v3017_v28  ;;  %v3516_v38 = vmul.f32 %v3500_v37, %v3458_v36 }
 0x104   : > { %v3510_v58 = vsel %vm591_vm0, %v593_v48, %v589_v51  ;;  %v944_v23 = vsub.f32 1.0, %v928_v29  ;;  %v817_v18 = vmul.f32 %v801_v19, %v3437_v63  ;;  %v600_v1 = vadd.f32 %v3429_v43, %v599_v0  ;;  %vm603_vm2 = vmor %vm601_vm11, %vm602_vm1 }
 0x105   : > { %v723_v42 = vmul.f32 1.0614054, %v3510_v58  ;;  %v770_v22 = vadd.f32 1.4214138, %v754_v9  ;;  %v605_v32 = vand.u32 2147483647, %v3375_v33  ;;  %v991_v27 = vmul.f32 %v975_v31, %v3075_v14 }
 0x106   : > { %v960_v47 = vmul.f32 %v944_v23, %v3141_v21  ;;  %v608_v28 = vor.u32 1.1754944e-38, %v607_v44  ;;  %v833_v50 = vadd.f32 0.2548296, %v817_v18  ;;  %v604_v15 = vsel %vm603_vm2, %v3429_v43, %v600_v1  ;;  %v5081_v23 = vld [vmem:[#allocation19_spill] sm:$0xff] }
 0x107   : > { %v739_v6 = vadd.f32 -1.4531521, %v723_v42  ;;  %v786_v61 = vmul.f32 %v770_v22, %v3483_v41  ;;  %vm606_vm3 = vcmp.eq.f32.partialorder %v605_v32, 8.507059e+37  ;;  %vm646_vm4 = vweird.f32 %v3059_v3  ;;  %2492 = vmatmul.msk.f32.gmra.mxu1 %vm1016_vm9, %v990_v5  ;;  %v5082_v42 = vld [vmem:[#allocation23_spill] sm:$0xff] }
 0x108   : > { %v703_v14 = vsub.f32 1.0, %v3516_v38  ;;  %v3534_v0 = vsel %vm606_vm3, %v608_v28, %v604_v15  ;;  %v615_v33 = vadd.f32 %v3011_v25, %v3086_v55  ;;  %v849_v44 = vmul.f32 %v833_v50, %v3437_v63  ;;  %v5084_v50 = vld [vmem:[#allocation22_spill] sm:$0xff] }
 0x109   : > { %v755_v21 = vmul.f32 %v739_v6, %v3510_v58  ;;  %v802_v7 = vadd.f32 -0.28449672, %v786_v61  ;;  %v724_v52 = vmul.f32 1.0614054, %v3534_v0  ;;  %vm617_vm5 = vweird.f32 %v3011_v25  ;;  %v5085_v61 = vld [vmem:[#allocation18_spill] sm:$0xff] }
 0x10a   : > { %v976_v43 = vadd.f32 1.0, %v960_v47  ;;  %vm618_vm6 = vmor %vm616_vm12, %vm617_vm5  ;;  %v620_v54 = vand.u32 2147483647, %v2949_v53  ;;  %v5077_v39 = vand.u32 2147483648, %v2949_v53  ;;  %v929_v34 = vmul.f32 %v3272_v8, %v849_v44 }
 0x10b   : > { %v771_v35 = vadd.f32 1.4214138, %v755_v21  ;;  %v818_v55 = vmul.f32 %v802_v7, %v3483_v41  ;;  %v740_v63 = vadd.f32 -1.4531521, %v724_v52  ;;  %v619_v59 = vsel %vm618_vm6, %v3011_v25, %v615_v33  ;;  %v5086_v21 = vld [vmem:[#allocation16_spill] sm:$0xff] }
 0x10c   : > { %v623_v11 = vor.u32 1.1754944e-38, %v5077_v39  ;;  %vm621_vm7 = vcmp.eq.f32.partialorder %v620_v54, 8.507059e+37  ;;  %v630_v48 = vadd.f32 %v5078_v40, %v3156_v46  ;;  %vm632_vm8 = vweird.f32 %v5078_v40 }
 0x10d   : > { %v787_v51 = vmul.f32 %v771_v35, %v3510_v58  ;;  %v945_v31 = vsub.f32 1.0, %v929_v34  ;;  %v834_v29 = vadd.f32 0.2548296, %v818_v55  ;;  %v756_v53 = vmul.f32 %v740_v63, %v3534_v0  ;;  %vm3558_vm10 = vmor %vm631_vm15, %vm632_vm8 }
 0x10e   : > { %v3554_v19 = vsel %vm621_vm7, %v623_v11, %v619_v59  ;;  %v634_v46 = vsel %vm3558_vm10, %v5078_v40, %v630_v48  ;;  %v635_v5 = vand.u32 2147483647, %v3001_v17  ;;  %vm661_vm11 = vweird.f32 %v5081_v23 }
 0x10f   : > { %v803_v25 = vadd.f32 -0.28449672, %v787_v51  ;;  %v725_v9 = vmul.f32 1.0614054, %v3554_v19  ;;  %v961_v18 = vmul.f32 %v945_v31, %v5082_v42  ;;  %v850_v22 = vmul.f32 %v834_v29, %v3483_v41  ;;  %2493 = vmatmul.msk.f32.gmra.mxu1 %vm1016_vm9, %v991_v27 }
 0x110   : > { %v772_v1 = vadd.f32 1.4214138, %v756_v53  ;;  %v5083_v32 = vand.u32 2147483648, %v3001_v17  ;;  %vm636_vm12 = vcmp.eq.f32.partialorder %v635_v5, 8.507059e+37  ;;  %v645_v15 = vadd.f32 %v5085_v61, %v5084_v50 }
 0x111   : > { %v819_v6 = vmul.f32 %v803_v25, %v3510_v58  ;;  %v741_v28 = vadd.f32 -1.4531521, %v725_v9  ;;  %v992_v33 = vmul.f32 %v976_v43, %v5086_v21  ;;  %v930_v44 = vmul.f32 %v3339_v16, %v850_v22 }
 0x112   : > { %v638_v47 = vor.u32 1.1754944e-38, %v5083_v32  ;;  %v788_v7 = vmul.f32 %v772_v1, %v3534_v0  ;;  %vm647_vm13 = vweird.f32 %v5085_v61  ;;  %v977_v35 = vadd.f32 1.0, %v961_v18 }
 0x113   : > { %v835_v52 = vadd.f32 0.2548296, %v819_v6  ;;  %v757_v17 = vmul.f32 %v741_v28, %v3554_v19  ;;  %v946_v54 = vsub.f32 1.0, %v930_v44  ;;  %vm3586_vm14 = vmor %vm646_vm4, %vm647_vm13  ;;  %v650_v16 = vand.u32 2147483647, %v3059_v3 }
 0x114   : > { %v3579_v41 = vsel %vm636_vm12, %v638_v47, %v634_v46  ;;  %v804_v39 = vadd.f32 -0.28449672, %v788_v7  ;;  %v649_v63 = vsel %vm3586_vm14, %v5085_v61, %v645_v15  ;;  %vm676_vm15 = vweird.f32 %v3191_v13  ;;  %v5092_v61 = vld [vmem:[#allocation24_spill] sm:$0xff] }
 0x115   : > { %v726_v27 = vmul.f32 1.0614054, %v3579_v41  ;;  %v851_v11 = vmul.f32 %v835_v52, %v3510_v58  ;;  %v773_v34 = vadd.f32 1.4214138, %v757_v17  ;;  %v962_v59 = vmul.f32 %v946_v54, %v3261_v45  ;;  %v5094_v54 = vld [vmem:[#allocation34_spill] sm:$0xff] }
 0x116   : > { %v820_v51 = vmul.f32 %v804_v39, %v3534_v0  ;;  %v1515_v40 = vlaneseq  ;;  %vm651_vm0 = vcmp.eq.f32.partialorder %v650_v16, 8.507059e+37  ;;  %v5089_v29 = vand.u32 2147483648, %v3059_v3  ;;  %v5090_v3 = vld [vmem:[#allocation21_spill] sm:$0xff] }
 0x117   : > { %v742_v55 = vadd.f32 -1.4531521, %v726_v27  ;;  %v931_v48 = vmul.f32 %v3363_v12, %v851_v11  ;;  %v789_v31 = vmul.f32 %v773_v34, %v3554_v19  ;;  %v3606_v8 = vmul.f32 %v3500_v37, %v703_v14  ;;  %2494 = vmatmul.msk.f32.gmra.mxu1 %vm1016_vm9, %v992_v33 }
 0x118   : > { %v653_v53 = vor.u32 1.1754944e-38, %v5089_v29  ;;  %v836_v25 = vadd.f32 0.2548296, %v820_v51  ;;  %v3608_v45 = vand.u32 127, %v1515_v40  ;;  %v660_v9 = vadd.f32 %v3204_v26, %v3282_v57 }
 0x119   : > { %v758_v58 = vmul.f32 %v742_v55, %v3579_v41  ;;  %v978_v12 = vadd.f32 1.0, %v962_v59  ;;  %v805_v46 = vadd.f32 -0.28449672, %v789_v31  ;;  %v993_v18 = vmul.f32 %v977_v35, %v5090_v3  ;;  %v5100_v3 = vld [vmem:[#allocation20_spill] sm:$0xff] }
 0x11a   : > { %v3613_v42 = vsel %vm651_vm0, %v653_v53, %v649_v63  ;;  %v852_v38 = vmul.f32 %v836_v25, %v3534_v0  ;;  %1582 = vrot.lane.b32.xlu0 %v3608_v45, %s2763_s26  ;;  %vm662_vm1 = vweird.f32 %v3204_v26  ;;  %vm691_vm2 = vweird.f32 %v3315_v2  ;;  %v5098_v25 = vld [vmem:[#allocation33_spill] sm:$0xff] }
 0x11b   : > { %v774_v5 = vadd.f32 1.4214138, %v758_v58  ;;  %v727_v14 = vmul.f32 1.0614054, %v3613_v42  ;;  %v947_v57 = vsub.f32 1.0, %v931_v48  ;;  %v821_v22 = vmul.f32 %v805_v46, %v3554_v19  ;;  %vm663_vm3 = vmor %vm661_vm11, %vm662_vm1  ;;  %v5097_v48 = vld [vmem:[#allocation8_spill] sm:$0xff] }
 0x11c   : > { %v665_v32 = vand.u32 2147483647, %v5081_v23  ;;  %v932_v0 = vmul.f32 %v3468_v49, %v852_v38  ;;  %v664_v6 = vsel %vm663_vm3, %v3204_v26, %v660_v9  ;;  %v5091_v28 = vand.u32 2147483648, %v5081_v23  ;;  %v5093_v49 = vld [vmem:[#allocation31_spill] sm:$0xff] }
 0x11d   : > { %v790_v1 = vmul.f32 %v774_v5, %v3579_v41  ;;  %v743_v47 = vadd.f32 -1.4531521, %v727_v14  ;;  %v994_v15 = vmul.f32 %v978_v12, %v5092_v61  ;;  %v837_v21 = vadd.f32 0.2548296, %v821_v22  ;;  %v5099_v5 = vld [vmem:[#allocation9_spill] sm:$0xff] }
 0x11e   : > { %v668_v50 = vor.u32 1.1754944e-38, %v5091_v28  ;;  %vm666_vm4 = vcmp.eq.f32.partialorder %v665_v32, 8.507059e+37  ;;  %v948_v44 = vsub.f32 1.0, %v932_v0  ;;  %v675_v17 = vadd.f32 %v3246_v10, %v3323_v4  ;;  %v5095_v4 = vld [vmem:[#allocation15_spill] sm:$0xff] }
 0x11f   : > { %v806_v33 = vadd.f32 -0.28449672, %v790_v1  ;;  %v759_v7 = vmul.f32 %v743_v47, %v3613_v42  ;;  %v963_v27 = vmul.f32 %v947_v57, %v5093_v49  ;;  %v853_v26 = vmul.f32 %v837_v21, %v3554_v19  ;;  %2495 = vmatmul.msk.f32.gmra.mxu1 %vm1016_vm9, %v993_v18 }
 0x120   : > { %v3632_v52 = vsel %vm666_vm4, %v668_v50, %v664_v6  ;;  %vm706_vm5 = vweird.f32 %v3458_v36  ;;  %v964_v39 = vmul.f32 %v948_v44, %v5094_v54  ;;  %vm677_vm6 = vweird.f32 %v3246_v10 }
 0x121   : > { %v822_v23 = vmul.f32 %v806_v33, %v3579_v41  ;;  %v728_v35 = vmul.f32 1.0614054, %v3632_v52  ;;  %v775_v43 = vadd.f32 1.4214138, %v759_v7  ;;  %v680_v16 = vand.u32 2147483647, %v3191_v13  ;;  %vm678_vm7 = vmor %vm676_vm15, %vm677_vm6 }
 0x122   : > { %v933_v11 = vmul.f32 %v5095_v4, %v853_v26  ;;  %v5096_v19 = vand.u32 2147483648, %v3191_v13  ;;  %v980_v59 = vadd.f32 1.0, %v964_v39  ;;  %v679_v40 = vsel %vm678_vm7, %v3246_v10, %v675_v17  ;;  %v5105_v26 = vld [vmem:[#allocation12_spill] sm:$0xff]  ;;  %v5109_v4 = vld [vmem:[#allocation5_spill] sm:$0xff] }
 0x123   : > { %v838_v34 = vadd.f32 0.2548296, %v822_v23  ;;  %v744_v55 = vadd.f32 -1.4531521, %v728_v35  ;;  %v791_v51 = vmul.f32 %v775_v43, %v3613_v42  ;;  %vm681_vm8 = vcmp.eq.f32.partialorder %v680_v16, 8.507059e+37 }
 0x124   : > { %v683_v63 = vor.u32 1.1754944e-38, %v5096_v19  ;;  %vm407_vm10 = vcmp.ge.f32.partialorder %v5097_v48, 0.0  ;;  %v949_v31 = vsub.f32 1.0, %v933_v11  ;;  %v996_v9 = vmul.f32 %v980_v59, %v5098_v25 }
 0x125   : > { %v854_v58 = vmul.f32 %v838_v34, %v3579_v41  ;;  %v760_v29 = vmul.f32 %v744_v55, %v3632_v52  ;;  %v807_v12 = vadd.f32 -0.28449672, %v791_v51  ;;  %v690_v46 = vadd.f32 %v3380_v60, %v3487_v62  ;;  %v5110_v34 = vld [vmem:[#allocation30_spill] sm:$0xff] }
 0x126   : > { %v3655_v53 = vsel %vm681_vm8, %v683_v63, %v679_v40  ;;  %v965_v10 = vmul.f32 %v949_v31, %v5099_v5  ;;  %vm692_vm11 = vweird.f32 %v3380_v60  ;;  %2498 = vmatmul.msk.f32.vlgmr.msra.gmra.mxu2 %vm1016_vm9, %v996_v9  ;;  %v695_v62 = vand.u32 2147483647, %v3315_v2  ;;  %v5112_v40 = vld [vmem:[#allocation28_spill] sm:$0xff] }
 0x127   : > { %v729_v13 = vmul.f32 1.0614054, %v3655_v53  ;;  %v934_v18 = vmul.f32 %v5100_v3, %v854_v58  ;;  %v776_v38 = vadd.f32 1.4214138, %v760_v29  ;;  %v823_v41 = vmul.f32 %v807_v12, %v3613_v42  ;;  %vm3668_vm12 = vmor %vm691_vm2, %vm692_vm11  ;;  %2496 = vmatmul.msk.f32.gmra.mxu1 %vm1016_vm9, %v994_v15  ;;  %v5113_v58 = vld [vmem:[#allocation29_spill] sm:$0xff] }
 0x128   : > { %v5103_v22 = vand.u32 2147483648, %v3315_v2  ;;  %v981_v32 = vadd.f32 1.0, %v965_v10  ;;  %v694_v6 = vsel %vm3668_vm12, %v3380_v60, %v690_v46  ;;  %vm696_vm13 = vcmp.eq.f32.partialorder %v695_v62, 8.507059e+37  ;;  %v5104_v2 = vld [vmem:[#allocation7_spill] sm:$0xff] }
 0x129   : > { %v745_v14 = vadd.f32 -1.4531521, %v729_v13  ;;  %v950_v0 = vsub.f32 1.0, %v934_v18  ;;  %v792_v47 = vmul.f32 %v776_v38, %v3632_v52  ;;  %v839_v28 = vadd.f32 0.2548296, %v823_v41  ;;  %v5114_v41 = vld [vmem:[#allocation32_spill] sm:$0xff] }
 0x12a   : > { %v698_v1 = vor.u32 1.1754944e-38, %v5103_v22  ;;  %v705_v61 = vadd.f32 %v3500_v37, %v3606_v8  ;;  %v979_v21 = vadd.f32 1.0, %v963_v27  ;;  %v997_v33 = vmul.f32 %v981_v32, %v5104_v2  ;;  %v5108_v27 = vld [vmem:[#allocation25_spill] sm:$0xff]  ;;  %v5118_v8 = vld [vmem:[#allocation10_spill] sm:$0xff] }
 0x12b   : > { %v761_v50 = vmul.f32 %v745_v14, %v3655_v53  ;;  %v808_v44 = vadd.f32 -0.28449672, %v792_v47  ;;  %v855_v17 = vmul.f32 %v839_v28, %v3613_v42  ;;  %vm707_vm14 = vweird.f32 %v3500_v37 }
 0x12c   : > { %v3684_v7 = vsel %vm696_vm13, %v698_v1, %v694_v6  ;;  %v966_v23 = vmul.f32 %v950_v0, %v5105_v26  ;;  %vm3693_vm15 = vmor %vm706_vm5, %vm707_vm14  ;;  %v710_v15 = vand.u32 2147483647, %v3458_v36  ;;  %v713_v42 = vor.u32 1.1754944e-38, %v712_v30  ;;  %v5116_v1 = vld [vmem:[#allocation6_spill] sm:$0xff] }
 0x12d   : > { %v777_v49 = vadd.f32 1.4214138, %v761_v50  ;;  %v730_v60 = vmul.f32 1.0614054, %v3684_v7  ;;  %v824_v35 = vmul.f32 %v808_v44, %v3632_v52  ;;  %v935_v54 = vmul.f32 %v5108_v27, %v855_v17 }
 0x12e   : > { %v709_v16 = vsel %vm3693_vm15, %v3500_v37, %v705_v61  ;;  %v374_v11 = vmul.f32 0.5, %v5109_v4  ;;  %v995_v55 = vmul.f32 %v979_v21, %v5110_v34  ;;  %vm711_vm0 = vcmp.eq.f32.partialorder %v710_v15, 8.507059e+37  ;;  %2499 = vmatmul.msk.f32.gmra.mxu2 %vm1016_vm9, %v997_v33 }
 0x12f   : > { %v793_v39 = vmul.f32 %v777_v49, %v3655_v53  ;;  %v746_v43 = vadd.f32 -1.4531521, %v730_v60  ;;  %v840_v19 = vadd.f32 0.2548296, %v824_v35  ;;  %v5111_v63 = vmov -1.0   ;;  %v5117_v35 = vld [vmem:[#allocation17_spill] sm:$0xff] }
 0x130   : > { %v423_v36 = vsel %vm407_vm10, 1.0, %v5111_v63  ;;  %v714_v51 = vsel %vm711_vm0, %v713_v42, %v709_v16  ;;  %v918_v31 = vmul.f32 1.442695, %v5112_v40  ;;  %v874_v37 = vsub.f32 0.0, %v5113_v58  ;;  %2497 = vmatmul.msk.f32.gmra.mxu1 %vm1016_vm9, %v995_v55  ;;  %v5119_v55 = vld [vmem:[#allocation27_spill] sm:$0xff] }
 0x131   : > { %v809_v30 = vadd.f32 -0.28449672, %v793_v39  ;;  %v762_v59 = vmul.f32 %v746_v43, %v3684_v7  ;;  %v951_v29 = vsub.f32 1.0, %v935_v54  ;;  %v731_v25 = vmul.f32 1.0614054, %v714_v51 }
 0x132   : > { %v982_v9 = vadd.f32 1.0, %v966_v23  ;;  %v856_v12 = vmul.f32 %v840_v19, %v3632_v52  ;;  %2628 = vpow2.f32 %v918_v31  ;;  %v890_v10 = vmul.f32 %v874_v37, %v5113_v58  ;;  %v5115_v52 = vld [vmem:[#allocation13_spill] sm:$0xff]  ;;  %v5120_v19 = vld [vmem:[#allocation14_spill] sm:$0xff] }
 0x133   : > { %v825_v13 = vmul.f32 %v809_v30, %v3655_v53  ;;  %v778_v46 = vadd.f32 1.4214138, %v762_v59  ;;  %v747_v48 = vadd.f32 -1.4531521, %v731_v25  ;;  %v967_v3 = vmul.f32 %v951_v29, %v423_v36  ;;  %v5121_v25 = vld [vmem:[#allocation26_spill] sm:$0xff] }
 0x134   : > { %v998_v38 = vmul.f32 %v982_v9, %v374_v11  ;;  %v936_v14 = vmul.f32 %v5114_v41, %v856_v12  ;;  %vm408_vm1 = vcmp.ge.f32.partialorder %v5115_v52, 0.0  ;;  %v375_v32 = vmul.f32 0.5, %v5116_v1 }
 0x135   : > { %v794_v5 = vmul.f32 %v778_v46, %v3684_v7  ;;  %v763_v18 = vmul.f32 %v747_v48, %v714_v51  ;;  %v841_v57 = vadd.f32 0.2548296, %v825_v13  ;;  %v920_v0 = vmul.f32 1.442695, %v890_v10 }
 0x136   : > { %2500 = vmatmul.msk.f32.gmra.mxu2 %vm1016_vm9, %v998_v38  ;;  %v875_v47 = vsub.f32 0.0, %v3442_v24  ;;  %v983_v6 = vadd.f32 1.0, %v967_v3  ;;  %v952_v28 = vsub.f32 1.0, %v936_v14  ;;  %v424_v33 = vsel %vm408_vm1, 1.0, %v5111_v63 }
 0x137   : > { %v810_v62 = vadd.f32 -0.28449672, %v794_v5  ;;  %v779_v22 = vadd.f32 1.4214138, %v763_v18  ;;  %v857_v50 = vmul.f32 %v841_v57, %v3655_v53  ;;  %2630 = vpow2.f32 %v920_v0 }
 0x138   : > { %v2629_v2 = vpop.eup %2628  ;;  %v891_v44 = vmul.f32 %v875_v47, %v3442_v24  ;;  %v999_v17 = vmul.f32 %v983_v6, %v375_v32  ;;  %v968_v49 = vmul.f32 %v952_v28, %v424_v33  ;;  %vm409_vm2 = vcmp.ge.f32.partialorder %v5117_v35, 0.0 }
 0x139   : > { %v826_v61 = vmul.f32 %v810_v62, %v3684_v7  ;;  %v795_v21 = vmul.f32 %v779_v22, %v714_v51  ;;  %v937_v60 = vmul.f32 %v2629_v2, %v857_v50  ;;  %v376_v53 = vmul.f32 0.5, %v5118_v8 }
 0x13a   : > { %v922_v15 = vmul.f32 1.442695, %v891_v44  ;;  %v984_v42 = vadd.f32 1.0, %v968_v49  ;;  %v425_v24 = vsel %vm409_vm2, 1.0, %v5111_v63  ;;  %vm410_vm3 = vcmp.ge.f32.partialorder %v5119_v55, 0.0 }
 0x13b   : > { %v842_v26 = vadd.f32 0.2548296, %v826_v61  ;;  %v811_v23 = vadd.f32 -0.28449672, %v795_v21  ;;  %v953_v27 = vsub.f32 1.0, %v937_v60  ;;  %v377_v36 = vmul.f32 0.5, %v5120_v19 }
 0x13c   : > { %2632 = vpow2.f32 %v922_v15  ;;  %v1000_v16 = vmul.f32 %v984_v42, %v376_v53  ;;  %vm411_vm4 = vcmp.ge.f32.partialorder %v3433_v20, 0.0  ;;  %v378_v9 = vmul.f32 0.5, %v5121_v25  ;;  %v3747_v20 = vld [vmem:[%s4975_s4] ss:$0 sm:$0xff] }
 0x13d   : > { %v858_v54 = vmul.f32 %v842_v26, %v3684_v7  ;;  %v827_v39 = vmul.f32 %v811_v23, %v714_v51  ;;  %v2631_v43 = vpop.eup %2630  ;;  %v969_v4 = vmul.f32 %v953_v27, %v425_v24  ;;  %v426_v7 = vsel %vm410_vm3, 1.0, %v5111_v63 }
 0x13e   : > { %2501 = vmatmul.msk.f32.gmra.mxu2 %vm1016_vm9, %v999_v17  ;;  %v427_v46 = vsel %vm411_vm4, 1.0, %v5111_v63  ;;  %vm1130_vm5 = vcmask 64512   ;;  %vm1517_vm10 = vcmask 64528  }
 0x13f   : > { %v938_v11 = vmul.f32 %v2631_v43, %v858_v54  ;;  %v843_v34 = vadd.f32 0.2548296, %v827_v39  ;;  %v985_v30 = vadd.f32 1.0, %v969_v4 }
 0x141   : > { %v954_v59 = vsub.f32 1.0, %v938_v11  ;;  %v859_v40 = vmul.f32 %v843_v34, %v714_v51  ;;  %v1001_v58 = vmul.f32 %v985_v30, %v377_v36  ;;  %v379_v51 = vmul.f32 0.5, %v3420_v56 }
 0x142   : > { %v2633_v31 = vpop.eup %2632 }
 0x143   : > { %v970_v37 = vmul.f32 %v954_v59, %v426_v7  ;;  %v939_v29 = vmul.f32 %v2633_v31, %v859_v40 }
 0x145   : > { %v986_v12 = vadd.f32 1.0, %v970_v37  ;;  %v955_v13 = vsub.f32 1.0, %v939_v29 }
 0x146   : > { %2502 = vmatmul.msk.f32.gmra.mxu2 %vm1016_vm9, %v1000_v16 }
 0x147   : > { %v1002_v48 = vmul.f32 %v986_v12, %v378_v9  ;;  %v971_v5 = vmul.f32 %v955_v13, %v427_v46 }
 0x149   : > { %v987_v10 = vadd.f32 1.0, %v971_v5 }
 0x14b   : > { %v1003_v3 = vmul.f32 %v987_v10, %v379_v51 }
 0x14e   : > { %2503 = vmatmul.msk.f32.gmra.mxu2 %vm1016_vm9, %v1001_v58 }
 0x156   : > { %2504 = vmatmul.msk.f32.gmra.mxu2 %vm1016_vm9, %v1002_v48 }
 0x15e   : > { %2505 = vmatmul.msk.f32.gmra.mxu2 %vm1016_vm9, %v1003_v3 }
 0x16b   : > { %v1082_v18 = vpop.f32.mrf.mxu1 }
 0x16c   : > { %v3750_v38 = vadd.f32 %v3747_v20, %v1082_v18 }
 0x16e   : > { %v1131_v63 = vsel %vm1130_vm5, %v3750_v38, -inf }
 0x16f   : > { %1132 = vmax.xlane.f32.xlu0 %v1131_v63 }
 0x17c   : > { %v1085_v41 = vpop.f32.mrf.mxu1 }
 0x17d   : > { %v3755_v56 = vadd.f32 %v3747_v20, %v1085_v41 }
 0x17f   : > { %v1134_v14 = vsel %vm1130_vm5, %v3755_v56, -inf }
 0x180   : > { %1135 = vmax.xlane.f32.xlu0 %v1134_v14 }
 0x184   : > { %v1088_v57 = vpop.f32.mrf.mxu1 }
 0x185   : > { %v3760_v62 = vadd.f32 %v3747_v20, %v1088_v57 }
 0x187   : > { %v1137_v22 = vsel %vm1130_vm5, %v3760_v62, -inf }
 0x188   : > { %1138 = vmax.xlane.f32.xlu1 %v1137_v22 }
 0x18c   : > { %v1091_v52 = vpop.f32.mrf.mxu1  ;;  %v3824_v59 = vpop.permute.xlu0 %1582 }
 0x18d   : > { %v3765_v1 = vadd.f32 %v3747_v20, %v1091_v52 }
 0x18f   : > { %v1140_v32 = vsel %vm1130_vm5, %v3765_v1, -inf }
 0x190   : > { %1141 = vmax.xlane.f32.xlu1 %v1140_v32 }
 0x194   : > { %v1094_v0 = vpop.f32.mrf.mxu1 }
 0x195   : > { %v3770_v47 = vadd.f32 %v3747_v20, %v1094_v0 }
 0x197   : > { %v1143_v6 = vsel %vm1130_vm5, %v3770_v47, -inf }
 0x198   : > { %1144 = vmax.xlane.f32.xlu2 %v1143_v6 }
 0x19c   : > { %v1097_v28 = vpop.f32.mrf.mxu1 }
 0x19d   : > { %v3775_v50 = vadd.f32 %v3747_v20, %v1097_v28 }
 0x19f   : > { %v1146_v61 = vsel %vm1130_vm5, %v3775_v50, -inf }
 0x1a0   : > { %1147 = vmax.xlane.f32.xlu2 %v1146_v61 }
 0x1a4   : > { %v1100_v21 = vpop.f32.mrf.mxu1 }
 0x1a5   : > { %v3780_v2 = vadd.f32 %v3747_v20, %v1100_v21 }
 0x1a7   : > { %v1149_v33 = vsel %vm1130_vm5, %v3780_v2, -inf }
 0x1a8   : > { %1150 = vmax.xlane.f32.xlu0 %v1149_v33 }
 0x1a9   : > { %v1106_v44 = vpop.f32.mrf.mxu2 }
 0x1aa   : > { %v3785_v17 = vadd.f32 %v3747_v20, %v1106_v44 }
 0x1ac   : > { %v1155_v49 = vsel %vm1130_vm5, %v3785_v17, -inf }
 0x1ad   : > { %1156 = vmax.xlane.f32.xlu2 %v1155_v49  ;;  %v1103_v60 = vpop.f32.mrf.mxu1 }
 0x1ae   : > { %v3790_v26 = vadd.f32 %v3747_v20, %v1103_v60 }
 0x1b0   : > { %v1152_v23 = vsel %vm1130_vm5, %v3790_v26, -inf }
 0x1b1   : > { %v1109_v35 = vpop.f32.mrf.mxu2  ;;  %1153 = vmax.xlane.f32.xlu1 %v1152_v23 }
 0x1b2   : > { %v3795_v8 = vadd.f32 %v3747_v20, %v1109_v35 }
 0x1b4   : > { %v1158_v53 = vsel %vm1130_vm5, %v3795_v8, -inf }
 0x1b5   : > { %1159 = vmax.xlane.f32.xlu0 %v1158_v53 }
 0x1b9   : > { %v1112_v15 = vpop.f32.mrf.mxu2 }
 0x1ba   : > { %v3800_v42 = vadd.f32 %v3747_v20, %v1112_v15 }
 0x1bc   : > { %v1161_v27 = vsel %vm1130_vm5, %v3800_v42, -inf }
 0x1bd   : > { %1162 = vmax.xlane.f32.xlu1 %v1161_v27 }
 0x1c1   : > { %v1115_v54 = vpop.f32.mrf.mxu2 }
 0x1c2   : > { %v3805_v39 = vadd.f32 %v3747_v20, %v1115_v54 }
 0x1c4   : > { %v1164_v43 = vsel %vm1130_vm5, %v3805_v39, -inf }
 0x1c5   : > { %1165 = vmax.xlane.f32.xlu2 %v1164_v43 }
 0x1c9   : > { %v1118_v24 = vpop.f32.mrf.mxu2 }
 0x1ca   : > { %v3810_v16 = vadd.f32 %v3747_v20, %v1118_v24 }
 0x1cc   : > { %v1167_v4 = vsel %vm1130_vm5, %v3810_v16, -inf }
 0x1cd   : > { %1168 = vmax.xlane.f32.xlu0 %v1167_v4 }
 0x1d1   : > { %v1121_v11 = vpop.f32.mrf.mxu2 }
 0x1d2   : > { %v3815_v34 = vadd.f32 %v3747_v20, %v1121_v11 }
 0x1d4   : > { %v1170_v55 = vsel %vm1130_vm5, %v3815_v34, -inf }
 0x1d5   : > { %1171 = vmax.xlane.f32.xlu1 %v1170_v55 }
 0x1d9   : > { %v1124_v19 = vpop.f32.mrf.mxu2 }
 0x1da   : > { %v3820_v36 = vadd.f32 %v3747_v20, %v1124_v19 }
 0x1dc   : > { %v1173_v30 = vsel %vm1130_vm5, %v3820_v36, -inf }
 0x1dd   : > { %1174 = vmax.xlane.f32.xlu2 %v1173_v30 }
 0x1e1   : > { %v1127_v40 = vpop.f32.mrf.mxu2 }
 0x1e2   : > { %v3827_v31 = vadd.f32 %v3747_v20, %v1127_v40  ;;  %v1133_v58 = vpop.xlane.xlu0 %1132 }
 0x1e3   : > { %v1179_v37 = vsub.f32 %v3750_v38, %v1133_v58 }
 0x1e4   : > { %v1176_v7 = vsel %vm1130_vm5, %v3827_v31, -inf }
 0x1e5   : > { %1177 = vmax.xlane.f32.xlu0 %v1176_v7  ;;  %v1195_v29 = vmul.f32 1.442695, %v1179_v37 }
 0x1e7   : > { %2634 = vpow2.f32 %v1195_v29 }
 0x1ed   : > { %v3832_v25 = vpop.eup %2634 }
 0x1ee   : > { %v1227_v9 = vsel %vm1130_vm5, %v3832_v25, 0.0 }
 0x1ef   : > { %1228 = vadd.xlane.f32.xlu1 %v1227_v9 }
 0x1f3   : > { %v1136_v12 = vpop.xlane.xlu0 %1135 }
 0x1f4   : > { %v1180_v13 = vsub.f32 %v3755_v56, %v1136_v12 }
 0x1f6   : > { %v1197_v46 = vmul.f32 1.442695, %v1180_v13 }
 0x1f8   : > { %2636 = vpow2.f32 %v1197_v46 }
 0x1fb   : > { %v1139_v48 = vpop.xlane.xlu1 %1138 }
 0x1fc   : > { %v1181_v5 = vsub.f32 %v3760_v62, %v1139_v48 }
 0x1fe   : > { %v3838_v51 = vpop.eup %2636  ;;  %v1199_v10 = vmul.f32 1.442695, %v1181_v5 }
 0x1ff   : > { %v1230_v3 = vsel %vm1130_vm5, %v3838_v51, 0.0 }
 0x200   : > { %2638 = vpow2.f32 %v1199_v10  ;;  %1231 = vadd.xlane.f32.xlu2 %v1230_v3 }
 0x203   : > { %v1142_v20 = vpop.xlane.xlu1 %1141 }
 0x204   : > { %v1182_v18 = vsub.f32 %v3765_v1, %v1142_v20 }
 0x206   : > { %v3843_v38 = vpop.eup %2638  ;;  %v1201_v63 = vmul.f32 1.442695, %v1182_v18 }
 0x207   : > { %v1233_v41 = vsel %vm1130_vm5, %v3843_v38, 0.0 }
 0x208   : > { %2640 = vpow2.f32 %v1201_v63  ;;  %1234 = vadd.xlane.f32.xlu0 %v1233_v41 }
 0x20b   : > { %v1145_v56 = vpop.xlane.xlu2 %1144 }
 0x20c   : > { %v1183_v14 = vsub.f32 %v3770_v47, %v1145_v56 }
 0x20e   : > { %v3848_v57 = vpop.eup %2640  ;;  %v1203_v62 = vmul.f32 1.442695, %v1183_v14 }
 0x20f   : > { %v1236_v22 = vsel %vm1130_vm5, %v3848_v57, 0.0 }
 0x210   : > { %2642 = vpow2.f32 %v1203_v62  ;;  %1237 = vadd.xlane.f32.xlu1 %v1236_v22 }
 0x213   : > { %v1148_v52 = vpop.xlane.xlu2 %1147 }
 0x214   : > { %v1184_v1 = vsub.f32 %v3775_v50, %v1148_v52 }
 0x216   : > { %v3853_v32 = vpop.eup %2642  ;;  %v1205_v0 = vmul.f32 1.442695, %v1184_v1 }
 0x217   : > { %v1239_v6 = vsel %vm1130_vm5, %v3853_v32, 0.0 }
 0x218   : > { %2644 = vpow2.f32 %v1205_v0  ;;  %1240 = vadd.xlane.f32.xlu2 %v1239_v6 }
 0x21b   : > { %v1151_v47 = vpop.xlane.xlu0 %1150 }
 0x21c   : > { %v1185_v28 = vsub.f32 %v3780_v2, %v1151_v47 }
 0x21e   : > { %v3858_v61 = vpop.eup %2644  ;;  %v1207_v21 = vmul.f32 1.442695, %v1185_v28 }
 0x21f   : > { %v1242_v44 = vsel %vm1130_vm5, %v3858_v61, 0.0 }
 0x220   : > { %v1157_v33 = vpop.xlane.xlu2 %1156  ;;  %2646 = vpow2.f32 %v1207_v21  ;;  %1243 = vadd.xlane.f32.xlu0 %v1242_v44 }
 0x221   : > { %v1187_v50 = vsub.f32 %v3785_v17, %v1157_v33 }
 0x223   : > { %v1211_v49 = vmul.f32 1.442695, %v1187_v50 }
 0x224   : > { %v1154_v60 = vpop.xlane.xlu1 %1153 }
 0x225   : > { %2648 = vpow2.f32 %v1211_v49  ;;  %v1186_v23 = vsub.f32 %v3790_v26, %v1154_v60 }
 0x226   : > { %v3864_v35 = vpop.eup %2646 }
 0x227   : > { %v1209_v53 = vmul.f32 1.442695, %v1186_v23  ;;  %v1245_v15 = vsel %vm1130_vm5, %v3864_v35, 0.0 }
 0x228   : > { %v1160_v2 = vpop.xlane.xlu0 %1159  ;;  %1246 = vadd.xlane.f32.xlu1 %v1245_v15 }
 0x229   : > { %v1188_v27 = vsub.f32 %v3795_v8, %v1160_v2  ;;  %2650 = vpow2.f32 %v1209_v53 }
 0x22b   : > { %v3869_v54 = vpop.eup %2648  ;;  %v1213_v17 = vmul.f32 1.442695, %v1188_v27 }
 0x22c   : > { %v1251_v43 = vsel %vm1130_vm5, %v3869_v54, 0.0 }
 0x22d   : > { %2652 = vpow2.f32 %v1213_v17  ;;  %1252 = vadd.xlane.f32.xlu0 %v1251_v43 }
 0x22f   : > { %v3873_v26 = vpop.eup %2650 }
 0x230   : > { %v1163_v24 = vpop.xlane.xlu1 %1162  ;;  %v1248_v4 = vsel %vm1130_vm5, %v3873_v26, 0.0 }
 0x231   : > { %v1189_v11 = vsub.f32 %v3800_v42, %v1163_v24  ;;  %1249 = vadd.xlane.f32.xlu2 %v1248_v4 }
 0x233   : > { %v3878_v8 = vpop.eup %2652  ;;  %v1215_v55 = vmul.f32 1.442695, %v1189_v11 }
 0x234   : > { %v1254_v19 = vsel %vm1130_vm5, %v3878_v8, 0.0 }
 0x235   : > { %2654 = vpow2.f32 %v1215_v55  ;;  %1255 = vadd.xlane.f32.xlu1 %v1254_v19 }
 0x238   : > { %v1166_v30 = vpop.xlane.xlu2 %1165 }
 0x239   : > { %v1190_v40 = vsub.f32 %v3805_v39, %v1166_v30 }
 0x23b   : > { %v3883_v7 = vpop.eup %2654  ;;  %v1217_v58 = vmul.f32 1.442695, %v1190_v40 }
 0x23c   : > { %v1257_v37 = vsel %vm1130_vm5, %v3883_v7, 0.0 }
 0x23d   : > { %2656 = vpow2.f32 %v1217_v58  ;;  %1258 = vadd.xlane.f32.xlu2 %v1257_v37 }
 0x240   : > { %v1169_v42 = vpop.xlane.xlu0 %1168 }
 0x241   : > { %v1191_v29 = vsub.f32 %v3810_v16, %v1169_v42 }
 0x243   : > { %v3888_v9 = vpop.eup %2656  ;;  %v1219_v12 = vmul.f32 1.442695, %v1191_v29 }
 0x244   : > { %v1260_v13 = vsel %vm1130_vm5, %v3888_v9, 0.0 }
 0x245   : > { %2658 = vpow2.f32 %v1219_v12  ;;  %1261 = vadd.xlane.f32.xlu0 %v1260_v13 }
 0x248   : > { %v1172_v39 = vpop.xlane.xlu1 %1171 }
 0x249   : > { %v1192_v46 = vsub.f32 %v3815_v34, %v1172_v39 }
 0x24b   : > { %v3893_v48 = vpop.eup %2658  ;;  %v1221_v5 = vmul.f32 1.442695, %v1192_v46 }
 0x24c   : > { %v1263_v10 = vsel %vm1130_vm5, %v3893_v48, 0.0 }
 0x24d   : > { %2660 = vpow2.f32 %v1221_v5  ;;  %1264 = vadd.xlane.f32.xlu1 %v1263_v10 }
 0x250   : > { %v1175_v16 = vpop.xlane.xlu2 %1174 }
 0x251   : > { %v1193_v3 = vsub.f32 %v3820_v36, %v1175_v16 }
 0x253   : > { %v3898_v20 = vpop.eup %2660  ;;  %v1223_v18 = vmul.f32 1.442695, %v1193_v3 }
 0x254   : > { %v1266_v63 = vsel %vm1130_vm5, %v3898_v20, 0.0 }
 0x255   : > { %2662 = vpow2.f32 %v1223_v18  ;;  %1267 = vadd.xlane.f32.xlu2 %v1266_v63 }
 0x258   : > { %v1178_v34 = vpop.xlane.xlu0 %1177 }
 0x259   : > { %v1194_v41 = vsub.f32 %v3827_v31, %v1178_v34 }
 0x25b   : > { %v3903_v56 = vpop.eup %2662  ;;  %v1225_v14 = vmul.f32 1.442695, %v1194_v41 }
 0x25c   : > { %v1269_v62 = vsel %vm1130_vm5, %v3903_v56, 0.0 }
 0x25d   : > { %2664 = vpow2.f32 %v1225_v14  ;;  %1270 = vadd.xlane.f32.xlu0 %v1269_v62 }
 0x262   : > { %v1229_v52 = vpop.xlane.xlu1 %1228 }
 0x263   : > { %v3907_v36 = vpop.eup %2664  ;;  %2666 = vrcp.f32 %v1229_v52  ;;  %v1286_v47 = vand.u32 2147483648, %v1229_v52  ;;  %v1284_v28 = vand.u32 2147483647, %v1229_v52  ;;  %vm1280_vm6 = vweird.f32 %v1229_v52 }
 0x264   : > { %v1272_v22 = vsel %vm1130_vm5, %v3907_v36, 0.0 }
 0x265   : > { %1273 = vadd.xlane.f32.xlu1 %v1272_v22  ;;  %v1287_v33 = vor.u32 1.1754944e-38, %v1286_v47  ;;  %vm1285_vm8 = vcmp.eq.f32.partialorder %v1284_v28, 8.507059e+37 }
 0x269   : > { %v2667_v1 = vpop.eup %2666 }
 0x26a   : > { %v1276_v0 = vmul.f32 %v2667_v1, %v1229_v52  ;;  %vm1281_vm9 = vweird.f32 %v2667_v1 }
 0x26b   : > { %vm1282_vm7 = vmor %vm1280_vm6, %vm1281_vm9 }
 0x26c   : > { %v1277_v6 = vsub.f32 1.0, %v1276_v0 }
 0x26e   : > { %v1278_v31 = vmul.f32 %v2667_v1, %v1277_v6 }
 0x270   : > { %v1279_v21 = vadd.f32 %v2667_v1, %v1278_v31 }
 0x272   : > { %v1283_v50 = vsel %vm1282_vm7, %v2667_v1, %v1279_v21 }
 0x273   : > { %v1232_v44 = vpop.xlane.xlu2 %1231  ;;  %v1288_v49 = vsel %vm1285_vm8, %v1287_v33, %v1283_v50 }
 0x274   : > { %2668 = vrcp.f32 %v1232_v44  ;;  %v3912_v60 = vmul.f32 %v3832_v25, %v1288_v49  ;;  %v1300_v43 = vand.u32 2147483648, %v1232_v44  ;;  %v1298_v24 = vand.u32 2147483647, %v1232_v44 }
 0x275   : > { %vm1294_vm12 = vweird.f32 %v1232_v44 }
 0x276   : > { %v1518_v23 = vsel %vm1517_vm10, %v3912_v60, -inf  ;;  %1888 = vrot.lane.b32.xlu0 %v3912_v60, %s2764_s7  ;;  %v1301_v11 = vor.u32 1.1754944e-38, %v1300_v43  ;;  %vm1299_vm14 = vcmp.eq.f32.partialorder %v1298_v24, 8.507059e+37 }
 0x277   : > { %1519 = vmax.xlane.f32.xlu2 %v1518_v23 }
 0x27a   : > { %v2669_v53 = vpop.eup %2668 }
 0x27b   : > { %v1290_v2 = vmul.f32 %v2669_v53, %v1232_v44  ;;  %v1235_v15 = vpop.xlane.xlu0 %1234  ;;  %vm1295_vm11 = vweird.f32 %v2669_v53 }
 0x27c   : > { %2670 = vrcp.f32 %v1235_v15  ;;  %vm1296_vm13 = vmor %vm1294_vm12, %vm1295_vm11  ;;  %v1314_v42 = vand.u32 2147483648, %v1235_v15  ;;  %v1312_v29 = vand.u32 2147483647, %v1235_v15  ;;  %vm1308_vm0 = vweird.f32 %v1235_v15 }
 0x27d   : > { %v1291_v27 = vsub.f32 1.0, %v1290_v2 }
 0x27e   : > { %v1315_v13 = vor.u32 1.1754944e-38, %v1314_v42  ;;  %vm1313_vm2 = vcmp.eq.f32.partialorder %v1312_v29, 8.507059e+37 }
 0x27f   : > { %v1292_v17 = vmul.f32 %v2669_v53, %v1291_v27 }
 0x281   : > { %v1293_v4 = vadd.f32 %v2669_v53, %v1292_v17 }
 0x282   : > { %v2671_v25 = vpop.eup %2670 }
 0x283   : > { %v1304_v55 = vmul.f32 %v2671_v25, %v1235_v15  ;;  %v1297_v19 = vsel %vm1296_vm13, %v2669_v53, %v1293_v4  ;;  %vm1309_vm15 = vweird.f32 %v2671_v25 }
 0x284   : > { %v1302_v40 = vsel %vm1299_vm14, %v1301_v11, %v1297_v19  ;;  %vm1310_vm1 = vmor %vm1308_vm0, %vm1309_vm15 }
 0x285   : > { %v1305_v30 = vsub.f32 1.0, %v1304_v55  ;;  %v3919_v58 = vmul.f32 %v3838_v51, %v1302_v40  ;;  %v1238_v51 = vpop.xlane.xlu1 %1237 }
 0x286   : > { %2672 = vrcp.f32 %v1238_v51  ;;  %v1328_v14 = vand.u32 2147483648, %v1238_v51  ;;  %vm1322_vm4 = vweird.f32 %v1238_v51 }
 0x287   : > { %5122 = vst [vmem:[#allocation11_spill] sm:$0xff] %v3919_v58  ;;  %v1306_v37 = vmul.f32 %v2671_v25, %v1305_v30  ;;  %1890 = vrot.lane.b32.xlu1 %v3919_v58, %s2764_s7  ;;  %v1521_v3 = vsel %vm1517_vm10, %v3919_v58, -inf }
 0x288   : > { %v1329_v52 = vor.u32 1.1754944e-38, %v1328_v14 }
 0x289   : > { %v1307_v12 = vadd.f32 %v2671_v25, %v1306_v37 }
 0x28b   : > { %v1311_v39 = vsel %vm1310_vm1, %v2671_v25, %v1307_v12  ;;  %v1241_v62 = vpop.xlane.xlu2 %1240 }
 0x28c   : > { %v1316_v46 = vsel %vm1313_vm2, %v1315_v13, %v1311_v39  ;;  %v2673_v10 = vpop.eup %2672  ;;  %v1342_v24 = vand.u32 2147483648, %v1241_v62  ;;  %vm1336_vm14 = vweird.f32 %v1241_v62  ;;  %v1340_v4 = vand.u32 2147483647, %v1241_v62 }
 0x28d   : > { %v3924_v5 = vmul.f32 %v3843_v38, %v1316_v46  ;;  %v1318_v16 = vmul.f32 %v2673_v10, %v1238_v51  ;;  %vm1323_vm3 = vweird.f32 %v2673_v10  ;;  %v1326_v38 = vand.u32 2147483647, %v1238_v51 }
 0x28e   : > { %vm1324_vm9 = vmor %vm1322_vm4, %vm1323_vm3  ;;  %v1343_v55 = vor.u32 1.1754944e-38, %v1342_v24  ;;  %vm1341_vm0 = vcmp.eq.f32.partialorder %v1340_v4, 8.507059e+37 }
 0x28f   : > { %5123 = vst [vmem:[#allocation19_spill] sm:$0xff] %v3924_v5  ;;  %1892 = vrot.lane.b32.xlu2 %v3924_v5, %s2764_s7  ;;  %v1319_v18 = vsub.f32 1.0, %v1318_v16  ;;  %vm1327_vm6 = vcmp.eq.f32.partialorder %v1326_v38, 8.507059e+37  ;;  %v1524_v0 = vsel %vm1517_vm10, %v3924_v5, -inf }
 0x291   : > { %v1320_v63 = vmul.f32 %v2673_v10, %v1319_v18 }
 0x293   : > { %v1244_v34 = vpop.xlane.xlu0 %1243  ;;  %v1321_v41 = vadd.f32 %v2673_v10, %v1320_v63 }
 0x294   : > { %2674 = vrcp.f32 %v1244_v34  ;;  %v1356_v53 = vand.u32 2147483648, %v1244_v34  ;;  %vm1350_vm8 = vweird.f32 %v1244_v34  ;;  %v1354_v2 = vand.u32 2147483647, %v1244_v34 }
 0x295   : > { %v1325_v22 = vsel %vm1324_vm9, %v2673_v10, %v1321_v41  ;;  %2676 = vrcp.f32 %v1241_v62 }
 0x296   : > { %v1330_v6 = vsel %vm1327_vm6, %v1329_v52, %v1325_v22  ;;  %v1357_v27 = vor.u32 1.1754944e-38, %v1356_v53  ;;  %vm1355_vm12 = vcmp.eq.f32.partialorder %v1354_v2, 8.507059e+37 }
 0x297   : > { %v3933_v47 = vmul.f32 %v3848_v57, %v1330_v6 }
 0x299   : > { %v1527_v33 = vsel %vm1517_vm10, %v3933_v47, -inf }
 0x29a   : > { %v2675_v1 = vpop.eup %2674 }
 0x29b   : > { %v1346_v31 = vmul.f32 %v2675_v1, %v1244_v34  ;;  %v2677_v28 = vpop.eup %2676  ;;  %vm1351_vm7 = vweird.f32 %v2675_v1  ;;  %v1247_v30 = vpop.xlane.xlu1 %1246 }
 0x29c   : > { %v1332_v44 = vmul.f32 %v2677_v28, %v1241_v62  ;;  %vm1352_vm11 = vmor %vm1350_vm8, %vm1351_vm7  ;;  %vm1337_vm13 = vweird.f32 %v2677_v28  ;;  %2678 = vrcp.f32 %v1247_v30  ;;  %v1370_v39 = vand.u32 2147483648, %v1247_v30 }
 0x29d   : > { %v1347_v21 = vsub.f32 1.0, %v1346_v31  ;;  %vm1338_vm15 = vmor %vm1336_vm14, %vm1337_vm13  ;;  %vm1364_vm2 = vweird.f32 %v1247_v30  ;;  %v1368_v46 = vand.u32 2147483647, %v1247_v30 }
 0x29e   : > { %v1333_v49 = vsub.f32 1.0, %v1332_v44  ;;  %v1371_v10 = vor.u32 1.1754944e-38, %v1370_v39 }
 0x29f   : > { %v1348_v50 = vmul.f32 %v2675_v1, %v1347_v21  ;;  %vm1369_vm4 = vcmp.eq.f32.partialorder %v1368_v46, 8.507059e+37 }
 0x2a0   : > { %1522 = vmax.xlane.f32.xlu0 %v1521_v3  ;;  %v1334_v15 = vmul.f32 %v2677_v28, %v1333_v49  ;;  %v1253_v51 = vpop.xlane.xlu0 %1252 }
 0x2a1   : > { %v1349_v23 = vadd.f32 %v2675_v1, %v1348_v50  ;;  %2680 = vrcp.f32 %v1253_v51  ;;  %v1398_v6 = vand.u32 2147483648, %v1253_v51  ;;  %vm1392_vm6 = vweird.f32 %v1253_v51 }
 0x2a2   : > { %v1335_v17 = vadd.f32 %v2677_v28, %v1334_v15  ;;  %v2679_v37 = vpop.eup %2678  ;;  %v1396_v31 = vand.u32 2147483647, %v1253_v51 }
 0x2a3   : > { %v1353_v57 = vsel %vm1352_vm11, %v2675_v1, %v1349_v23  ;;  %v1360_v42 = vmul.f32 %v2679_v37, %v1247_v30  ;;  %vm1365_vm1 = vweird.f32 %v2679_v37 }
 0x2a4   : > { %v1358_v43 = vsel %vm1355_vm12, %v1357_v27, %v1353_v57  ;;  %v1339_v11 = vsel %vm1338_vm15, %v2677_v28, %v1335_v17  ;;  %vm1366_vm3 = vmor %vm1364_vm2, %vm1365_vm1  ;;  %v1250_v16 = vpop.xlane.xlu2 %1249  ;;  %vm1397_vm11 = vcmp.eq.f32.partialorder %v1396_v31, 8.507059e+37 }
 0x2a5   : > { %v3940_v25 = vmul.f32 %v3858_v61, %v1358_v43  ;;  %v1344_v19 = vsel %vm1341_vm0, %v1343_v55, %v1339_v11  ;;  %v1361_v29 = vsub.f32 1.0, %v1360_v42  ;;  %2682 = vrcp.f32 %v1250_v16 }
 0x2a6   : > { %v3945_v40 = vmul.f32 %v3853_v32, %v1344_v19  ;;  %v1384_v44 = vand.u32 2147483648, %v1250_v16  ;;  %vm1378_vm12 = vweird.f32 %v1250_v16  ;;  %v1382_v50 = vand.u32 2147483647, %v1250_v16 }
 0x2a7   : > { %5124 = vst [vmem:[#allocation23_spill] sm:$0xff] %v3940_v25  ;;  %v1362_v12 = vmul.f32 %v2679_v37, %v1361_v29  ;;  %v2681_v63 = vpop.eup %2680  ;;  %v1533_v34 = vsel %vm1517_vm10, %v3940_v25, -inf }
 0x2a8   : > { %5125 = vst [vmem:[#allocation22_spill] sm:$0xff] %v3945_v40  ;;  %v1530_v61 = vsel %vm1517_vm10, %v3945_v40, -inf  ;;  %v1388_v41 = vmul.f32 %v2681_v63, %v1253_v51  ;;  %vm1393_vm9 = vweird.f32 %v2681_v63  ;;  %v1385_v53 = vor.u32 1.1754944e-38, %v1384_v44  ;;  %v1256_v15 = vpop.xlane.xlu1 %1255 }
 0x2a9   : > { %v1363_v13 = vadd.f32 %v2679_v37, %v1362_v12  ;;  %vm1394_vm7 = vmor %vm1392_vm6, %vm1393_vm9  ;;  %vm1383_vm14 = vcmp.eq.f32.partialorder %v1382_v50, 8.507059e+37  ;;  %2684 = vrcp.f32 %v1256_v15  ;;  %v1412_v55 = vand.u32 2147483648, %v1256_v15 }
 0x2aa   : > { %v1389_v38 = vsub.f32 1.0, %v1388_v41  ;;  %vm1406_vm0 = vweird.f32 %v1256_v15  ;;  %v1410_v19 = vand.u32 2147483647, %v1256_v15 }
 0x2ab   : > { %v1367_v32 = vsel %vm1366_vm3, %v2679_v37, %v1363_v13  ;;  %v2683_v14 = vpop.eup %2682 }
 0x2ac   : > { %v1372_v3 = vsel %vm1369_vm4, %v1371_v10, %v1367_v32  ;;  %v1374_v22 = vmul.f32 %v2683_v14, %v1250_v16  ;;  %v1390_v52 = vmul.f32 %v2681_v63, %v1389_v38  ;;  %vm1379_vm8 = vweird.f32 %v2683_v14 }
 0x2ad   : > { %v3952_v18 = vmul.f32 %v3864_v35, %v1372_v3  ;;  %vm1380_vm13 = vmor %vm1378_vm12, %vm1379_vm8  ;;  %vm1411_vm2 = vcmp.eq.f32.partialorder %v1410_v19, 8.507059e+37 }
 0x2ae   : > { %v1375_v1 = vsub.f32 1.0, %v1374_v22  ;;  %v1391_v35 = vadd.f32 %v2681_v63, %v1390_v52 }
 0x2af   : > { %5126 = vst [vmem:[#allocation18_spill] sm:$0xff] %v3952_v18  ;;  %v1536_v62 = vsel %vm1517_vm10, %v3952_v18, -inf  ;;  %v2685_v17 = vpop.eup %2684 }
 0x2b0   : > { %v1395_v28 = vsel %vm1394_vm7, %v2681_v63, %v1391_v35  ;;  %v1402_v43 = vmul.f32 %v2685_v17, %v1256_v15  ;;  %vm1407_vm15 = vweird.f32 %v2685_v17 }
 0x2b1   : > { %1525 = vmax.xlane.f32.xlu1 %v1524_v0  ;;  %v1376_v0 = vmul.f32 %v2683_v14, %v1375_v1  ;;  %vm1408_vm1 = vmor %vm1406_vm0, %vm1407_vm15 }
 0x2b3   : > { %v1377_v21 = vadd.f32 %v2683_v14, %v1376_v0 }
 0x2b4   : > { %1894 = vrot.lane.b32.xlu0 %v3933_v47, %s2764_s7 }
 0x2b5   : > { %v1381_v23 = vsel %vm1380_vm13, %v2683_v14, %v1377_v21 }
 0x2b6   : > { %v1386_v57 = vsel %vm1383_vm14, %v1385_v53, %v1381_v23 }
 0x2b7   : > { %v3966_v27 = vmul.f32 %v3873_v26, %v1386_v57  ;;  %v1413_v26 = vor.u32 1.1754944e-38, %v1412_v55 }
 0x2b8   : > { %1528 = vmax.xlane.f32.xlu2 %v1527_v33  ;;  %v1399_v33 = vor.u32 1.1754944e-38, %v1398_v6  ;;  %v1262_v37 = vpop.xlane.xlu0 %1261 }
 0x2b9   : > { %5128 = vst [vmem:[#allocation21_spill] sm:$0xff] %v3966_v27  ;;  %v1539_v24 = vsel %vm1517_vm10, %v3966_v27, -inf  ;;  %2686 = vrcp.f32 %v1262_v37  ;;  %vm1434_vm4 = vweird.f32 %v1262_v37  ;;  %v1438_v41 = vand.u32 2147483647, %v1262_v37 }
 0x2ba   : > { %v1400_v49 = vsel %vm1397_vm11, %v1399_v33, %v1395_v28 }
 0x2bb   : > { %v3961_v2 = vmul.f32 %v3869_v54, %v1400_v49  ;;  %v1403_v54 = vsub.f32 1.0, %v1402_v43  ;;  %vm1439_vm11 = vcmp.eq.f32.partialorder %v1438_v41, 8.507059e+37 }
 0x2bd   : > { %5127 = vst [vmem:[#allocation16_spill] sm:$0xff] %v3961_v2  ;;  %v1404_v4 = vmul.f32 %v2685_v17, %v1403_v54  ;;  %v1542_v13 = vsel %vm1517_vm10, %v3961_v2, -inf }
 0x2bf   : > { %v1405_v11 = vadd.f32 %v2685_v17, %v1404_v4  ;;  %v2687_v12 = vpop.eup %2686 }
 0x2c0   : > { %v1430_v46 = vmul.f32 %v2687_v12, %v1262_v37  ;;  %vm1435_vm3 = vweird.f32 %v2687_v12  ;;  %v1265_v1 = vpop.xlane.xlu1 %1264 }
 0x2c1   : > { %v1409_v30 = vsel %vm1408_vm1, %v2685_v17, %v1405_v11  ;;  %vm1436_vm6 = vmor %vm1434_vm4, %vm1435_vm3  ;;  %v1454_v43 = vand.u32 2147483648, %v1265_v1  ;;  %vm1448_vm14 = vweird.f32 %v1265_v1 }
 0x2c2   : > { %v1414_v42 = vsel %vm1411_vm2, %v1413_v26, %v1409_v30  ;;  %v1431_v10 = vsub.f32 1.0, %v1430_v46 }
 0x2c3   : > { %v3973_v29 = vmul.f32 %v3878_v8, %v1414_v42  ;;  %v1455_v19 = vor.u32 1.1754944e-38, %v1454_v43 }
 0x2c4   : > { %v1432_v8 = vmul.f32 %v2687_v12, %v1431_v10 }
 0x2c5   : > { %5129 = vst [vmem:[#allocation24_spill] sm:$0xff] %v3973_v29  ;;  %v1545_v51 = vsel %vm1517_vm10, %v3973_v29, -inf }
 0x2c6   : > { %v1433_v63 = vadd.f32 %v2687_v12, %v1432_v8 }
 0x2ca   : > { %1898 = vrot.lane.b32.xlu1 %v3940_v25, %s2764_s7 }
 0x2d0   : > { %1896 = vrot.lane.b32.xlu2 %v3945_v40, %s2764_s7  ;;  %v1271_v50 = vpop.xlane.xlu0 %1270 }
 0x2d1   : > { %v1482_v8 = vand.u32 2147483648, %v1271_v50  ;;  %vm1476_vm2 = vweird.f32 %v1271_v50 }
 0x2de   : > { %1531 = vmax.xlane.f32.xlu0 %v1530_v61  ;;  %v1259_v61 = vpop.xlane.xlu2 %1258 }
 0x2df   : > { %2688 = vrcp.f32 %v1259_v61  ;;  %v1426_v38 = vand.u32 2147483648, %v1259_v61  ;;  %vm1420_vm7 = vweird.f32 %v1259_v61  ;;  %v1424_v22 = vand.u32 2147483647, %v1259_v61 }
 0x2e0   : > { %2690 = vrcp.f32 %v1265_v1 }
 0x2e1   : > { %v1427_v6 = vor.u32 1.1754944e-38, %v1426_v38  ;;  %vm1425_vm12 = vcmp.eq.f32.partialorder %v1424_v22, 8.507059e+37  ;;  %2692 = vrcp.f32 %v1271_v50  ;;  %v1483_v38 = vor.u32 1.1754944e-38, %v1482_v8 }
 0x2e5   : > { %v2689_v39 = vpop.eup %2688 }
 0x2e6   : > { %v1416_v32 = vmul.f32 %v2689_v39, %v1259_v61  ;;  %vm1421_vm9 = vweird.f32 %v2689_v39  ;;  %v2691_v33 = vpop.eup %2690  ;;  %v3993_v53 = vpop.xlane.xlu2 %1267 }
 0x2e7   : > { %vm1422_vm8 = vmor %vm1420_vm7, %vm1421_vm9  ;;  %v1444_v44 = vmul.f32 %v2691_v33, %v1265_v1  ;;  %vm1449_vm13 = vweird.f32 %v2691_v33  ;;  %v2693_v17 = vpop.eup %2692 }
 0x2e8   : > { %v1417_v16 = vsub.f32 1.0, %v1416_v32  ;;  %v3995_v57 = vpop.permute.xlu0 %1888  ;;  %vm1450_vm15 = vmor %vm1448_vm14, %vm1449_vm13  ;;  %v1472_v11 = vmul.f32 %v2693_v17, %v1271_v50  ;;  %vm1477_vm1 = vweird.f32 %v2693_v17 }
 0x2e9   : > { %v1445_v23 = vsub.f32 1.0, %v1444_v44  ;;  %vm4015_vm4 = vmor %vm1476_vm2, %vm1477_vm1  ;;  %vm1462_vm1 = vweird.f32 %v3993_v53 }
 0x2ea   : > { %v1418_v3 = vmul.f32 %v2689_v39, %v1417_v16  ;;  %v1473_v61 = vsub.f32 1.0, %v1472_v11 }
 0x2eb   : > { %v1446_v15 = vmul.f32 %v2691_v33, %v1445_v23 }
 0x2ec   : > { %v1419_v14 = vadd.f32 %v2689_v39, %v1418_v3  ;;  %v1480_v3 = vand.u32 2147483647, %v1271_v50 }
 0x2ee   : > { %v1423_v0 = vsel %vm1422_vm8, %v2689_v39, %v1419_v14  ;;  %v3997_v4 = vpop.xlane.xlu2 %1519  ;;  %v1474_v39 = vmul.f32 %v2693_v17, %v1473_v61  ;;  %vm1481_vm7 = vcmp.eq.f32.partialorder %v1480_v3, 8.507059e+37 }
 0x2ef   : > { %v1428_v28 = vsel %vm1425_vm12, %v1427_v6, %v1423_v0 }
 0x2f0   : > { %v3987_v21 = vmul.f32 %v3883_v7, %v1428_v28  ;;  %v1447_v7 = vadd.f32 %v2691_v33, %v1446_v15  ;;  %v1475_v16 = vadd.f32 %v2693_v17, %v1474_v39 }
 0x2f2   : > { %1900 = vrot.lane.b32.xlu0 %v3952_v18, %s2764_s7  ;;  %5131 = vst [vmem:[#allocation34_spill] sm:$0xff] %v3987_v21  ;;  %v1548_v49 = vsel %vm1517_vm10, %v3987_v21, -inf  ;;  %v1451_v55 = vsel %vm1450_vm15, %v2691_v33, %v1447_v7  ;;  %v1479_v14 = vsel %vm4015_vm4, %v2693_v17, %v1475_v16 }
 0x2f3   : > { %v1484_v33 = vsel %vm1481_vm7, %v1483_v38, %v1479_v14 }
 0x2f4   : > { %1534 = vmax.xlane.f32.xlu1 %v1533_v34  ;;  %v1440_v34 = vand.u32 2147483648, %v1262_v37 }
 0x2f6   : > { %v1441_v52 = vor.u32 1.1754944e-38, %v1440_v34  ;;  %v4008_v46 = vpop.permute.xlu2 %1892 }
 0x2f9   : > { %1537 = vmax.xlane.f32.xlu2 %v1536_v62  ;;  %v1437_v62 = vsel %vm1436_vm6, %v2687_v12, %v1433_v63 }
 0x2fa   : > { %v1442_v35 = vsel %vm1439_vm11, %v1441_v52, %v1437_v62  ;;  %vm1566_vm11 = vcmp.eq.f32.partialorder %v3912_v60, %v3997_v4 }
 0x2fb   : > { %v3982_v31 = vmul.f32 %v3888_v9, %v1442_v35  ;;  %v1274_v9 = vpop.xlane.xlu1 %1273 }
 0x2fc   : > { %2694 = vrcp.f32 %v1274_v9  ;;  %v1496_v34 = vand.u32 2147483648, %v1274_v9  ;;  %vm1490_vm9 = vweird.f32 %v1274_v9  ;;  %v1494_v41 = vand.u32 2147483647, %v1274_v9 }
 0x2fd   : > { %5130 = vst [vmem:[#allocation31_spill] sm:$0xff] %v3982_v31  ;;  %2696 = vrcp.f32 %v3993_v53  ;;  %v1551_v52 = vsel %vm1517_vm10, %v3982_v31, -inf }
 0x2fe   : > { %v1497_v0 = vor.u32 1.1754944e-38, %v1496_v34  ;;  %vm1495_vm8 = vcmp.eq.f32.partialorder %v1494_v41, 8.507059e+37  ;;  %v1466_v34 = vand.u32 2147483647, %v3993_v53 }
 0x300   : > { %vm1467_vm4 = vcmp.eq.f32.partialorder %v1466_v34, 8.507059e+37 }
 0x302   : > { %v2695_v54 = vpop.eup %2694 }
 0x303   : > { %v1486_v30 = vmul.f32 %v2695_v54, %v1274_v9  ;;  %v3999_v26 = vpop.permute.xlu1 %1890  ;;  %vm1491_vm3 = vweird.f32 %v2695_v54  ;;  %v2697_v35 = vpop.eup %2696  ;;  %v1584_v9 = vsel %vm1566_vm11, %v3824_v59, 6 }
 0x304   : > { %vm4021_vm6 = vmor %vm1490_vm9, %vm1491_vm3  ;;  %v1458_v23 = vmul.f32 %v2697_v35, %v3993_v53  ;;  %v4053_v43 = vsel %vm1517_vm10, %v1584_v9, 2147483647  ;;  %vm1463_vm15 = vweird.f32 %v2697_v35 }
 0x305   : > { %v1487_v12 = vsub.f32 1.0, %v1486_v30  ;;  %vm1464_vm2 = vmor %vm1462_vm1, %vm1463_vm15 }
 0x30d   : > { %1904 = vrot.lane.b32.xlu1 %v3961_v2, %s2764_s7 }
 0x311   : > { %1902 = vrot.lane.b32.xlu2 %v3966_v27, %s2764_s7 }
 0x313   : > { %v4001_v37 = vpop.xlane.xlu0 %1522 }
 0x314   : > { %5132 = vst [vmem:[#allocation15_spill] sm:$0xff] %v4001_v37  ;;  %vm1567_vm13 = vcmp.eq.f32.partialorder %v3919_v58, %v4001_v37 }
 0x315   : > { %v1585_v30 = vsel %vm1567_vm13, %v3824_v59, 6 }
 0x316   : > { %v4075_v39 = vsel %vm1517_vm10, %v1585_v30, 2147483647 }
 0x317   : > { %v1617_v41 = vshra.s32 %v4075_v39, 16 }
 0x31c   : > { %1540 = vmax.xlane.f32.xlu0 %v1539_v24  ;;  %v1452_v24 = vand.u32 2147483647, %v1265_v1 }
 0x31e   : > { %vm1453_vm0 = vcmp.eq.f32.partialorder %v1452_v24, 8.507059e+37  ;;  %v1459_v24 = vsub.f32 1.0, %v1458_v23 }
 0x31f   : > { %v1456_v42 = vsel %vm1453_vm0, %v1455_v19, %v1451_v55  ;;  %v1602_v55 = vshra.s32 %v4053_v43, 16 }
 0x320   : > { %v1460_v19 = vmul.f32 %v2697_v35, %v1459_v24 }
 0x324   : > { %v4010_v32 = vpop.xlane.xlu1 %1525 }
 0x325   : > { %5134 = vst [vmem:[#allocation33_spill] sm:$0xff] %v4010_v32  ;;  %vm1568_vm0 = vcmp.eq.f32.partialorder %v3924_v5, %v4010_v32 }
 0x326   : > { %v4012_v10 = vpop.permute.xlu0 %1894  ;;  %v1586_v14 = vsel %vm1568_vm0, %v3824_v59, 6 }
 0x32b   : > { %v4025_v22 = vpop.xlane.xlu2 %1528 }
 0x32c   : > { %vm1569_vm9 = vcmp.eq.f32.partialorder %v3933_v47, %v4025_v22 }
 0x330   : > { %1906 = vrot.lane.b32.xlu0 %v3973_v29, %s2764_s7 }
 0x337   : > { %1543 = vmax.xlane.f32.xlu1 %v1542_v13  ;;  %v4004_v13 = vmul.f32 %v3893_v48, %v1456_v42 }
 0x339   : > { %5133 = vst [vmem:[#allocation8_spill] sm:$0xff] %v4004_v13  ;;  %v1554_v44 = vsel %vm1517_vm10, %v4004_v13, -inf }
 0x33a   : > { %1546 = vmax.xlane.f32.xlu2 %v1545_v51  ;;  %v1488_v51 = vmul.f32 %v2695_v54, %v1487_v12  ;;  %v4072_v12 = vcvt.s32.f32 %v1602_v55 }
 0x33c   : > { %v1489_v48 = vadd.f32 %v2695_v54, %v1488_v51  ;;  %v4031_v6 = vpop.permute.xlu1 %1898  ;;  %v1461_v51 = vadd.f32 %v2697_v35, %v1460_v19 }
 0x33e   : > { %v1493_v1 = vsel %vm4021_vm6, %v2695_v54, %v1489_v48  ;;  %v4055_v54 = vpop.permute.xlu2 %1896  ;;  %v1468_v48 = vand.u32 2147483648, %v3993_v53  ;;  %v1465_v62 = vsel %vm1464_vm2, %v2697_v35, %v1461_v51  ;;  %v4102_v53 = vsel %vm1517_vm10, %v1586_v14, 2147483647 }
 0x33f   : > { %v1498_v50 = vsel %vm1495_vm8, %v1497_v0, %v1493_v1  ;;  %v4099_v0 = vcvt.s32.f32 %v1617_v41  ;;  %v1632_v23 = vshra.s32 %v4102_v53, 16 }
 0x340   : > { %v4047_v15 = vmul.f32 %v3907_v36, %v1498_v50 }
 0x342   : > { %v1563_v36 = vsel %vm1517_vm10, %v4047_v15, -inf }
 0x350   : > { %1910 = vrot.lane.b32.xlu1 %v3982_v31, %s2764_s7 }
 0x351   : > { %v4033_v28 = vpop.xlane.xlu0 %1531 }
 0x352   : > { %1908 = vrot.lane.b32.xlu2 %v3987_v21, %s2764_s7  ;;  %5139 = vst [vmem:[#allocation9_spill] sm:$0xff] %v4033_v28  ;;  %vm1570_vm12 = vcmp.eq.f32.partialorder %v3945_v40, %v4033_v28 }
 0x353   : > { %v1588_v7 = vsel %vm1570_vm12, %v3824_v59, 6 }
 0x354   : > { %v4064_v11 = vsel %vm1517_vm10, %v1588_v7, 2147483647  ;;  %v1587_v7 = vsel %vm1569_vm9, %v3824_v59, 6 }
 0x355   : > { %v1662_v42 = vshra.s32 %v4064_v11, 16  ;;  %v4129_v19 = vsel %vm1517_vm10, %v1587_v7, 2147483647 }
 0x356   : > { %v1647_v30 = vshra.s32 %v4129_v19, 16 }
 0x357   : > { %v4082_v3 = vcvt.s32.f32 %v1662_v42 }
 0x358   : > { %v4140_v51 = vcvt.s32.f32 %v1647_v30 }
 0x35a   : > { %1549 = vmax.xlane.f32.xlu0 %v1548_v49  ;;  %v4042_v49 = vmul.f32 %v3903_v56, %v1484_v33 }
 0x35c   : > { %v1560_v17 = vsel %vm1517_vm10, %v4042_v49, -inf }
 0x364   : > { %v4077_v16 = vpop.permute.xlu0 %1900 }
 0x367   : > { %v4057_v56 = vpop.xlane.xlu1 %1534 }
 0x368   : > { %5140 = vst [vmem:[#allocation20_spill] sm:$0xff] %v4057_v56  ;;  %vm1571_vm14 = vcmp.eq.f32.partialorder %v3940_v25, %v4057_v56 }
 0x369   : > { %v1589_v61 = vsel %vm1571_vm14, %v3824_v59, 6 }
 0x36a   : > { %v4088_v63 = vsel %vm1517_vm10, %v1589_v61, 2147483647 }
 0x36b   : > { %v1677_v38 = vshra.s32 %v4088_v63, 16  ;;  %v1676_v37 = vand.u32 65535, %v4088_v63 }
 0x36c   : > { %v4079_v8 = vpop.xlane.xlu2 %1537 }
 0x36d   : > { %vm1572_vm3 = vcmp.eq.f32.partialorder %v3952_v18, %v4079_v8  ;;  %v4109_v50 = vcvt.s32.f32 %v1677_v38 }
 0x36e   : > { %1912 = vrot.lane.b32.xlu0 %v4004_v13, %s2764_s7  ;;  %v1590_v1 = vsel %vm1572_vm3, %v3824_v59, 6 }
 0x36f   : > { %v4112_v35 = vsel %vm1517_vm10, %v1590_v1, 2147483647 }
 0x374   : > { %v4148_v41 = vpop.permute.xlu2 %1902 }
 0x37a   : > { %1552 = vmax.xlane.f32.xlu1 %v1551_v52  ;;  %v1469_v52 = vor.u32 1.1754944e-38, %v1468_v48 }
 0x37b   : > { %1555 = vmax.xlane.f32.xlu2 %v1554_v44 }
 0x37c   : > { %v1470_v33 = vsel %vm1467_vm4, %v1469_v52, %v1465_v62 }
 0x37d   : > { %v4117_v9 = vmul.f32 %v3898_v20, %v1470_v33 }
 0x37f   : > { %v1557_v55 = vsel %vm1517_vm10, %v4117_v9, -inf  ;;  %v4143_v48 = vpop.permute.xlu1 %1904 }
 0x382   : > { %1561 = vmax.xlane.f32.xlu1 %v1560_v17  ;;  %v1692_v17 = vshra.s32 %v4112_v35, 16 }
 0x383   : > { %1564 = vmax.xlane.f32.xlu2 %v1563_v36  ;;  %v4124_v36 = vcvt.s32.f32 %v1632_v23 }
 0x384   : > { %v4132_v20 = vcvt.s32.f32 %v1692_v17 }
 0x38a   : > { %1605 = vmin.xlane.f32.xlu1 %v4072_v12 }
 0x38b   : > { %1665 = vmin.xlane.f32.xlu2 %v4082_v3 }
 0x38f   : > { %v4107_v44 = vpop.xlane.xlu0 %1540 }
 0x390   : > { %5141 = vst [vmem:[#allocation7_spill] sm:$0xff] %v4107_v44  ;;  %vm1573_vm6 = vcmp.eq.f32.partialorder %v3966_v27, %v4107_v44 }
 0x391   : > { %v1591_v24 = vsel %vm1573_vm6, %v3824_v59, 6 }
 0x392   : > { %1620 = vmin.xlane.f32.xlu1 %v4099_v0  ;;  %v4136_v42 = vsel %vm1517_vm10, %v1591_v24, 2147483647 }
 0x393   : > { %1680 = vmin.xlane.f32.xlu2 %v4109_v50  ;;  %v1707_v61 = vshra.s32 %v4136_v42, 16 }
 0x395   : > { %v4145_v34 = vcvt.s32.f32 %v1707_v61 }
 0x398   : > { %1558 = vmax.xlane.f32.xlu0 %v1557_v55 }
 0x39a   : > { %1635 = vmin.xlane.f32.xlu1 %v4124_v36 }
 0x39b   : > { %1695 = vmin.xlane.f32.xlu2 %v4132_v20 }
 0x3a0   : > { %1650 = vmin.xlane.f32.xlu0 %v4140_v51 }
 0x3a2   : > { %v4174_v55 = vpop.permute.xlu0 %1906 }
 0x3a3   : > { %1710 = vmin.xlane.f32.xlu2 %v4145_v34 }
 0x3aa   : > { %v4150_v14 = vpop.xlane.xlu1 %1543 }
 0x3ab   : > { %5142 = vst [vmem:[#allocation12_spill] sm:$0xff] %v4150_v14  ;;  %vm1574_vm7 = vcmp.eq.f32.partialorder %v3961_v2, %v4150_v14 }
 0x3ac   : > { %v1592_v38 = vsel %vm1574_vm7, %v3824_v59, 6 }
 0x3ad   : > { %v4156_v62 = vsel %vm1517_vm10, %v1592_v38, 2147483647  ;;  %v4158_v52 = vpop.xlane.xlu2 %1546 }
 0x3ae   : > { %5143 = vst [vmem:[#allocation25_spill] sm:$0xff] %v4158_v52  ;;  %v1722_v1 = vshra.s32 %v4156_v62, 16  ;;  %vm1575_vm8 = vcmp.eq.f32.partialorder %v3973_v29, %v4158_v52  ;;  %v1721_v18 = vand.u32 65535, %v4156_v62 }
 0x3af   : > { %v1593_v33 = vsel %vm1575_vm8, %v3824_v59, 6 }
 0x3b0   : > { %v4164_v23 = vcvt.s32.f32 %v1722_v1  ;;  %v4167_v7 = vsel %vm1517_vm10, %v1593_v33, 2147483647 }
 0x3b1   : > { %v1737_v17 = vshra.s32 %v4167_v7, 16 }
 0x3b2   : > { %1725 = vmin.xlane.f32.xlu2 %v4164_v23 }
 0x3b3   : > { %v4171_v24 = vcvt.s32.f32 %v1737_v17 }
 0x3b5   : > { %1740 = vmin.xlane.f32.xlu1 %v4171_v24  ;;  %v4190_v2 = vpop.permute.xlu2 %1908 }
 0x3c2   : > { %v4188_v17 = vpop.permute.xlu1 %1910 }
 0x3cd   : > { %v4176_v30 = vpop.xlane.xlu0 %1549 }
 0x3ce   : > { %5144 = vst [vmem:[#allocation5_spill] sm:$0xff] %v4176_v30  ;;  %vm1576_vm11 = vcmp.eq.f32.partialorder %v3987_v21, %v4176_v30 }
 0x3cf   : > { %v1594_v61 = vsel %vm1576_vm11, %v3824_v59, 6 }
 0x3d0   : > { %v4182_v38 = vsel %vm1517_vm10, %v1594_v61, 2147483647 }
 0x3d1   : > { %v1752_v1 = vshra.s32 %v4182_v38, 16 }
 0x3d3   : > { %v4185_v33 = vcvt.s32.f32 %v1752_v1 }
 0x3d5   : > { %1755 = vmin.xlane.f32.xlu0 %v4185_v33 }
 0x3ed   : > { %v4192_v14 = vpop.xlane.xlu1 %1552 }
 0x3ee   : > { %5145 = vst [vmem:[#allocation30_spill] sm:$0xff] %v4192_v14  ;;  %vm1577_vm12 = vcmp.eq.f32.partialorder %v3982_v31, %v4192_v14  ;;  %v4197_v52 = vpop.xlane.xlu2 %1555 }
 0x3ef   : > { %v1595_v29 = vsel %vm1577_vm12, %v3824_v59, 6  ;;  %5146 = vst [vmem:[#allocation28_spill] sm:$0xff] %v4197_v52  ;;  %vm1578_vm13 = vcmp.eq.f32.partialorder %v4004_v13, %v4197_v52  ;;  %v1601_v52 = vand.u32 65535, %v4053_v43  ;;  %v4240_v43 = vpop.permute.xlu0 %1912 }
 0x3f0   : > { %v4202_v61 = vsel %vm1517_vm10, %v1595_v29, 2147483647  ;;  %v1596_v1 = vsel %vm1578_vm13, %v3824_v59, 6 }
 0x3f1   : > { %v1767_v25 = vshra.s32 %v4202_v61, 16  ;;  %v4207_v56 = vsel %vm1517_vm10, %v1596_v1, 2147483647  ;;  %v1603_v32 = vcvt.s32.f32 %v1601_v52 }
 0x3f2   : > { %v1782_v31 = vshra.s32 %v4207_v56, 16 }
 0x3f3   : > { %v4209_v21 = vcvt.s32.f32 %v1767_v25 }
 0x3f4   : > { %v4215_v30 = vcvt.s32.f32 %v1782_v31 }
 0x3f5   : > { %v4212_v14 = vpop.xlane.xlu1 %1561  ;;  %1770 = vmin.xlane.f32.xlu2 %v4209_v21 }
 0x3f6   : > { %5147 = vst [vmem:[#allocation29_spill] sm:$0xff] %v4212_v14  ;;  %vm1580_vm14 = vcmp.eq.f32.partialorder %v4042_v49, %v4212_v14  ;;  %v4220_v13 = vpop.xlane.xlu2 %1564  ;;  %1785 = vmin.xlane.f32.xlu1 %v4215_v30 }
 0x3f7   : > { %v1598_v29 = vsel %vm1580_vm14, %v3824_v59, 6  ;;  %5148 = vst [vmem:[#allocation32_spill] sm:$0xff] %v4220_v13  ;;  %vm1581_vm0 = vcmp.eq.f32.partialorder %v4047_v15, %v4220_v13 }
 0x3f8   : > { %v4224_v25 = vsel %vm1517_vm10, %v1598_v29, 2147483647  ;;  %v1616_v29 = vand.u32 65535, %v4075_v39 }
 0x3f9   : > { %v1812_v1 = vshra.s32 %v4224_v25, 16 }
 0x3fa   : > { %v1618_v52 = vcvt.s32.f32 %v1616_v29 }
 0x3fb   : > { %v4230_v31 = vcvt.s32.f32 %v1812_v1  ;;  %v1599_v1 = vsel %vm1581_vm0, %v3824_v59, 6 }
 0x3fc   : > { %v4248_v40 = vsel %vm1517_vm10, %v1599_v1, 2147483647 }
 0x3fd   : > { %v4228_v5 = vpop.xlane.xlu1 %1605 }
 0x3fe   : > { %vm1607_vm15 = vcmp.eq.f32.partialorder %v4072_v12, %v4228_v5  ;;  %1815 = vmin.xlane.f32.xlu1 %v4230_v31  ;;  %v4235_v14 = vpop.xlane.xlu2 %1665 }
 0x3ff   : > { %v1608_v27 = vsel %vm1607_vm15, %v1603_v32, inf  ;;  %v1827_v32 = vshra.s32 %v4248_v40, 16 }
 0x400   : > { %1609 = vmin.xlane.f32.xlu2 %v1608_v27 }
 0x401   : > { %v4258_v29 = vcvt.s32.f32 %v1827_v32  ;;  %v1661_v32 = vand.u32 65535, %v4064_v11 }
 0x405   : > { %v4243_v44 = vpop.xlane.xlu1 %1620 }
 0x406   : > { %vm1622_vm1 = vcmp.eq.f32.partialorder %v4099_v0, %v4243_v44  ;;  %v4250_v27 = vpop.xlane.xlu2 %1680 }
 0x407   : > { %v1623_v12 = vsel %vm1622_vm1, %v1618_v52, inf  ;;  %v1646_v52 = vand.u32 65535, %v4129_v19  ;;  %v1663_v19 = vcvt.s32.f32 %v1661_v32  ;;  %vm1682_vm4 = vcmp.eq.f32.partialorder %v4109_v50, %v4250_v27 }
 0x408   : > { %1624 = vmin.xlane.f32.xlu2 %v1623_v12 }
 0x40b   : > { %v4253_v39 = vpop.xlane.xlu0 %1558 }
 0x40c   : > { %5149 = vst [vmem:[#allocation13_spill] sm:$0xff] %v4253_v39  ;;  %vm1579_vm2 = vcmp.eq.f32.partialorder %v4117_v9, %v4253_v39 }
 0x40d   : > { %v1597_v13 = vsel %vm1579_vm2, %v3824_v59, 6  ;;  %v1648_v59 = vcvt.s32.f32 %v1646_v52 }
 0x40e   : > { %v4261_v0 = vsel %vm1517_vm10, %v1597_v13, 2147483647  ;;  %v4268_v28 = vpop.xlane.xlu2 %1695  ;;  %vm1667_vm10 = vcmp.eq.f32.partialorder %v4082_v3, %v4235_v14 }
 0x40f   : > { %v1797_v1 = vshra.s32 %v4261_v0, 16  ;;  %v1668_v58 = vsel %vm1667_vm10, %v1663_v19, inf  ;;  %vm1697_vm6 = vcmp.eq.f32.partialorder %v4132_v20, %v4268_v28  ;;  %v1631_v20 = vand.u32 65535, %v4102_v53 }
 0x410   : > { %1830 = vmin.xlane.f32.xlu2 %v4258_v29  ;;  %v1766_v53 = vand.u32 65535, %v4202_v61  ;;  %v1811_v61 = vand.u32 65535, %v4224_v25 }
 0x411   : > { %v4266_v12 = vcvt.s32.f32 %v1797_v1 }
 0x413   : > { %1800 = vmin.xlane.f32.xlu0 %v4266_v12  ;;  %v4271_v39 = vpop.xlane.xlu0 %1650 }
 0x414   : > { %vm1652_vm3 = vcmp.eq.f32.partialorder %v4140_v51, %v4271_v39  ;;  %v1678_v51 = vcvt.s32.f32 %v1676_v37 }
 0x415   : > { %v1653_v13 = vsel %vm1652_vm3, %v1648_v59, inf  ;;  %v1723_v59 = vcvt.s32.f32 %v1721_v18  ;;  %v1706_v18 = vand.u32 65535, %v4136_v42  ;;  %v1633_v42 = vcvt.s32.f32 %v1631_v20 }
 0x416   : > { %1654 = vmin.xlane.f32.xlu1 %v1653_v13  ;;  %v4278_v1 = vpop.xlane.xlu2 %1710  ;;  %v1683_v11 = vsel %vm1682_vm4, %v1678_v51, inf  ;;  %vm1952_vm3 = vcmask 48128  }
 0x417   : > { %vm1712_vm7 = vcmp.eq.f32.partialorder %v4145_v34, %v4278_v1  ;;  %v1708_v50 = vcvt.s32.f32 %v1706_v18 }
 0x419   : > { %v1713_v62 = vsel %vm1712_vm7, %v1708_v50, inf }
 0x41e   : > { %1669 = vmin.xlane.f32.xlu1 %v1668_v58  ;;  %v1691_v58 = vand.u32 65535, %v4112_v35  ;;  %v4299_v35 = vpop.xlane.xlu1 %1635 }
 0x41f   : > { %vm1637_vm11 = vcmp.eq.f32.partialorder %v4124_v36, %v4299_v35  ;;  %v1768_v36 = vcvt.s32.f32 %v1766_v53 }
 0x420   : > { %v1693_v63 = vcvt.s32.f32 %v1691_v58  ;;  %v1638_v34 = vsel %vm1637_vm11, %v1633_v42, inf  ;;  %v1796_v42 = vand.u32 65535, %v4261_v0 }
 0x422   : > { %v1698_v37 = vsel %vm1697_vm6, %v1693_v63, inf }
 0x425   : > { %v4284_v52 = vpop.xlane.xlu2 %1725 }
 0x426   : > { %vm1727_vm9 = vcmp.eq.f32.partialorder %v4164_v23, %v4284_v52  ;;  %1684 = vmin.xlane.f32.xlu1 %v1683_v11  ;;  %v1751_v23 = vand.u32 65535, %v4182_v38  ;;  %v1736_v38 = vand.u32 65535, %v4167_v7 }
 0x427   : > { %v1728_v3 = vsel %vm1727_vm9, %v1723_v59, inf }
 0x428   : > { %1914 = vrot.lane.b32.xlu2 %v4117_v9, %s2764_s7  ;;  %1729 = vmin.xlane.f32.xlu0 %v1728_v3  ;;  %v1753_v32 = vcvt.s32.f32 %v1751_v23  ;;  %v4306_v51 = vpop.xlane.xlu1 %1740  ;;  %v1738_v59 = vcvt.s32.f32 %v1736_v38 }
 0x429   : > { %vm1742_vm12 = vcmp.eq.f32.partialorder %v4171_v24, %v4306_v51 }
 0x42a   : > { %v1743_v11 = vsel %vm1742_vm12, %v1738_v59, inf }
 0x42e   : > { %1699 = vmin.xlane.f32.xlu1 %v1698_v37 }
 0x436   : > { %1714 = vmin.xlane.f32.xlu1 %v1713_v62  ;;  %v1612_v62 = vcvt.f32.s32 %v4228_v5  ;;  %v1798_v5 = vcvt.s32.f32 %v1796_v42  ;;  %v1717_v42 = vcvt.f32.s32 %v4278_v1 }
 0x448   : > { %v4297_v13 = vpop.xlane.xlu0 %1755 }
 0x449   : > { %vm1757_vm8 = vcmp.eq.f32.partialorder %v4185_v33, %v4297_v13  ;;  %v1781_v33 = vand.u32 65535, %v4207_v56  ;;  %v1813_v56 = vcvt.s32.f32 %v1811_v61 }
 0x44a   : > { %v1758_v19 = vsel %vm1757_vm8, %v1753_v32, inf  ;;  %v1826_v32 = vand.u32 65535, %v4248_v40 }
 0x44b   : > { %1759 = vmin.xlane.f32.xlu1 %v1758_v19  ;;  %v1783_v7 = vcvt.s32.f32 %v1781_v33 }
 0x44c   : > { %v1828_v25 = vcvt.s32.f32 %v1826_v32  ;;  %v1672_v32 = vcvt.f32.s32 %v4235_v14  ;;  %v1718_v14 = vshll.u32 %v1717_v42, 16 }
 0x451   : > { %1639 = vmin.xlane.f32.xlu2 %v1638_v34  ;;  %v1657_v34 = vcvt.f32.s32 %v4271_v39 }
 0x459   : > { %1744 = vmin.xlane.f32.xlu2 %v1743_v11 }
 0x468   : > { %v4313_v3 = vpop.xlane.xlu2 %1770 }
 0x469   : > { %vm1772_vm13 = vcmp.eq.f32.partialorder %v4209_v21, %v4313_v3  ;;  %v4317_v58 = vpop.xlane.xlu1 %1785 }
 0x46a   : > { %v1773_v63 = vsel %vm1772_vm13, %v1768_v36, inf  ;;  %vm1787_vm14 = vcmp.eq.f32.partialorder %v4215_v30, %v4317_v58  ;;  %v1613_v30 = vshll.u32 %v1612_v62, 16 }
 0x46b   : > { %1774 = vmin.xlane.f32.xlu0 %v1773_v63  ;;  %v1788_v24 = vsel %vm1787_vm14, %v1783_v7, inf  ;;  %v1702_v63 = vcvt.f32.s32 %v4268_v28 }
 0x46c   : > { %1789 = vmin.xlane.f32.xlu2 %v1788_v24 }
 0x46d   : > { %v1703_v24 = vshll.u32 %v1702_v63, 16 }
 0x471   : > { %v4322_v37 = vpop.xlane.xlu1 %1815 }
 0x472   : > { %vm1817_vm15 = vcmp.eq.f32.partialorder %v4230_v31, %v4322_v37 }
 0x473   : > { %v1610_v18 = vpop.xlane.xlu2 %1609  ;;  %v1818_v21 = vsel %vm1817_vm15, %v1813_v56, inf }
 0x474   : > { %1819 = vmin.xlane.f32.xlu1 %v1818_v21  ;;  %v1611_v23 = vcvt.f32.s32 %v1610_v18  ;;  %v1627_v18 = vcvt.f32.s32 %v4243_v44  ;;  %v1673_v44 = vshll.u32 %v1672_v32, 16 }
 0x476   : > { %v4328_v20 = vadd.s32 %v1613_v30, %v1611_v23  ;;  %v1628_v23 = vshll.u32 %v1627_v18, 16 }
 0x478   : > { %vm1856_vm1 = vcmp.eq.s32.totalorder %v3608_v45, %v4328_v20 }
 0x479   : > { %v4343_v0 = vsel %vm1856_vm1, -inf, %v3995_v57  ;;  %vm2305_vm1 = vcmask 72704  }
 0x47a   : > { %v1953_v39 = vsel %vm1952_vm3, %v4343_v0, -inf }
 0x47b   : > { %v1625_v50 = vpop.xlane.xlu2 %1624 }
 0x47c   : > { %v1626_v21 = vcvt.f32.s32 %v1625_v50 }
 0x47e   : > { %v4371_v28 = vadd.s32 %v1628_v23, %v1626_v21  ;;  %v1732_v23 = vcvt.f32.s32 %v4284_v52 }
 0x480   : > { %vm1857_vm9 = vcmp.eq.s32.totalorder %v3608_v45, %v4371_v28 }
 0x483   : > { %v4330_v19 = vpop.xlane.xlu2 %1830 }
 0x484   : > { %vm1832_vm0 = vcmp.eq.f32.partialorder %v4258_v29, %v4330_v19  ;;  %v1658_v29 = vshll.u32 %v1657_v34, 16 }
 0x485   : > { %v1833_v31 = vsel %vm1832_vm0, %v1828_v25, inf  ;;  %v4377_v25 = vsel %vm1857_vm9, -inf, %v3999_v26 }
 0x486   : > { %1834 = vmin.xlane.f32.xlu2 %v1833_v31  ;;  %v4336_v38 = vpop.xlane.xlu0 %1800  ;;  %v1956_v31 = vsel %vm1952_vm3, %v4377_v25, -inf }
 0x487   : > { %vm1802_vm2 = vcmp.eq.f32.partialorder %v4266_v12, %v4336_v38 }
 0x488   : > { %v1803_v40 = vsel %vm1802_vm2, %v1798_v5, inf }
 0x489   : > { %v1655_v59 = vpop.xlane.xlu1 %1654  ;;  %1804 = vmin.xlane.f32.xlu0 %v1803_v40 }
 0x48a   : > { %v1656_v11 = vcvt.f32.s32 %v1655_v59  ;;  %v1762_v59 = vcvt.f32.s32 %v4297_v13 }
 0x48b   : > { %v4386_v5 = vpop.permute.xlu2 %1914 }
 0x48c   : > { %v4345_v53 = vadd.s32 %v1658_v29, %v1656_v11  ;;  %v1642_v11 = vcvt.f32.s32 %v4299_v35 }
 0x48d   : > { %1916 = vrot.lane.b32.xlu1 %v4042_v49, %s2764_s7 }
 0x48e   : > { %1954 = vmax.xlane.f32.xlu2 %v1953_v39  ;;  %vm1859_vm10 = vcmp.eq.s32.totalorder %v3608_v45, %v4345_v53 }
 0x48f   : > { %v4354_v12 = vsel %vm1859_vm10, -inf, %v4012_v10  ;;  %vm2322_vm10 = vcmask 80896  }
 0x490   : > { %v1962_v33 = vsel %vm1952_vm3, %v4354_v12, -inf }
 0x491   : > { %v1670_v57 = vpop.xlane.xlu1 %1669 }
 0x492   : > { %v1671_v30 = vcvt.f32.s32 %v1670_v57  ;;  %v1687_v57 = vcvt.f32.s32 %v4250_v27 }
 0x494   : > { %v1688_v18 = vshll.u32 %v1687_v57, 16 }
 0x496   : > { %1963 = vmax.xlane.f32.xlu2 %v1962_v33  ;;  %v1763_v33 = vshll.u32 %v1762_v59, 16 }
 0x499   : > { %v1685_v36 = vpop.xlane.xlu1 %1684 }
 0x49a   : > { %v1686_v13 = vcvt.f32.s32 %v1685_v36 }
 0x49c   : > { %v4410_v27 = vadd.s32 %v1688_v18, %v1686_v13 }
 0x49d   : > { %1918 = vrot.lane.b32.xlu0 %v4047_v15, %s2764_s7 }
 0x49e   : > { %vm1861_vm12 = vcmp.eq.s32.totalorder %v3608_v45, %v4410_v27 }
 0x49f   : > { %v4432_v52 = vsel %vm1861_vm12, -inf, %v4031_v6 }
 0x4a1   : > { %v1700_v7 = vpop.xlane.xlu1 %1699 }
 0x4a2   : > { %v1701_v61 = vcvt.f32.s32 %v1700_v7  ;;  %v1643_v7 = vshll.u32 %v1642_v11, 16  ;;  %v1792_v11 = vcvt.f32.s32 %v4317_v58 }
 0x4a4   : > { %v4361_v56 = vadd.s32 %v1703_v24, %v1701_v61 }
 0x4a6   : > { %vm1862_vm4 = vcmp.eq.s32.totalorder %v3608_v45, %v4361_v56 }
 0x4a7   : > { %v4367_v10 = vsel %vm1862_vm4, -inf, %v4077_v16  ;;  %v4379_v16 = vadd.s32 %v1673_v44, %v1671_v30 }
 0x4a8   : > { %v1971_v62 = vsel %vm1952_vm3, %v4367_v10, -inf }
 0x4a9   : > { %1972 = vmax.xlane.f32.xlu2 %v1971_v62  ;;  %v1715_v50 = vpop.xlane.xlu1 %1714  ;;  %vm1860_vm6 = vcmp.eq.s32.totalorder %v3608_v45, %v4379_v16  ;;  %v1747_v62 = vcvt.f32.s32 %v4306_v51 }
 0x4aa   : > { %v1716_v34 = vcvt.f32.s32 %v1715_v50  ;;  %v4389_v40 = vsel %vm1860_vm6, -inf, %v4055_v54 }
 0x4ab   : > { %v1965_v1 = vsel %vm1952_vm3, %v4389_v40, -inf  ;;  %v1748_v44 = vshll.u32 %v1747_v62, 16 }
 0x4ac   : > { %v4391_v26 = vadd.s32 %v1718_v14, %v1716_v34 }
 0x4ae   : > { %vm1863_vm7 = vcmp.eq.s32.totalorder %v3608_v45, %v4391_v26 }
 0x4af   : > { %v4401_v63 = vsel %vm1863_vm7, -inf, %v4148_v41  ;;  %v1730_v41 = vpop.xlane.xlu0 %1729 }
 0x4b0   : > { %v1974_v35 = vsel %vm1952_vm3, %v4401_v63, -inf  ;;  %v1731_v50 = vcvt.f32.s32 %v1730_v41  ;;  %v1822_v41 = vcvt.f32.s32 %v4322_v37  ;;  %v2289_v37 = vsel %vm1130_vm5, %v3912_v60, %v3997_v4 }
 0x4b7   : > { %1957 = vmax.xlane.f32.xlu1 %v1956_v31  ;;  %v1733_v31 = vshll.u32 %v1732_v23, 16 }
 0x4b9   : > { %v4434_v14 = vadd.s32 %v1733_v31, %v1731_v50 }
 0x4bb   : > { %vm1864_vm14 = vcmp.eq.s32.totalorder %v3608_v45, %v4434_v14 }
 0x4bc   : > { %v4448_v6 = vsel %vm1864_vm14, -inf, %v4143_v48 }
 0x4be   : > { %v1760_v29 = vpop.xlane.xlu1 %1759 }
 0x4bf   : > { %1966 = vmax.xlane.f32.xlu1 %v1965_v1  ;;  %v1761_v39 = vcvt.f32.s32 %v1760_v29  ;;  %v1968_v1 = vsel %vm1952_vm3, %v4432_v52, -inf  ;;  %v1777_v29 = vcvt.f32.s32 %v4313_v3 }
 0x4c1   : > { %v4403_v24 = vadd.s32 %v1763_v33, %v1761_v39  ;;  %v1778_v57 = vshll.u32 %v1777_v29, 16 }
 0x4c3   : > { %vm1866_vm11 = vcmp.eq.s32.totalorder %v3608_v45, %v4403_v24 }
 0x4c4   : > { %v1640_v54 = vpop.xlane.xlu2 %1639  ;;  %v4423_v51 = vsel %vm1866_vm11, -inf, %v4190_v2 }
 0x4c5   : > { %v1641_v61 = vcvt.f32.s32 %v1640_v54 }
 0x4c7   : > { %v4405_v21 = vadd.s32 %v1643_v7, %v1641_v61  ;;  %1975 = vmax.xlane.f32.xlu1 %v1974_v35  ;;  %v1793_v7 = vshll.u32 %v1792_v11, 16 }
 0x4c9   : > { %vm1858_vm8 = vcmp.eq.s32.totalorder %v3608_v45, %v4405_v21 }
 0x4ca   : > { %v4417_v36 = vsel %vm1858_vm8, -inf, %v4008_v46  ;;  %v1983_v46 = vsel %vm1952_vm3, %v4423_v51, -inf }
 0x4cb   : > { %v1959_v32 = vsel %vm1952_vm3, %v4417_v36, -inf }
 0x4cc   : > { %v1745_v30 = vpop.xlane.xlu2 %1744  ;;  %1960 = vmax.xlane.f32.xlu0 %v1959_v32  ;;  %v1823_v32 = vshll.u32 %v1822_v41, 16 }
 0x4cd   : > { %v1746_v42 = vcvt.f32.s32 %v1745_v30  ;;  %v1807_v30 = vcvt.f32.s32 %v4336_v38 }
 0x4cf   : > { %v4427_v34 = vadd.s32 %v1748_v44, %v1746_v42  ;;  %1984 = vmax.xlane.f32.xlu1 %v1983_v46  ;;  %v1808_v42 = vshll.u32 %v1807_v30, 16 }
 0x4d1   : > { %vm1865_vm13 = vcmp.eq.s32.totalorder %v3608_v45, %v4427_v34 }
 0x4d2   : > { %v4439_v2 = vsel %vm1865_vm13, -inf, %v4174_v55  ;;  %v1977_v55 = vsel %vm1952_vm3, %v4448_v6, -inf }
 0x4d3   : > { %v1980_v59 = vsel %vm1952_vm3, %v4439_v2, -inf }
 0x4d4   : > { %1981 = vmax.xlane.f32.xlu2 %v1980_v59  ;;  %1969 = vmax.xlane.f32.xlu0 %v1968_v1  ;;  %v1840_v59 = vcvt.s32.f32 %v4328_v20 }
 0x4dc   : > { %1978 = vmax.xlane.f32.xlu0 %v1977_v55 }
 0x4de   : > { %v1775_v39 = vpop.xlane.xlu0 %1774 }
 0x4df   : > { %v1776_v33 = vcvt.f32.s32 %v1775_v39  ;;  %v1790_v54 = vpop.xlane.xlu2 %1789 }
 0x4e0   : > { %v1791_v61 = vcvt.f32.s32 %v1790_v54  ;;  %v2292_v54 = vsel %vm1130_vm5, %v3933_v47, %v4025_v22 }
 0x4e1   : > { %v4454_v13 = vadd.s32 %v1778_v57, %v1776_v33 }
 0x4e2   : > { %v4456_v18 = vadd.s32 %v1793_v7, %v1791_v61  ;;  %v1843_v7 = vcvt.s32.f32 %v4345_v53 }
 0x4e3   : > { %vm1867_vm15 = vcmp.eq.s32.totalorder %v3608_v45, %v4454_v13 }
 0x4e4   : > { %v4461_v48 = vsel %vm1867_vm15, -inf, %v4188_v17  ;;  %vm1868_vm0 = vcmp.eq.s32.totalorder %v3608_v45, %v4456_v18 }
 0x4e5   : > { %v1986_v3 = vsel %vm1952_vm3, %v4461_v48, -inf  ;;  %v4468_v58 = vsel %vm1868_vm0, -inf, %v4240_v43 }
 0x4e6   : > { %1987 = vmax.xlane.f32.xlu0 %v1986_v3  ;;  %v1989_v35 = vsel %vm1952_vm3, %v4468_v58, -inf }
 0x4e7   : > { %1990 = vmax.xlane.f32.xlu2 %v1989_v35  ;;  %v1820_v62 = vpop.xlane.xlu1 %1819 }
 0x4e8   : > { %v1821_v23 = vcvt.f32.s32 %v1820_v62 }
 0x4ea   : > { %v4474_v44 = vadd.s32 %v1823_v32, %v1821_v23  ;;  %v5150_v32 = vld [vmem:[#allocation18_spill] sm:$0xff] }
 0x4eb   : > { %v2295_v30 = vsel %vm1130_vm5, %v5150_v32, %v4079_v8  ;;  %v5151_v8 = vld [vmem:[#allocation15_spill] sm:$0xff] }
 0x4ec   : > { %vm1870_vm2 = vcmp.eq.s32.totalorder %v3608_v45, %v4474_v44 }
 0x4f9   : > { %v1835_v17 = vpop.xlane.xlu2 %1834 }
 0x4fa   : > { %v1836_v57 = vcvt.f32.s32 %v1835_v17 }
 0x4fc   : > { %v1805_v50 = vpop.xlane.xlu0 %1804 }
 0x4fd   : > { %v1806_v31 = vcvt.f32.s32 %v1805_v50  ;;  %v1846_v50 = vcvt.s32.f32 %v4361_v56  ;;  %v5152_v56 = vld [vmem:[#allocation11_spill] sm:$0xff] }
 0x4ff   : > { %v1917_v43 = vpop.permute.xlu1 %1916  ;;  %v4478_v46 = vadd.s32 %v1808_v42, %v1806_v31 }
 0x500   : > { %v4484_v38 = vsel %vm1870_vm2, -inf, %v1917_v43 }
 0x501   : > { %v1955_v1 = vpop.xlane.xlu2 %1954  ;;  %v1995_v55 = vsel %vm1952_vm3, %v4484_v38, -inf  ;;  %vm1869_vm9 = vcmp.eq.s32.totalorder %v3608_v45, %v4478_v46 }
 0x502   : > { %vm2001_vm4 = vcmp.eq.f32.partialorder %v4343_v0, %v1955_v1  ;;  %v2306_v29 = vsel %vm2305_vm1, %v2289_v37, %v1955_v1  ;;  %1996 = vmax.xlane.f32.xlu0 %v1995_v55  ;;  %v4497_v60 = vsel %vm1869_vm9, -inf, %v4386_v5  ;;  %v1837_v0 = vcvt.f32.s32 %v4330_v19 }
 0x503   : > { %v2017_v11 = vsel %vm2001_vm4, %v3608_v45, 6  ;;  %v4492_v39 = vsel %vm2322_vm10, %v2306_v29, %v1840_v59  ;;  %v1992_v4 = vsel %vm1952_vm3, %v4497_v60, -inf  ;;  %v1841_v55 = vcvt.s32.f32 %v4371_v28 }
 0x504   : > { %v4502_v20 = vsel %vm1952_vm3, %v2017_v11, 2147483647  ;;  %1993 = vmax.xlane.f32.xlu1 %v1992_v4  ;;  %v1838_v61 = vshll.u32 %v1837_v0, 16 }
 0x505   : > { %v2035_v33 = vshra.s32 %v4502_v20, 16 }
 0x506   : > { %v4516_v62 = vadd.s32 %v1838_v61, %v1836_v57  ;;  %v5154_v61 = vld [vmem:[#allocation22_spill] sm:$0xff] }
 0x507   : > { %v4518_v41 = vcvt.s32.f32 %v2035_v33 }
 0x508   : > { %vm1871_vm7 = vcmp.eq.s32.totalorder %v3608_v45, %v4516_v62 }
 0x509   : > { %v1964_v5 = vpop.xlane.xlu2 %1963 }
 0x50a   : > { %vm2004_vm6 = vcmp.eq.f32.partialorder %v4354_v12, %v1964_v5  ;;  %v2309_v3 = vsel %vm2305_vm1, %v2292_v54, %v1964_v5  ;;  %v5153_v5 = vld [vmem:[#allocation9_spill] sm:$0xff] }
 0x50b   : > { %v2020_v35 = vsel %vm2004_vm6, %v3608_v45, 6  ;;  %v4514_v19 = vsel %vm2322_vm10, %v2309_v3, %v1843_v7  ;;  %v2293_v28 = vsel %vm1130_vm5, %v5154_v61, %v5153_v5 }
 0x50c   : > { %v4521_v23 = vsel %vm1952_vm3, %v2020_v35, 2147483647  ;;  %2038 = vmin.xlane.f32.xlu1 %v4518_v41 }
 0x50d   : > { %v2080_v47 = vshra.s32 %v4521_v23, 16 }
 0x50f   : > { %v4525_v22 = vcvt.s32.f32 %v2080_v47  ;;  %v1919_v53 = vpop.permute.xlu0 %1918 }
 0x510   : > { %v4530_v12 = vsel %vm1871_vm7, -inf, %v1919_v53 }
 0x511   : > { %2083 = vmin.xlane.f32.xlu0 %v4525_v22  ;;  %v1998_v17 = vsel %vm1952_vm3, %v4530_v12, -inf }
 0x512   : > { %1999 = vmax.xlane.f32.xlu2 %v1998_v17 }
 0x51c   : > { %v1973_v42 = vpop.xlane.xlu2 %1972 }
 0x51d   : > { %vm2007_vm8 = vcmp.eq.f32.partialorder %v4367_v10, %v1973_v42  ;;  %v2312_v31 = vsel %vm2305_vm1, %v2295_v30, %v1973_v42  ;;  %v2290_v10 = vsel %vm1130_vm5, %v5152_v56, %v5151_v8 }
 0x51e   : > { %v2023_v43 = vsel %vm2007_vm8, %v3608_v45, 6  ;;  %v4542_v37 = vsel %vm2322_vm10, %v2312_v31, %v1846_v50  ;;  %v5156_v50 = vld [vmem:[#allocation21_spill] sm:$0xff] }
 0x51f   : > { %v4545_v59 = vsel %vm1952_vm3, %v2023_v43, 2147483647 }
 0x520   : > { %v2125_v1 = vshra.s32 %v4545_v59, 16 }
 0x522   : > { %v4548_v29 = vcvt.s32.f32 %v2125_v1 }
 0x524   : > { %2128 = vmin.xlane.f32.xlu0 %v4548_v29 }
 0x52a   : > { %v1958_v11 = vpop.xlane.xlu1 %1957 }
 0x52b   : > { %vm2002_vm11 = vcmp.eq.f32.partialorder %v4377_v25, %v1958_v11  ;;  %v2307_v4 = vsel %vm2305_vm1, %v2290_v10, %v1958_v11  ;;  %v1844_v25 = vcvt.s32.f32 %v4379_v16  ;;  %v5155_v16 = vld [vmem:[#allocation7_spill] sm:$0xff]  ;;  %v5157_v10 = vld [vmem:[#allocation33_spill] sm:$0xff] }
 0x52c   : > { %v2018_v0 = vsel %vm2002_vm11, %v3608_v45, 6  ;;  %v4559_v57 = vsel %vm2322_vm10, %v2307_v4, %v1841_v55  ;;  %v2296_v42 = vsel %vm1130_vm5, %v5156_v50, %v5155_v16  ;;  %v5158_v55 = vld [vmem:[#allocation19_spill] sm:$0xff] }
 0x52d   : > { %v4562_v33 = vsel %vm1952_vm3, %v2018_v0, 2147483647  ;;  %v2291_v11 = vsel %vm1130_vm5, %v5158_v55, %v5157_v10  ;;  %v5164_v10 = vld [vmem:[#allocation24_spill] sm:$0xff]  ;;  %v1845_v55 = vcvt.s32.f32 %v4410_v27 }
 0x52e   : > { %v2050_v54 = vshra.s32 %v4562_v33, 16 }
 0x530   : > { %v4565_v7 = vcvt.s32.f32 %v2050_v54 }
 0x532   : > { %v1967_v3 = vpop.xlane.xlu1 %1966  ;;  %2053 = vmin.xlane.f32.xlu2 %v4565_v7 }
 0x533   : > { %vm2005_vm12 = vcmp.eq.f32.partialorder %v4389_v40, %v1967_v3  ;;  %v2310_v35 = vsel %vm2305_vm1, %v2293_v28, %v1967_v3  ;;  %v1847_v40 = vcvt.s32.f32 %v4391_v26  ;;  %v1842_v26 = vcvt.s32.f32 %v4405_v21  ;;  %v5160_v3 = vld [vmem:[#allocation34_spill] sm:$0xff] }
 0x534   : > { %v2021_v47 = vsel %vm2005_vm12, %v3608_v45, 6  ;;  %v4576_v53 = vsel %vm2322_vm10, %v2310_v35, %v1844_v25  ;;  %v5159_v25 = vld [vmem:[#allocation5_spill] sm:$0xff]  ;;  %v1850_v35 = vcvt.s32.f32 %v4403_v24 }
 0x535   : > { %v4579_v17 = vsel %vm1952_vm3, %v2021_v47, 2147483647  ;;  %v2299_v21 = vsel %vm1130_vm5, %v5160_v3, %v5159_v25 }
 0x536   : > { %v2095_v32 = vshra.s32 %v4579_v17, 16 }
 0x538   : > { %v4582_v30 = vcvt.s32.f32 %v2095_v32 }
 0x53a   : > { %v1976_v31 = vpop.xlane.xlu1 %1975  ;;  %2098 = vmin.xlane.f32.xlu2 %v4582_v30 }
 0x53b   : > { %vm2008_vm13 = vcmp.eq.f32.partialorder %v4401_v63, %v1976_v31  ;;  %v2313_v43 = vsel %vm2305_vm1, %v2296_v42, %v1976_v31  ;;  %v5162_v31 = vld [vmem:[#allocation23_spill] sm:$0xff] }
 0x53c   : > { %v2024_v1 = vsel %vm2008_vm13, %v3608_v45, 6  ;;  %v4593_v8 = vsel %vm2322_vm10, %v2313_v43, %v1847_v40  ;;  %v5161_v40 = vld [vmem:[#allocation20_spill] sm:$0xff] }
 0x53d   : > { %v4596_v56 = vsel %vm1952_vm3, %v2024_v1, 2147483647  ;;  %v2294_v24 = vsel %vm1130_vm5, %v5162_v31, %v5161_v40  ;;  %v5163_v1 = vld [vmem:[#allocation25_spill] sm:$0xff]  ;;  %v5166_v40 = vld [vmem:[#allocation16_spill] sm:$0xff] }
 0x53e   : > { %v2140_v0 = vshra.s32 %v4596_v56, 16 }
 0x53f   : > { %v1961_v4 = vpop.xlane.xlu0 %1960 }
 0x540   : > { %vm2003_vm14 = vcmp.eq.f32.partialorder %v4417_v36, %v1961_v4  ;;  %v2308_v63 = vsel %vm2305_vm1, %v2291_v11, %v1961_v4  ;;  %v4609_v61 = vcvt.s32.f32 %v2140_v0  ;;  %v1849_v11 = vcvt.s32.f32 %v4427_v34 }
 0x541   : > { %v2019_v54 = vsel %vm2003_vm14, %v3608_v45, 6  ;;  %v4607_v5 = vsel %vm2322_vm10, %v2308_v63, %v1842_v26 }
 0x542   : > { %v4612_v28 = vsel %vm1952_vm3, %v2019_v54, 2147483647  ;;  %v1985_v47 = vpop.xlane.xlu1 %1984  ;;  %2143 = vmin.xlane.f32.xlu2 %v4609_v61 }
 0x543   : > { %v2065_v36 = vshra.s32 %v4612_v28, 16  ;;  %vm2011_vm15 = vcmp.eq.f32.partialorder %v4423_v51, %v1985_v47  ;;  %v2316_v32 = vsel %vm2305_vm1, %v2299_v21, %v1985_v47  ;;  %v2298_v51 = vsel %vm1130_vm5, %v5164_v10, %v5163_v1 }
 0x544   : > { %v2027_v16 = vsel %vm2011_vm15, %v3608_v45, 6  ;;  %v4624_v50 = vsel %vm2322_vm10, %v2316_v32, %v1850_v35 }
 0x545   : > { %v4626_v42 = vcvt.s32.f32 %v2065_v36  ;;  %v4632_v43 = vsel %vm1952_vm3, %v2027_v16, 2147483647  ;;  %v5165_v16 = vld [vmem:[#allocation12_spill] sm:$0xff] }
 0x546   : > { %v2185_v0 = vshra.s32 %v4632_v43, 16  ;;  %v2297_v31 = vsel %vm1130_vm5, %v5166_v40, %v5165_v16  ;;  %v1852_v16 = vcvt.s32.f32 %v4456_v18 }
 0x547   : > { %v1982_v26 = vpop.xlane.xlu2 %1981  ;;  %2068 = vmin.xlane.f32.xlu1 %v4626_v42  ;;  %v1970_v4 = vpop.xlane.xlu0 %1969 }
 0x548   : > { %vm2010_vm0 = vcmp.eq.f32.partialorder %v4439_v2, %v1982_v26  ;;  %v2315_v63 = vsel %vm2305_vm1, %v2298_v51, %v1982_v26  ;;  %vm2006_vm2 = vcmp.eq.f32.partialorder %v4432_v52, %v1970_v4  ;;  %v2311_v54 = vsel %vm2305_vm1, %v2294_v24, %v1970_v4  ;;  %v5167_v4 = vld [vmem:[#allocation30_spill] sm:$0xff] }
 0x549   : > { %v2026_v25 = vsel %vm2010_vm0, %v3608_v45, 6  ;;  %v4647_v27 = vsel %vm2322_vm10, %v2315_v63, %v1849_v11  ;;  %v2022_v34 = vsel %vm2006_vm2, %v3608_v45, 6  ;;  %v4651_v3 = vsel %vm2322_vm10, %v2311_v54, %v1845_v55 }
 0x54a   : > { %v4653_v21 = vcvt.s32.f32 %v2185_v0  ;;  %v4656_v2 = vsel %vm1952_vm3, %v2026_v25, 2147483647  ;;  %v4659_v35 = vsel %vm1952_vm3, %v2022_v34, 2147483647  ;;  %v1848_v24 = vcvt.s32.f32 %v4434_v14  ;;  %v5168_v0 = vld [vmem:[#allocation31_spill] sm:$0xff]  ;;  %v5169_v34 = vld [vmem:[#allocation28_spill] sm:$0xff] }
 0x54b   : > { %v2170_v52 = vshra.s32 %v4656_v2, 16  ;;  %v2110_v47 = vshra.s32 %v4659_v35, 16  ;;  %v1851_v63 = vcvt.s32.f32 %v4454_v13 }
 0x54c   : > { %2188 = vmin.xlane.f32.xlu2 %v4653_v21 }
 0x54d   : > { %v4664_v36 = vcvt.s32.f32 %v2170_v52  ;;  %v4666_v32 = vcvt.s32.f32 %v2110_v47  ;;  %v5170_v52 = vld [vmem:[#allocation8_spill] sm:$0xff] }
 0x54e   : > { %v2301_v47 = vsel %vm1130_vm5, %v5170_v52, %v5169_v34 }
 0x54f   : > { %2173 = vmin.xlane.f32.xlu0 %v4664_v36  ;;  %2113 = vmin.xlane.f32.xlu1 %v4666_v32  ;;  %v1979_v1 = vpop.xlane.xlu0 %1978 }
 0x550   : > { %vm2009_vm4 = vcmp.eq.f32.partialorder %v4448_v6, %v1979_v1  ;;  %v2314_v10 = vsel %vm2305_vm1, %v2297_v31, %v1979_v1  ;;  %v2300_v6 = vsel %vm1130_vm5, %v5168_v0, %v5167_v4  ;;  %v5171_v0 = vld [vmem:[#allocation29_spill] sm:$0xff] }
 0x551   : > { %v2025_v51 = vsel %vm2009_vm4, %v3608_v45, 6  ;;  %v4678_v55 = vsel %vm2322_vm10, %v2314_v10, %v1848_v24 }
 0x552   : > { %v4681_v11 = vsel %vm1952_vm3, %v2025_v51, 2147483647 }
 0x553   : > { %v2155_v26 = vshra.s32 %v4681_v11, 16 }
 0x555   : > { %v4684_v14 = vcvt.s32.f32 %v2155_v26 }
 0x557   : > { %2158 = vmin.xlane.f32.xlu1 %v4684_v14 }
 0x559   : > { %v1988_v54 = vpop.xlane.xlu0 %1987 }
 0x55a   : > { %vm2012_vm9 = vcmp.eq.f32.partialorder %v4461_v48, %v1988_v54  ;;  %v2317_v25 = vsel %vm2305_vm1, %v2300_v6, %v1988_v54  ;;  %v1991_v24 = vpop.xlane.xlu2 %1990  ;;  %v2303_v6 = vsel %vm1130_vm5, %v4042_v49, %v5171_v0 }
 0x55b   : > { %v2028_v40 = vsel %vm2012_vm9, %v3608_v45, 6  ;;  %v4699_v31 = vsel %vm2322_vm10, %v2317_v25, %v1851_v63  ;;  %vm2013_vm6 = vcmp.eq.f32.partialorder %v4468_v58, %v1991_v24  ;;  %v2318_v13 = vsel %vm2305_vm1, %v2301_v47, %v1991_v24  ;;  %v5172_v47 = vld [vmem:[#allocation13_spill] sm:$0xff] }
 0x55c   : > { %v4704_v48 = vsel %vm1952_vm3, %v2028_v40, 2147483647  ;;  %v2029_v1 = vsel %vm2013_vm6, %v3608_v45, 6  ;;  %v4708_v10 = vsel %vm2322_vm10, %v2318_v13, %v1852_v16  ;;  %v1854_v63 = vcvt.s32.f32 %v4474_v44 }
 0x55d   : > { %v2200_v18 = vshra.s32 %v4704_v48, 16  ;;  %v4712_v51 = vsel %vm1952_vm3, %v2029_v1, 2147483647  ;;  %v2302_v16 = vsel %vm1130_vm5, %v4117_v9, %v5172_v47  ;;  %v1853_v40 = vcvt.s32.f32 %v4478_v46 }
 0x55e   : > { %v2215_v4 = vshra.s32 %v4712_v51, 16 }
 0x55f   : > { %v4714_v26 = vcvt.s32.f32 %v2200_v18 }
 0x560   : > { %v4718_v58 = vcvt.s32.f32 %v2215_v4  ;;  %v2034_v4 = vand.u32 65535, %v4502_v20  ;;  %v1855_v20 = vcvt.s32.f32 %v4516_v62  ;;  %v2079_v62 = vand.u32 65535, %v4521_v23 }
 0x561   : > { %2203 = vmin.xlane.f32.xlu1 %v4714_v26 }
 0x562   : > { %2218 = vmin.xlane.f32.xlu0 %v4718_v58 }
 0x575   : > { %v1997_v54 = vpop.xlane.xlu0 %1996 }
 0x576   : > { %vm2015_vm7 = vcmp.eq.f32.partialorder %v4484_v38, %v1997_v54  ;;  %v2320_v25 = vsel %vm2305_vm1, %v2303_v6, %v1997_v54  ;;  %v2036_v6 = vcvt.s32.f32 %v2034_v4  ;;  %v5173_v54 = vld [vmem:[#allocation32_spill] sm:$0xff] }
 0x577   : > { %v2031_v34 = vsel %vm2015_vm7, %v3608_v45, 6  ;;  %v4729_v52 = vsel %vm2322_vm10, %v2320_v25, %v1854_v63  ;;  %v1994_v24 = vpop.xlane.xlu1 %1993  ;;  %v2304_v25 = vsel %vm1130_vm5, %v4047_v15, %v5173_v54 }
 0x578   : > { %v4736_v49 = vsel %vm1952_vm3, %v2031_v34, 2147483647  ;;  %vm2014_vm8 = vcmp.eq.f32.partialorder %v4497_v60, %v1994_v24  ;;  %v2319_v44 = vsel %vm2305_vm1, %v2302_v16, %v1994_v24 }
 0x579   : > { %v2245_v38 = vshra.s32 %v4736_v49, 16  ;;  %v2030_v13 = vsel %vm2014_vm8, %v3608_v45, 6  ;;  %v4743_v1 = vsel %vm2322_vm10, %v2319_v44, %v1853_v40 }
 0x57a   : > { %v4748_v9 = vsel %vm1952_vm3, %v2030_v13, 2147483647 }
 0x57b   : > { %v4745_v18 = vcvt.s32.f32 %v2245_v38  ;;  %v2230_v46 = vshra.s32 %v4748_v9, 16  ;;  %v2124_v38 = vand.u32 65535, %v4545_v59  ;;  %v2094_v59 = vand.u32 65535, %v4579_v17 }
 0x57d   : > { %2248 = vmin.xlane.f32.xlu1 %v4745_v18  ;;  %v4753_v60 = vcvt.s32.f32 %v2230_v46  ;;  %v2126_v46 = vcvt.s32.f32 %v2124_v38 }
 0x57f   : > { %v4755_v0 = vpop.xlane.xlu1 %2038  ;;  %2233 = vmin.xlane.f32.xlu2 %v4753_v60 }
 0x580   : > { %vm2040_vm11 = vcmp.eq.f32.partialorder %v4518_v41, %v4755_v0 }
 0x581   : > { %v2041_v63 = vsel %vm2040_vm11, %v2036_v6, inf  ;;  %v2049_v6 = vand.u32 65535, %v4562_v33  ;;  %v2139_v33 = vand.u32 65535, %v4596_v56  ;;  %v2109_v56 = vand.u32 65535, %v4659_v35 }
 0x582   : > { %2042 = vmin.xlane.f32.xlu0 %v2041_v63  ;;  %vm2339_vm11 = vcmask 89088  }
 0x583   : > { %v2051_v23 = vcvt.s32.f32 %v2049_v6 }
 0x584   : > { %v4777_v15 = vpop.xlane.xlu0 %2083 }
 0x585   : > { %v2000_v34 = vpop.xlane.xlu2 %1999  ;;  %vm2085_vm5 = vcmp.eq.f32.partialorder %v4525_v22, %v4777_v15 }
 0x586   : > { %vm2016_vm12 = vcmp.eq.f32.partialorder %v4530_v12, %v2000_v34  ;;  %v2321_v47 = vsel %vm2305_vm1, %v2304_v25, %v2000_v34  ;;  %v2096_v25 = vcvt.s32.f32 %v2094_v59  ;;  %v2141_v34 = vcvt.s32.f32 %v2139_v33 }
 0x587   : > { %v2032_v16 = vsel %vm2016_vm12, %v3608_v45, 6  ;;  %v4768_v40 = vsel %vm2322_vm10, %v2321_v47, %v1855_v20  ;;  %v2081_v45 = vcvt.s32.f32 %v2079_v62  ;;  %v2064_v47 = vand.u32 65535, %v4612_v28 }
 0x588   : > { %v4771_v41 = vsel %vm1952_vm3, %v2032_v16, 2147483647  ;;  %v2169_v62 = vand.u32 65535, %v4656_v2  ;;  %vm2356_vm12 = vcmask 97280  }
 0x589   : > { %v2260_v24 = vshra.s32 %v4771_v41, 16  ;;  %v2086_v12 = vsel %vm2085_vm5, %v2081_v45, inf  ;;  %v2066_v16 = vcvt.s32.f32 %v2064_v47 }
 0x58b   : > { %v4774_v44 = vcvt.s32.f32 %v2260_v24 }
 0x58d   : > { %2263 = vmin.xlane.f32.xlu0 %v4774_v44 }
 0x595   : > { %2087 = vmin.xlane.f32.xlu0 %v2086_v12 }
 0x597   : > { %v4783_v13 = vpop.xlane.xlu0 %2128 }
 0x598   : > { %vm2130_vm3 = vcmp.eq.f32.partialorder %v4548_v29, %v4783_v13 }
 0x599   : > { %v2131_v4 = vsel %vm2130_vm3, %v2126_v46, inf }
 0x59d   : > { %2132 = vmin.xlane.f32.xlu0 %v2131_v4 }
 0x5a5   : > { %v4788_v63 = vpop.xlane.xlu2 %2053 }
 0x5a6   : > { %vm2055_vm1 = vcmp.eq.f32.partialorder %v4565_v7, %v4788_v63 }
 0x5a7   : > { %v2056_v22 = vsel %vm2055_vm1, %v2051_v23, inf  ;;  %v2199_v23 = vand.u32 65535, %v4704_v48  ;;  %v2244_v48 = vand.u32 65535, %v4736_v49 }
 0x5a8   : > { %2057 = vmin.xlane.f32.xlu2 %v2056_v22 }
 0x5a9   : > { %v2246_v33 = vcvt.s32.f32 %v2244_v48 }
 0x5ad   : > { %v4793_v54 = vpop.xlane.xlu2 %2098 }
 0x5ae   : > { %vm2100_vm10 = vcmp.eq.f32.partialorder %v4582_v30, %v4793_v54  ;;  %v2184_v30 = vand.u32 65535, %v4632_v43  ;;  %v2171_v43 = vcvt.s32.f32 %v2169_v62 }
 0x5af   : > { %v2101_v29 = vsel %vm2100_vm10, %v2096_v25, inf }
 0x5b0   : > { %2102 = vmin.xlane.f32.xlu2 %v2101_v29  ;;  %v2186_v45 = vcvt.s32.f32 %v2184_v30 }
 0x5b5   : > { %v4798_v20 = vpop.xlane.xlu2 %2143 }
 0x5b6   : > { %vm2145_vm13 = vcmp.eq.f32.partialorder %v4609_v61, %v4798_v20 }
 0x5b7   : > { %v2146_v7 = vsel %vm2145_vm13, %v2141_v34, inf  ;;  %v2045_v34 = vcvt.f32.s32 %v4755_v0  ;;  %v2259_v0 = vand.u32 65535, %v4771_v41  ;;  %v2090_v41 = vcvt.f32.s32 %v4777_v15 }
 0x5b8   : > { %2147 = vmin.xlane.f32.xlu2 %v2146_v7 }
 0x5b9   : > { %v2046_v7 = vshll.u32 %v2045_v34, 16  ;;  %v2261_v62 = vcvt.s32.f32 %v2259_v0 }
 0x5ba   : > { %v4803_v17 = vpop.xlane.xlu1 %2068 }
 0x5bb   : > { %vm2070_vm14 = vcmp.eq.f32.partialorder %v4626_v42, %v4803_v17  ;;  %v2111_v42 = vcvt.s32.f32 %v2109_v56 }
 0x5bc   : > { %v2071_v24 = vsel %vm2070_vm14, %v2066_v16, inf }
 0x5bd   : > { %2072 = vmin.xlane.f32.xlu1 %v2071_v24 }
 0x5bf   : > { %v4810_v28 = vpop.xlane.xlu2 %2188 }
 0x5c0   : > { %vm2190_vm15 = vcmp.eq.f32.partialorder %v4653_v21, %v4810_v28  ;;  %v2154_v21 = vand.u32 65535, %v4681_v11 }
 0x5c1   : > { %v2191_v61 = vsel %vm2190_vm15, %v2186_v45, inf }
 0x5c2   : > { %2192 = vmin.xlane.f32.xlu2 %v2191_v61  ;;  %v4814_v12 = vpop.xlane.xlu1 %2113  ;;  %v4816_v38 = vpop.xlane.xlu0 %2173  ;;  %v2156_v4 = vcvt.s32.f32 %v2154_v21 }
 0x5c3   : > { %vm2115_vm0 = vcmp.eq.f32.partialorder %v4666_v32, %v4814_v12  ;;  %vm2175_vm2 = vcmp.eq.f32.partialorder %v4664_v36, %v4816_v38  ;;  %v2214_v32 = vand.u32 65535, %v4712_v51  ;;  %v2201_v36 = vcvt.s32.f32 %v2199_v23 }
 0x5c4   : > { %v2116_v2 = vsel %vm2115_vm0, %v2111_v42, inf  ;;  %v2176_v35 = vsel %vm2175_vm2, %v2171_v43, inf  ;;  %v2229_v51 = vand.u32 65535, %v4748_v9  ;;  %v2091_v42 = vshll.u32 %v2090_v41, 16 }
 0x5c5   : > { %2117 = vmin.xlane.f32.xlu1 %v2116_v2  ;;  %2177 = vmin.xlane.f32.xlu0 %v2176_v35  ;;  %v2216_v25 = vcvt.s32.f32 %v2214_v32  ;;  %v2135_v2 = vcvt.f32.s32 %v4783_v13 }
 0x5c7   : > { %v2136_v23 = vshll.u32 %v2135_v2, 16 }
 0x5ca   : > { %v4823_v46 = vpop.xlane.xlu1 %2158 }
 0x5cb   : > { %vm2160_vm4 = vcmp.eq.f32.partialorder %v4684_v14, %v4823_v46 }
 0x5cc   : > { %v2161_v6 = vsel %vm2160_vm4, %v2156_v4, inf }
 0x5cd   : > { %2162 = vmin.xlane.f32.xlu1 %v2161_v6 }
 0x5d4   : > { %v4829_v22 = vpop.xlane.xlu1 %2203 }
 0x5d5   : > { %vm2205_vm9 = vcmp.eq.f32.partialorder %v4714_v26, %v4829_v22  ;;  %v4833_v59 = vpop.xlane.xlu0 %2218 }
 0x5d6   : > { %v2206_v11 = vsel %vm2205_vm9, %v2201_v36, inf  ;;  %vm2220_vm6 = vcmp.eq.f32.partialorder %v4718_v58, %v4833_v59  ;;  %v2231_v58 = vcvt.s32.f32 %v2229_v51  ;;  %v2105_v51 = vcvt.f32.s32 %v4793_v54 }
 0x5d7   : > { %2207 = vmin.xlane.f32.xlu1 %v2206_v11  ;;  %v2221_v14 = vsel %vm2220_vm6, %v2216_v25, inf  ;;  %v2060_v11 = vcvt.f32.s32 %v4788_v63 }
 0x5d8   : > { %2222 = vmin.xlane.f32.xlu0 %v2221_v14 }
 0x5d9   : > { %v2061_v14 = vshll.u32 %v2060_v11, 16 }
 0x5f0   : > { %v4839_v29 = vpop.xlane.xlu1 %2248 }
 0x5f1   : > { %vm2250_vm7 = vcmp.eq.f32.partialorder %v4745_v18, %v4839_v29 }
 0x5f2   : > { %v2251_v26 = vsel %vm2250_vm7, %v2246_v33, inf  ;;  %v4844_v47 = vpop.xlane.xlu2 %2233 }
 0x5f3   : > { %2252 = vmin.xlane.f32.xlu1 %v2251_v26  ;;  %vm2235_vm8 = vcmp.eq.f32.partialorder %v4753_v60, %v4844_v47 }
 0x5f4   : > { %v2236_v49 = vsel %vm2235_vm8, %v2231_v58, inf }
 0x5f5   : > { %2237 = vmin.xlane.f32.xlu2 %v2236_v49  ;;  %v2043_v9 = vpop.xlane.xlu0 %2042 }
 0x5f6   : > { %v2044_v16 = vcvt.f32.s32 %v2043_v9  ;;  %v2150_v9 = vcvt.f32.s32 %v4798_v20  ;;  %v2195_v20 = vcvt.f32.s32 %v4810_v28 }
 0x5f8   : > { %v2047_v30 = vadd.s32 %v2046_v7, %v2044_v16 }
 0x5fa   : > { %v2273_v18 = vcvt.s32.f32 %v2047_v30 }
 0x5fc   : > { %v2340_v24 = vsel %vm2339_vm11, %v4492_v39, %v2273_v18  ;;  %v2151_v18 = vshll.u32 %v2150_v9, 16 }
 0x5fd   : > { %v2357_v56 = vsel %vm2356_vm12, %v2340_v24, 0.0 }
 0x5fe   : > { %2373 = vst [vmem:[%s4855_s10] sm:$0xff] %v2357_v56 }
 0x600   : > { %v4858_v60 = vpop.xlane.xlu0 %2263 }
 0x601   : > { %vm2265_vm5 = vcmp.eq.f32.partialorder %v4774_v44, %v4858_v60 }
 0x602   : > { %v2266_v45 = vsel %vm2265_vm5, %v2261_v62, inf }
 0x603   : > { %2267 = vmin.xlane.f32.xlu0 %v2266_v45 }
 0x608   : > { %v2088_v61 = vpop.xlane.xlu0 %2087 }
 0x609   : > { %v2089_v39 = vcvt.f32.s32 %v2088_v61 }
 0x60b   : > { %v2092_v43 = vadd.s32 %v2091_v42, %v2089_v39  ;;  %v2120_v39 = vcvt.f32.s32 %v4814_v12 }
 0x60d   : > { %v2276_v35 = vcvt.s32.f32 %v2092_v43 }
 0x60f   : > { %v2343_v21 = vsel %vm2339_vm11, %v4514_v19, %v2276_v35  ;;  %v2196_v35 = vshll.u32 %v2195_v20, 16 }
 0x610   : > { %v2360_v4 = vsel %vm2356_vm12, %v2343_v21, 0.0  ;;  %v2133_v6 = vpop.xlane.xlu0 %2132 }
 0x611   : > { %2376 = vst [vmem:[%s4855_s10 + $0x18] sm:$0xff] %v2360_v4  ;;  %v2134_v44 = vcvt.f32.s32 %v2133_v6 }
 0x613   : > { %v2137_v32 = vadd.s32 %v2136_v23, %v2134_v44  ;;  %v2121_v44 = vshll.u32 %v2120_v39, 16 }
 0x615   : > { %v2279_v15 = vcvt.s32.f32 %v2137_v32 }
 0x617   : > { %v2346_v36 = vsel %vm2339_vm11, %v4542_v37, %v2279_v15  ;;  %v2106_v37 = vshll.u32 %v2105_v51, 16 }
 0x618   : > { %v2363_v13 = vsel %vm2356_vm12, %v2346_v36, 0.0 }
 0x619   : > { %2379 = vst [vmem:[%s4855_s10 + $0x30] sm:$0xff] %v2363_v13 }
 0x61b   : > { %v2058_v25 = vpop.xlane.xlu2 %2057 }
 0x61c   : > { %v2059_v19 = vcvt.f32.s32 %v2058_v25 }
 0x61e   : > { %v2062_v48 = vadd.s32 %v2061_v14, %v2059_v19 }
 0x620   : > { %v2274_v33 = vcvt.s32.f32 %v2062_v48 }
 0x622   : > { %v2341_v26 = vsel %vm2339_vm11, %v4559_v57, %v2274_v33  ;;  %v2075_v57 = vcvt.f32.s32 %v4803_v17  ;;  %v2180_v17 = vcvt.f32.s32 %v4816_v38 }
 0x623   : > { %v2358_v34 = vsel %vm2356_vm12, %v2341_v26, 0.0  ;;  %v2103_v58 = vpop.xlane.xlu2 %2102 }
 0x624   : > { %2374 = vst [vmem:[%s4855_s10 + $0x8] sm:$0xff] %v2358_v34  ;;  %v2104_v63 = vcvt.f32.s32 %v2103_v58  ;;  %v2076_v62 = vshll.u32 %v2075_v57, 16  ;;  %v2181_v32 = vshll.u32 %v2180_v17, 16 }
 0x626   : > { %v2107_v49 = vadd.s32 %v2106_v37, %v2104_v63  ;;  %v2210_v63 = vcvt.f32.s32 %v4829_v22 }
 0x628   : > { %v2277_v7 = vcvt.s32.f32 %v2107_v49 }
 0x62a   : > { %v2344_v16 = vsel %vm2339_vm11, %v4576_v53, %v2277_v7  ;;  %v2211_v7 = vshll.u32 %v2210_v63, 16 }
 0x62b   : > { %v2361_v54 = vsel %vm2356_vm12, %v2344_v16, 0.0  ;;  %v2148_v30 = vpop.xlane.xlu2 %2147 }
 0x62c   : > { %2377 = vst [vmem:[%s4855_s10 + $0x20] sm:$0xff] %v2361_v54  ;;  %v2149_v0 = vcvt.f32.s32 %v2148_v30 }
 0x62e   : > { %v2152_v24 = vadd.s32 %v2151_v18, %v2149_v0 }
 0x630   : > { %v2073_v56 = vpop.xlane.xlu1 %2072  ;;  %v2280_v45 = vcvt.s32.f32 %v2152_v24 }
 0x631   : > { %v2074_v41 = vcvt.f32.s32 %v2073_v56 }
 0x632   : > { %v2347_v61 = vsel %vm2339_vm11, %v4593_v8, %v2280_v45  ;;  %v2255_v45 = vcvt.f32.s32 %v4839_v29 }
 0x633   : > { %v2077_v53 = vadd.s32 %v2076_v62, %v2074_v41  ;;  %v2364_v42 = vsel %vm2356_vm12, %v2347_v61, 0.0  ;;  %v2240_v41 = vcvt.f32.s32 %v4844_v47 }
 0x634   : > { %2380 = vst [vmem:[%s4855_s10 + $0x38] sm:$0xff] %v2364_v42  ;;  %v2256_v61 = vshll.u32 %v2255_v45, 16 }
 0x635   : > { %v2275_v43 = vcvt.s32.f32 %v2077_v53  ;;  %v2193_v2 = vpop.xlane.xlu2 %2192  ;;  %v2241_v39 = vshll.u32 %v2240_v41, 16 }
 0x636   : > { %v2194_v21 = vcvt.f32.s32 %v2193_v2 }
 0x637   : > { %v2342_v4 = vsel %vm2339_vm11, %v4607_v5, %v2275_v43  ;;  %v2165_v5 = vcvt.f32.s32 %v4823_v46 }
 0x638   : > { %v2359_v28 = vsel %vm2356_vm12, %v2342_v4, 0.0  ;;  %v2197_v6 = vadd.s32 %v2196_v35, %v2194_v21  ;;  %v2118_v8 = vpop.xlane.xlu1 %2117  ;;  %v2178_v23 = vpop.xlane.xlu0 %2177  ;;  %v2270_v4 = vcvt.f32.s32 %v4858_v60 }
 0x639   : > { %2375 = vst [vmem:[%s4855_s10 + $0x10] sm:$0xff] %v2359_v28  ;;  %v2119_v12 = vcvt.f32.s32 %v2118_v8  ;;  %v2179_v15 = vcvt.f32.s32 %v2178_v23 }
 0x63a   : > { %v2283_v38 = vcvt.s32.f32 %v2197_v6  ;;  %v2271_v6 = vshll.u32 %v2270_v4, 16 }
 0x63b   : > { %v2122_v36 = vadd.s32 %v2121_v44, %v2119_v12  ;;  %v2182_v11 = vadd.s32 %v2181_v32, %v2179_v15 }
 0x63c   : > { %v2350_v13 = vsel %vm2339_vm11, %v4624_v50, %v2283_v38  ;;  %v2166_v50 = vshll.u32 %v2165_v5, 16 }
 0x63d   : > { %v2367_v25 = vsel %vm2356_vm12, %v2350_v13, 0.0  ;;  %v2278_v14 = vcvt.s32.f32 %v2122_v36  ;;  %v2282_v19 = vcvt.s32.f32 %v2182_v11 }
 0x63e   : > { %2383 = vst [vmem:[%s4855_s10 + $0x50] sm:$0xff] %v2367_v25 }
 0x63f   : > { %v2345_v48 = vsel %vm2339_vm11, %v4651_v3, %v2278_v14  ;;  %v2349_v51 = vsel %vm2339_vm11, %v4647_v27, %v2282_v19  ;;  %v2225_v27 = vcvt.f32.s32 %v4833_v59 }
 0x640   : > { %v2362_v33 = vsel %vm2356_vm12, %v2345_v48, 0.0  ;;  %v2366_v26 = vsel %vm2356_vm12, %v2349_v51, 0.0  ;;  %v2163_v34 = vpop.xlane.xlu1 %2162 }
 0x641   : > { %2378 = vst [vmem:[%s4855_s10 + $0x28] sm:$0xff] %v2362_v33  ;;  %v2164_v46 = vcvt.f32.s32 %v2163_v34  ;;  %v2226_v30 = vshll.u32 %v2225_v27, 16 }
 0x642   : > { %2382 = vst [vmem:[%s4855_s10 + $0x48] sm:$0xff] %v2366_v26 }
 0x643   : > { %v2167_v58 = vadd.s32 %v2166_v50, %v2164_v46 }
 0x645   : > { %v2281_v37 = vcvt.s32.f32 %v2167_v58 }
 0x647   : > { %v2348_v49 = vsel %vm2339_vm11, %v4678_v55, %v2281_v37 }
 0x648   : > { %v2365_v3 = vsel %vm2356_vm12, %v2348_v49, 0.0 }
 0x649   : > { %2381 = vst [vmem:[%s4855_s10 + $0x40] sm:$0xff] %v2365_v3 }
 0x64a   : > { %v2208_v9 = vpop.xlane.xlu1 %2207 }
 0x64b   : > { %v2209_v16 = vcvt.f32.s32 %v2208_v9  ;;  %v2223_v54 = vpop.xlane.xlu0 %2222 }
 0x64c   : > { %v2224_v57 = vcvt.f32.s32 %v2223_v54 }
 0x64d   : > { %v2212_v18 = vadd.s32 %v2211_v7, %v2209_v16 }
 0x64e   : > { %v2227_v24 = vadd.s32 %v2226_v30, %v2224_v57 }
 0x64f   : > { %v2284_v0 = vcvt.s32.f32 %v2212_v18 }
 0x650   : > { %v2285_v55 = vcvt.s32.f32 %v2227_v24 }
 0x651   : > { %v2351_v22 = vsel %vm2339_vm11, %v4699_v31, %v2284_v0 }
 0x652   : > { %v2368_v56 = vsel %vm2356_vm12, %v2351_v22, 0.0  ;;  %v2352_v59 = vsel %vm2339_vm11, %v4708_v10, %v2285_v55 }
 0x653   : > { %2384 = vst [vmem:[%s4855_s10 + $0x58] sm:$0xff] %v2368_v56  ;;  %v2369_v62 = vsel %vm2356_vm12, %v2352_v59, 0.0 }
 0x654   : > { %2385 = vst [vmem:[%s4855_s10 + $0x60] sm:$0xff] %v2369_v62 }
 0x666   : > { %v2253_v20 = vpop.xlane.xlu1 %2252 }
 0x667   : > { %v2254_v31 = vcvt.f32.s32 %v2253_v20 }
 0x668   : > { %v2238_v42 = vpop.xlane.xlu2 %2237 }
 0x669   : > { %v2257_v53 = vadd.s32 %v2256_v61, %v2254_v31  ;;  %v2239_v17 = vcvt.f32.s32 %v2238_v42 }
 0x66b   : > { %v2287_v43 = vcvt.s32.f32 %v2257_v53  ;;  %v2242_v10 = vadd.s32 %v2241_v39, %v2239_v17 }
 0x66d   : > { %v2354_v2 = vsel %vm2339_vm11, %v4729_v52, %v2287_v43  ;;  %v2286_v29 = vcvt.s32.f32 %v2242_v10 }
 0x66e   : > { %v2371_v35 = vsel %vm2356_vm12, %v2354_v2, 0.0 }
 0x66f   : > { %2387 = vst [vmem:[%s4855_s10 + $0x70] sm:$0xff] %v2371_v35  ;;  %v2353_v47 = vsel %vm2339_vm11, %v4743_v1, %v2286_v29 }
 0x670   : > { %v2370_v21 = vsel %vm2356_vm12, %v2353_v47, 0.0 }
 0x671   : > { %2386 = vst [vmem:[%s4855_s10 + $0x68] sm:$0xff] %v2370_v21 }
 0x676   : > { %v2268_v28 = vpop.xlane.xlu0 %2267 }
 0x677   : > { %v2269_v8 = vcvt.f32.s32 %v2268_v28 }
 0x679   : > { %v2272_v52 = vadd.s32 %v2271_v6, %v2269_v8 }
 0x67b   : > { %v2288_v1 = vcvt.s32.f32 %v2272_v52 }
 0x67d   : > { %v2355_v23 = vsel %vm2339_vm11, %v4768_v40, %v2288_v1 }
 0x67e   : > { %v2372_v60 = vsel %vm2356_vm12, %v2355_v23, 0.0 }
 0x67f   : > { %2388 = vst [vmem:[%s4855_s10 + $0x78] sm:$0xff] %v2372_v60 }
 0x680   : > { %2725 = shalt.err (!%p2722_p3)
}
 0x681   : > { %s2765_s8 = smov 128   ;;  %s2766_s9 = smov 8  }
 0x682   : > { %2524 = dma.vmem_to_hbm [thread:$0]  (%p2835_p5), %s2403_s15, 2048, %s2405_s16, %s2390_s22, %s2765_s8, %s2765_s8, %s2766_s9  }
 0x683 PF: > { %p2530_p4 = scmp.ge.s32.totalorder %s2760_s21, 2  ;;  %s2419_s10 = sand.u32 1, %s2748_s18  }
 0x684   : > { %s2420_s11 = scalar_lea.sflag [#allocation3], %s2419_s10 }
 0x685   : > { %p2527_p7 = pnand %p2530_p4, %p2839_p6 }
 0x687   : > { %p2528_p8 = pneg %p2527_p7 }
 0x689   : > { %2743 = dma.done.wait (%p2528_p8), %s2420_s11, 2048  }
 0x68a   : > { %2745 = vsyncadd (%p2528_p8), %s2420_s11, 4294965248  ;;  %p15_p9 = scmp.ge.s32.totalorder %s2822_s24, 4   ;;  %s5174_s18 = smov %s2752_s19 }
 0x68b   : > { %s5175_s19 = smov %s2756_s20  ;;  %s5176_s20 = smov %s2833_s27 }
 0x68c   : > { %s5177_s21 = smov %s2822_s24  ;;  %17 = sbr.rel (!%p15_p9) target bundleno = 3 (0x3), region = 75 }
 0x691   :  { %2426 = vsyncpa [#allocation3], 1 }
 0x692   :  { %2428 = vsyncpa [#allocation3 + $0x1], 1 }

</bundles_post_ra>
